<compile_context>
chip_gen: v5e
topology: v5e:2x2
jax: 0.10.0
libtpu: 0.0.40
codegen_flags: <defaults>
</compile_context>

<pallas_src>
import numpy as np
import jax
import jax.numpy as jnp
from jax import lax
from jax.experimental import pallas as pl
from jax.experimental.pallas import tpu as pltpu


# -----------------------------------------------------------------------------
# Model hyper-parameters (match the PyTorch module construction in __main__).
# -----------------------------------------------------------------------------
NUM_HEADS = 4
DIM_IN = 32
DIM_Q = 16
DIM_K = 16
EDGE_DIM = 8
MAX_PATH_DISTANCE = 5

# Demo batch-of-graphs sizes (the module's own ptr mechanism batches graphs).
NODES_PER_GRAPH = 8
NUM_GRAPHS = 32
N_TOTAL = NODES_PER_GRAPH * NUM_GRAPHS          # 256 nodes
EDGES_PER_GRAPH = 7
NUM_EDGES = EDGES_PER_GRAPH * NUM_GRAPHS

TQ = 128                                        # query-row tile (grid axis)


def _round_up(a, m):
    return (a + m - 1) // m * m


# -----------------------------------------------------------------------------
# Pallas kernel
# -----------------------------------------------------------------------------
def _make_kernel(num_heads, dim_in, dim_q, dim_k):
    hq = num_heads * dim_q
    hk = num_heads * dim_k

    def kernel(xq_ref, xk_ref, wq_ref, bq_ref, wkvo_ref, bkvo_ref,
               bias_ref, mzn_ref, mz_ref, bo_ref, o_ref, q_s, kvo_s):
        # Fused lane-dense projections (bf16 MXU operands, f32 accumulation),
        # written once to VMEM scratch so per-head operands are ref slabs and
        # never lane-extractions of a live vreg value.
        q_s[...] = (jnp.dot(xq_ref[...], wq_ref[...],
                            preferred_element_type=jnp.float32)
                    + bq_ref[...]).astype(jnp.bfloat16)
        kvo_s[...] = (jnp.dot(xk_ref[...], wkvo_ref[...],
                              preferred_element_type=jnp.float32)
                      + bkvo_ref[...]).astype(jnp.bfloat16)

        mzn = mzn_ref[...]          # mask_zeros * mask_neg_inf   (TQ, NPAD) f32
        mz = mz_ref[...]            # mask_zeros                  (TQ, NPAD) f32

        acc = jnp.zeros(o_ref.shape, jnp.float32)
        for h in range(num_heads):                          # static unroll (H=4)
            q = q_s[:, h * dim_q:(h + 1) * dim_q]           # (TQ, dim_q)   bf16
            k = kvo_s[:, h * dim_k:(h + 1) * dim_k]         # (NPAD, dim_k) bf16
            vo = kvo_s[:, hk + h * dim_in: hk + (h + 1) * dim_in]  # (NPAD, dim_in)

            # scores vs every key (lane-dense (TQ, NPAD) tile); mask + combined
            # (spatial + edge) bias in one fused multiply-add:
            #   (qk * mz + b + c) * mn  ==  qk * (mz*mn) + (b+c)*mn
            a = lax.dot_general(q, k, (((1,), (1,)), ((), ())),
                                preferred_element_type=jnp.float32)
            a = a * mzn + bias_ref[h]

            # Row-wise stable softmax; the divide goes to the EUP.
            a = a - jnp.max(a, axis=-1, keepdims=True)
            e = jnp.exp(a)
            s = e * pl.reciprocal(jnp.sum(e, axis=-1, keepdims=True), approx=True)
            s = s * mz

            # Output linear folded into V (Wvo = Wv @ Wo): accumulate directly.
            acc = acc + jnp.dot(s.astype(jnp.bfloat16), vo,
                                preferred_element_type=jnp.float32)

        o_ref[...] = acc + bo_ref[...]

    return kernel


# -----------------------------------------------------------------------------
# Wrapper: host-side packing + pallas_call
# -----------------------------------------------------------------------------
def graphormer_mha_pallas(x, wq, bq, wk, bk, wv, bv, b, c, mz, mn, wo_flat, bo,
                          *, tq=TQ):
    """Fused Graphormer multi-head attention forward.  Returns (N, dim_in)."""
    n, dim_in = x.shape
    num_heads, _, dim_q = wq.shape
    dim_k = wk.shape[-1]
    hq, hk = num_heads * dim_q, num_heads * dim_k
    kvo_w = hk + num_heads * dim_in

    # ---- host-side parameter packing ---------------------------------------
    scale = 1.0 / float(dim_q) ** 0.5
    wq_cat = jnp.concatenate([wq[h] * scale for h in range(num_heads)], -1)
    bq_cat = jnp.concatenate([bq[h] * scale for h in range(num_heads)], -1)
    wk_cat = jnp.concatenate([wk[h] for h in range(num_heads)], -1)
    bk_cat = jnp.concatenate([bk[h] for h in range(num_heads)], -1)
    # Fold the output linear into V:  vo_h = x @ (Wv_h @ Wo_h) + bv_h @ Wo_h.
    wo_h = [wo_flat[h * dim_k:(h + 1) * dim_k, :] for h in range(num_heads)]
    wvo_cat = jnp.concatenate([wv[h] @ wo_h[h] for h in range(num_heads)], -1)
    bvo_cat = jnp.concatenate([bv[h] @ wo_h[h] for h in range(num_heads)], -1)
    wkvo_cat = jnp.concatenate([wk_cat, wvo_cat], -1)        # (dim_in, 192)
    bkvo_cat = jnp.concatenate([bk_cat, bvo_cat], -1)        # (1, 192)

    bias = (b[None, :, :] + c) * mn[None, :, :]              # (H, N, N) pre-masked
    mzn = mz * mn

    # ---- pad node axes so score/bias/mask tiles are lane-dense (>=128) -----
    npad = _round_up(max(n, tq), 128)
    tq = min(tq, npad)
    assert npad % tq == 0
    grid = (npad // tq,)

    x_p = jnp.zeros((npad, dim_in), jnp.float32).at[:n, :].set(x)
    bias_p = jnp.full((num_heads, npad, npad), -1e9, jnp.float32)
    bias_p = bias_p.at[:, :n, :n].set(bias)
    mz_p = jnp.zeros((npad, npad), jnp.float32).at[:n, :n].set(mz)
    mzn_p = jnp.zeros((npad, npad), jnp.float32).at[:n, :n].set(mzn)

    # bf16 MXU operands; f32 accumulation / element-wise math inside the kernel.
    x_bf = x_p.astype(jnp.bfloat16)
    wq_bf = wq_cat.astype(jnp.bfloat16)
    wkvo_bf = wkvo_cat.astype(jnp.bfloat16)

    kernel = _make_kernel(num_heads, dim_in, dim_q, dim_k)

    flops = grid[0] * (
        2 * tq * dim_in * hq
        + 2 * npad * dim_in * kvo_w
        + num_heads * (2 * tq * npad * dim_q + 2 * tq * npad * dim_in))
    bytes_accessed = (
        2 * (x_bf.size * 2 + wq_bf.size + wkvo_bf.size)
        + 4 * (bq_cat.size + bkvo_cat.size + bias_p.size + mz_p.size
               + mzn_p.size + bo.size + npad * dim_in))

    out = pl.pallas_call(
        kernel,
        out_shape=jax.ShapeDtypeStruct((npad, dim_in), jnp.float32),
        grid=grid,
        in_specs=[
            pl.BlockSpec((tq, dim_in), lambda i: (i, 0)),            # x: query rows
            pl.BlockSpec((npad, dim_in), lambda i: (0, 0)),          # x: all keys
            pl.BlockSpec((dim_in, hq), lambda i: (0, 0)),            # Wq (scaled)
            pl.BlockSpec((1, hq), lambda i: (0, 0)),                 # bq (scaled)
            pl.BlockSpec((dim_in, kvo_w), lambda i: (0, 0)),         # [Wk | Wv@Wo]
            pl.BlockSpec((1, kvo_w), lambda i: (0, 0)),              # [bk | bv@Wo]
            pl.BlockSpec((num_heads, tq, npad), lambda i: (0, i, 0)),  # (b+c)*mn
            pl.BlockSpec((tq, npad), lambda i: (i, 0)),              # mz*mn
            pl.BlockSpec((tq, npad), lambda i: (i, 0)),              # mz
            pl.BlockSpec((1, dim_in), lambda i: (0, 0)),             # bo
        ],
        out_specs=pl.BlockSpec((tq, dim_in), lambda i: (i, 0)),
        scratch_shapes=[
            pltpu.VMEM((tq, hq), jnp.bfloat16),                      # q
            pltpu.VMEM((npad, kvo_w), jnp.bfloat16),                 # [k | vo]
        ],
        compiler_params=pltpu.CompilerParams(
            dimension_semantics=("parallel",),
            vmem_limit_bytes=32 * 1024 * 1024),
        cost_estimate=pl.CostEstimate(
            flops=flops,
            transcendentals=grid[0] * num_heads * tq * npad,
            bytes_accessed=bytes_accessed),
    )(x_bf, x_bf, wq_bf, bq_cat, wkvo_bf, bkvo_cat, bias_p, mzn_p, mz_p, bo)

    return out[:n]


# -----------------------------------------------------------------------------
# Host-side glue: EdgeEncoding (irregular dict loops) and ptr -> masks.
# -----------------------------------------------------------------------------
# TODO(synk): EdgeEncoding's variable-length, dict-driven path gather has no
# clean Pallas equivalent; it is computed host-side in numpy.
def edge_encoding_np(edge_vector, edge_attr, edge_paths, n_nodes, max_path_distance):
    cij = np.zeros((n_nodes, n_nodes), dtype=np.float32)
    for src in edge_paths:
        for dst in edge_paths[src]:
            path_ij = edge_paths[src][dst][:max_path_distance]
            if len(path_ij) == 0:
                val = np.nan
            else:
                ev = edge_vector[np.arange(len(path_ij))]
                ea = edge_attr[np.asarray(path_ij)]
                val = float((ev * ea).sum(axis=1).mean())
            cij[src, dst] = val
    return np.nan_to_num(cij)


def masks_from_ptr(ptr, n_nodes):
    mask_neg = np.full((n_nodes, n_nodes), -1000000.0, dtype=np.float32)
    mask_zero = np.zeros((n_nodes, n_nodes), dtype=np.float32)
    if ptr is None:
        mask_neg = np.ones((n_nodes, n_nodes), dtype=np.float32)
        mask_zero = mask_zero + 1.0
    else:
        for i in range(len(ptr) - 1):
            mask_neg[ptr[i]:ptr[i + 1], ptr[i]:ptr[i + 1]] = 1.0
            mask_zero[ptr[i]:ptr[i + 1], ptr[i]:ptr[i + 1]] = 1.0
    return mask_neg, mask_zero


# -----------------------------------------------------------------------------
# Pure-JAX reference (mirrors the PyTorch forward) for correctness checking.
# -----------------------------------------------------------------------------
def reference(x, wq, bq, wk, bk, wv, bv, b, c, mz, mn, wo_flat, bo):
    num_heads, _, dim_q = wq.shape
    heads = []
    for h in range(num_heads):
        q = x @ wq[h] + bq[h]
        k = x @ wk[h] + bk[h]
        v = x @ wv[h] + bv[h]
        a = (q @ k.T) / (dim_q ** 0.5)
        a = a * mz                                  # compute_a: block-diagonal
        a = (a + b + c[h]) * mn
        s = jax.nn.softmax(a, axis=-1) * mz
        heads.append(s @ v)
    cat = jnp.concatenate(heads, axis=-1)
    return cat @ wo_flat + bo


# -----------------------------------------------------------------------------
# Main
# -----------------------------------------------------------------------------
if __name__ == "__main__":
    key = jax.random.PRNGKey(0)
    keys = jax.random.split(key, 16)
    N = N_TOTAL

    # Node features; spatial encoding kept positive so the module's
    # multiplicative -1e6 batch mask acts as a proper block-diagonal mask.
    x = jax.random.normal(keys[0], (N, DIM_IN), dtype=jnp.float32)
    b_spatial = jax.random.uniform(keys[1], (N, N), dtype=jnp.float32,
                                   minval=0.1, maxval=1.1)
    edge_attr = jax.random.normal(keys[2], (NUM_EDGES, EDGE_DIM), dtype=jnp.float32)

    # NUM_GRAPHS graphs of NODES_PER_GRAPH nodes each, with synthetic edge paths.
    ptr = list(range(0, N + 1, NODES_PER_GRAPH))
    edge_paths = {}
    for g in range(NUM_GRAPHS):
        o = NODES_PER_GRAPH * g
        e = EDGES_PER_GRAPH * g
        edge_paths[o + 0] = {o + 1: [e], o + 2: [e, e + 1], o + 3: [e, e + 1, e + 2]}
        edge_paths[o + 1] = {o + 2: [e + 1], o + 3: [e + 1, e + 2]}
        edge_paths[o + 2] = {o + 3: [e + 2]}
        edge_paths[o + 4] = {o + 5: [e + 3], o + 6: [e + 3, e + 4],
                             o + 7: [e + 3, e + 4, e + 5, e + 6, e, e + 1]}  # truncated to 5
        edge_paths[o + 5] = {o + 6: [e + 4], o + 7: [e + 4, e + 5]}
        edge_paths[o + 6] = {o + 7: [e + 5]}

    # Parameters (per-head weights stacked on axis 0; wo_flat is Wo^T).
    wq = jax.random.normal(keys[3], (NUM_HEADS, DIM_IN, DIM_Q), jnp.float32) * 0.1
    bq = jax.random.normal(keys[4], (NUM_HEADS, 1, DIM_Q), jnp.float32) * 0.1
    wk = jax.random.normal(keys[5], (NUM_HEADS, DIM_IN, DIM_K), jnp.float32) * 0.1
    bk = jax.random.normal(keys[6], (NUM_HEADS, 1, DIM_K), jnp.float32) * 0.1
    wv = jax.random.normal(keys[7], (NUM_HEADS, DIM_IN, DIM_K), jnp.float32) * 0.1
    bv = jax.random.normal(keys[8], (NUM_HEADS, 1, DIM_K), jnp.float32) * 0.1
    edge_vectors = jax.random.normal(
        keys[9], (NUM_HEADS, MAX_PATH_DISTANCE, EDGE_DIM), jnp.float32)
    wo_flat = jax.random.normal(keys[10], (NUM_HEADS * DIM_K, DIM_IN), jnp.float32) * 0.1
    bo = jax.random.normal(keys[11], (1, DIM_IN), jnp.float32) * 0.1

    # Host-side glue: per-head edge encodings and ptr -> block-diagonal masks.
    edge_attr_np = np.asarray(edge_attr)
    c = jnp.asarray(np.stack([
        edge_encoding_np(np.asarray(edge_vectors[h]), edge_attr_np,
                         edge_paths, N, MAX_PATH_DISTANCE)
        for h in range(NUM_HEADS)], axis=0))
    mn_np, mz_np = masks_from_ptr(ptr, N)
    mn = jnp.asarray(mn_np)
    mz = jnp.asarray(mz_np)

    # Run the Pallas kernel.
    out = graphormer_mha_pallas(x, wq, bq, wk, bk, wv, bv, b_spatial, c,
                                mz, mn, wo_flat, bo)
    out = jax.block_until_ready(out)

    # Verify against the pure-JAX f32 reference of the PyTorch forward.
    # Tolerance covers bf16 MXU operands, the host-side Wv@Wo fold (f32
    # reassociation) and the approximate EUP reciprocal in the softmax.
    ref = reference(x, wq, bq, wk, bk, wv, bv, b_spatial, c, mz, mn, wo_flat, bo)
    np.testing.assert_allclose(np.asarray(out), np.asarray(ref),
                               rtol=2e-2, atol=2e-2)

    print("KERNEL_OK")
</pallas_src>

<mosaic_0001>
module attributes {stable_mosaic.version = 11 : i64} {
  func.func @kernel(%arg0: i32, %arg1: memref<128x32xbf16, #tpu.memory_space<vmem>>, %arg2: memref<256x32xbf16, #tpu.memory_space<vmem>>, %arg3: memref<32x64xbf16, #tpu.memory_space<vmem>>, %arg4: memref<1x64xf32, #tpu.memory_space<vmem>>, %arg5: memref<32x192xbf16, #tpu.memory_space<vmem>>, %arg6: memref<1x192xf32, #tpu.memory_space<vmem>>, %arg7: memref<4x128x256xf32, #tpu.memory_space<vmem>>, %arg8: memref<128x256xf32, #tpu.memory_space<vmem>>, %arg9: memref<128x256xf32, #tpu.memory_space<vmem>>, %arg10: memref<1x32xf32, #tpu.memory_space<vmem>>, %arg11: memref<128x32xf32, #tpu.memory_space<vmem>>, %arg12: memref<128x64xbf16, #tpu.memory_space<vmem>>, %arg13: memref<256x192xbf16, #tpu.memory_space<vmem>>) attributes {dimension_semantics = [#tpu.dimension_semantics<parallel>], iteration_bounds = array<i64: 2>, scalar_prefetch = 0 : i64, scratch_operands = 2 : i64, tpu.core_type = #tpu.core_type<tc>, window_params = [{transform_indices = @transform_0, window_bounds = array<i64: 128, 32>}, {pipeline_mode = #tpu.pipeline_mode<synchronous>, transform_indices = @transform_1, window_bounds = array<i64: 256, 32>}, {pipeline_mode = #tpu.pipeline_mode<synchronous>, transform_indices = @transform_2, window_bounds = array<i64: 32, 64>}, {pipeline_mode = #tpu.pipeline_mode<synchronous>, transform_indices = @transform_3, window_bounds = array<i64: 1, 64>}, {pipeline_mode = #tpu.pipeline_mode<synchronous>, transform_indices = @transform_4, window_bounds = array<i64: 32, 192>}, {pipeline_mode = #tpu.pipeline_mode<synchronous>, transform_indices = @transform_5, window_bounds = array<i64: 1, 192>}, {transform_indices = @transform_6, window_bounds = array<i64: 4, 128, 256>}, {transform_indices = @transform_7, window_bounds = array<i64: 128, 256>}, {transform_indices = @transform_8, window_bounds = array<i64: 128, 256>}, {pipeline_mode = #tpu.pipeline_mode<synchronous>, transform_indices = @transform_9, window_bounds = array<i64: 1, 32>}, {transform_indices = @transform_10, window_bounds = array<i64: 128, 32>}]} {
    %c0 = arith.constant 0 : index
    %c0_0 = arith.constant 0 : index
    %0 = vector.load %arg1[%c0, %c0_0] : memref<128x32xbf16, #tpu.memory_space<vmem>>, vector<128x32xbf16>
    %c0_1 = arith.constant 0 : index
    %c0_2 = arith.constant 0 : index
    %1 = vector.load %arg3[%c0_1, %c0_2] : memref<32x64xbf16, #tpu.memory_space<vmem>>, vector<32x64xbf16>
    %cst = arith.constant dense<0.000000e+00> : vector<128x64xf32>
    %2 = tpu.matmul %0, %1, %cst {dimension_numbers = #tpu.dot_dimension_numbers<[1], [0], [0], [1], [0, 0, 1, 1], [], []>} : vector<128x32xbf16>, vector<32x64xbf16>, vector<128x64xf32> -> vector<128x64xf32>
    %c0_3 = arith.constant 0 : index
    %c0_4 = arith.constant 0 : index
    %3 = vector.load %arg4[%c0_3, %c0_4] : memref<1x64xf32, #tpu.memory_space<vmem>>, vector<1x64xf32>
    %4 = vector.broadcast %3 : vector<1x64xf32> to vector<128x64xf32>
    %5 = arith.addf %2, %4 : vector<128x64xf32>
    %6 = arith.truncf %5 : vector<128x64xf32> to vector<128x64xbf16>
    %c0_5 = arith.constant 0 : index
    %c0_6 = arith.constant 0 : index
    %7 = vector.load %arg12[%c0_5, %c0_6] : memref<128x64xbf16, #tpu.memory_space<vmem>>, vector<128x64xbf16>
    tpu.vector_store %arg12[%c0_5, %c0_6], %6 {strides = array<i32>} : memref<128x64xbf16, #tpu.memory_space<vmem>>, vector<128x64xbf16>,
    %c0_7 = arith.constant 0 : index
    %c0_8 = arith.constant 0 : index
    %8 = vector.load %arg2[%c0_7, %c0_8] : memref<256x32xbf16, #tpu.memory_space<vmem>>, vector<256x32xbf16>
    %c0_9 = arith.constant 0 : index
    %c0_10 = arith.constant 0 : index
    %9 = vector.load %arg5[%c0_9, %c0_10] : memref<32x192xbf16, #tpu.memory_space<vmem>>, vector<32x192xbf16>
    %cst_11 = arith.constant dense<0.000000e+00> : vector<256x192xf32>
    %10 = tpu.matmul %8, %9, %cst_11 {dimension_numbers = #tpu.dot_dimension_numbers<[1], [0], [0], [1], [0, 0, 1, 1], [], []>} : vector<256x32xbf16>, vector<32x192xbf16>, vector<256x192xf32> -> vector<256x192xf32>
    %c0_12 = arith.constant 0 : index
    %c0_13 = arith.constant 0 : index
    %11 = vector.load %arg6[%c0_12, %c0_13] : memref<1x192xf32, #tpu.memory_space<vmem>>, vector<1x192xf32>
    %12 = vector.broadcast %11 : vector<1x192xf32> to vector<256x192xf32>
    %13 = arith.addf %10, %12 : vector<256x192xf32>
    %14 = arith.truncf %13 : vector<256x192xf32> to vector<256x192xbf16>
    %c0_14 = arith.constant 0 : index
    %c0_15 = arith.constant 0 : index
    %15 = vector.load %arg13[%c0_14, %c0_15] : memref<256x192xbf16, #tpu.memory_space<vmem>>, vector<256x192xbf16>
    tpu.vector_store %arg13[%c0_14, %c0_15], %14 {strides = array<i32>} : memref<256x192xbf16, #tpu.memory_space<vmem>>, vector<256x192xbf16>,
    %c0_16 = arith.constant 0 : index
    %c0_17 = arith.constant 0 : index
    %16 = vector.load %arg8[%c0_16, %c0_17] : memref<128x256xf32, #tpu.memory_space<vmem>>, vector<128x256xf32>
    %c0_18 = arith.constant 0 : index
    %c0_19 = arith.constant 0 : index
    %17 = vector.load %arg9[%c0_18, %c0_19] : memref<128x256xf32, #tpu.memory_space<vmem>>, vector<128x256xf32>
    %cst_20 = arith.constant 0.000000e+00 : f32
    %18 = vector.broadcast %cst_20 : f32 to vector<128x32xf32>
    %c0_21 = arith.constant 0 : index
    %c0_22 = arith.constant 0 : index
    %19 = vector.load %arg12[%c0_21, %c0_22] : memref<128x64xbf16, #tpu.memory_space<vmem>>, vector<128x16xbf16>
    %c0_23 = arith.constant 0 : index
    %c0_24 = arith.constant 0 : index
    %20 = vector.load %arg13[%c0_23, %c0_24] : memref<256x192xbf16, #tpu.memory_space<vmem>>, vector<256x16xbf16>
    %c0_25 = arith.constant 0 : index
    %c64 = arith.constant 64 : index
    %21 = vector.load %arg13[%c0_25, %c64] : memref<256x192xbf16, #tpu.memory_space<vmem>>, vector<256x32xbf16>
    %cst_26 = arith.constant dense<0.000000e+00> : vector<128x256xf32>
    %22 = tpu.matmul %19, %20, %cst_26 {dimension_numbers = #tpu.dot_dimension_numbers<[1], [1], [0], [0], [0, 0, 1, 0], [], []>} : vector<128x16xbf16>, vector<256x16xbf16>, vector<128x256xf32> -> vector<128x256xf32>
    %23 = arith.mulf %22, %16 : vector<128x256xf32>
    %c0_27 = arith.constant 0 : index
    %c0_28 = arith.constant 0 : index
    %c0_29 = arith.constant 0 : index
    %24 = vector.load %arg7[%c0_27, %c0_28, %c0_29] : memref<4x128x256xf32, #tpu.memory_space<vmem>>, vector<1x128x256xf32>
    %25 = vector.shape_cast %24 : vector<1x128x256xf32> to vector<128x256xf32>
    %26 = arith.addf %23, %25 : vector<128x256xf32>
    %cst_30 = arith.constant dense<0xFF800000> : vector<128xf32>
    %27 = vector.multi_reduction <maximumf>, %26, %cst_30 [1] : vector<128x256xf32> to vector<128xf32>
    %28 = vector.shape_cast %27 : vector<128xf32> to vector<128x1xf32>
    %29 = vector.broadcast %28 : vector<128x1xf32> to vector<128x256xf32>
    %30 = arith.subf %26, %29 : vector<128x256xf32>
    %31 = math.exp %30 : vector<128x256xf32>
    %cst_31 = arith.constant dense<0.000000e+00> : vector<128xf32>
    %32 = vector.multi_reduction <add>, %31, %cst_31 [1] : vector<128x256xf32> to vector<128xf32>
    %33 = vector.shape_cast %32 : vector<128xf32> to vector<128x1xf32>
    %34 = tpu.reciprocal %33 {approx = true} : vector<128x1xf32> -> vector<128x1xf32>
    %35 = vector.broadcast %34 : vector<128x1xf32> to vector<128x256xf32>
    %36 = arith.mulf %31, %35 : vector<128x256xf32>
    %37 = arith.mulf %36, %17 : vector<128x256xf32>
    %38 = arith.truncf %37 : vector<128x256xf32> to vector<128x256xbf16>
    %cst_32 = arith.constant dense<0.000000e+00> : vector<128x32xf32>
    %39 = tpu.matmul %38, %21, %cst_32 {dimension_numbers = #tpu.dot_dimension_numbers<[1], [0], [0], [1], [0, 0, 1, 1], [], []>} : vector<128x256xbf16>, vector<256x32xbf16>, vector<128x32xf32> -> vector<128x32xf32>
    %40 = arith.addf %18, %39 : vector<128x32xf32>
    %c0_33 = arith.constant 0 : index
    %c16 = arith.constant 16 : index
    %41 = vector.load %arg12[%c0_33, %c16] : memref<128x64xbf16, #tpu.memory_space<vmem>>, vector<128x16xbf16>
    %c0_34 = arith.constant 0 : index
    %c16_35 = arith.constant 16 : index
    %42 = vector.load %arg13[%c0_34, %c16_35] : memref<256x192xbf16, #tpu.memory_space<vmem>>, vector<256x16xbf16>
    %c0_36 = arith.constant 0 : index
    %c96 = arith.constant 96 : index
    %43 = vector.load %arg13[%c0_36, %c96] : memref<256x192xbf16, #tpu.memory_space<vmem>>, vector<256x32xbf16>
    %cst_37 = arith.constant dense<0.000000e+00> : vector<128x256xf32>
    %44 = tpu.matmul %41, %42, %cst_37 {dimension_numbers = #tpu.dot_dimension_numbers<[1], [1], [0], [0], [0, 0, 1, 0], [], []>} : vector<128x16xbf16>, vector<256x16xbf16>, vector<128x256xf32> -> vector<128x256xf32>
    %45 = arith.mulf %44, %16 : vector<128x256xf32>
    %c1 = arith.constant 1 : index
    %c0_38 = arith.constant 0 : index
    %c0_39 = arith.constant 0 : index
    %46 = vector.load %arg7[%c1, %c0_38, %c0_39] : memref<4x128x256xf32, #tpu.memory_space<vmem>>, vector<1x128x256xf32>
    %47 = vector.shape_cast %46 : vector<1x128x256xf32> to vector<128x256xf32>
    %48 = arith.addf %45, %47 : vector<128x256xf32>
    %cst_40 = arith.constant dense<0xFF800000> : vector<128xf32>
    %49 = vector.multi_reduction <maximumf>, %48, %cst_40 [1] : vector<128x256xf32> to vector<128xf32>
    %50 = vector.shape_cast %49 : vector<128xf32> to vector<128x1xf32>
    %51 = vector.broadcast %50 : vector<128x1xf32> to vector<128x256xf32>
    %52 = arith.subf %48, %51 : vector<128x256xf32>
    %53 = math.exp %52 : vector<128x256xf32>
    %cst_41 = arith.constant dense<0.000000e+00> : vector<128xf32>
    %54 = vector.multi_reduction <add>, %53, %cst_41 [1] : vector<128x256xf32> to vector<128xf32>
    %55 = vector.shape_cast %54 : vector<128xf32> to vector<128x1xf32>
    %56 = tpu.reciprocal %55 {approx = true} : vector<128x1xf32> -> vector<128x1xf32>
    %57 = vector.broadcast %56 : vector<128x1xf32> to vector<128x256xf32>
    %58 = arith.mulf %53, %57 : vector<128x256xf32>
    %59 = arith.mulf %58, %17 : vector<128x256xf32>
    %60 = arith.truncf %59 : vector<128x256xf32> to vector<128x256xbf16>
    %cst_42 = arith.constant dense<0.000000e+00> : vector<128x32xf32>
    %61 = tpu.matmul %60, %43, %cst_42 {dimension_numbers = #tpu.dot_dimension_numbers<[1], [0], [0], [1], [0, 0, 1, 1], [], []>} : vector<128x256xbf16>, vector<256x32xbf16>, vector<128x32xf32> -> vector<128x32xf32>
    %62 = arith.addf %40, %61 : vector<128x32xf32>
    %c0_43 = arith.constant 0 : index
    %c32 = arith.constant 32 : index
    %63 = vector.load %arg12[%c0_43, %c32] : memref<128x64xbf16, #tpu.memory_space<vmem>>, vector<128x16xbf16>
    %c0_44 = arith.constant 0 : index
    %c32_45 = arith.constant 32 : index
    %64 = vector.load %arg13[%c0_44, %c32_45] : memref<256x192xbf16, #tpu.memory_space<vmem>>, vector<256x16xbf16>
    %c0_46 = arith.constant 0 : index
    %c128 = arith.constant 128 : index
    %65 = vector.load %arg13[%c0_46, %c128] : memref<256x192xbf16, #tpu.memory_space<vmem>>, vector<256x32xbf16>
    %cst_47 = arith.constant dense<0.000000e+00> : vector<128x256xf32>
    %66 = tpu.matmul %63, %64, %cst_47 {dimension_numbers = #tpu.dot_dimension_numbers<[1], [1], [0], [0], [0, 0, 1, 0], [], []>} : vector<128x16xbf16>, vector<256x16xbf16>, vector<128x256xf32> -> vector<128x256xf32>
    %67 = arith.mulf %66, %16 : vector<128x256xf32>
    %c2 = arith.constant 2 : index
    %c0_48 = arith.constant 0 : index
    %c0_49 = arith.constant 0 : index
    %68 = vector.load %arg7[%c2, %c0_48, %c0_49] : memref<4x128x256xf32, #tpu.memory_space<vmem>>, vector<1x128x256xf32>
    %69 = vector.shape_cast %68 : vector<1x128x256xf32> to vector<128x256xf32>
    %70 = arith.addf %67, %69 : vector<128x256xf32>
    %cst_50 = arith.constant dense<0xFF800000> : vector<128xf32>
    %71 = vector.multi_reduction <maximumf>, %70, %cst_50 [1] : vector<128x256xf32> to vector<128xf32>
    %72 = vector.shape_cast %71 : vector<128xf32> to vector<128x1xf32>
    %73 = vector.broadcast %72 : vector<128x1xf32> to vector<128x256xf32>
    %74 = arith.subf %70, %73 : vector<128x256xf32>
    %75 = math.exp %74 : vector<128x256xf32>
    %cst_51 = arith.constant dense<0.000000e+00> : vector<128xf32>
    %76 = vector.multi_reduction <add>, %75, %cst_51 [1] : vector<128x256xf32> to vector<128xf32>
    %77 = vector.shape_cast %76 : vector<128xf32> to vector<128x1xf32>
    %78 = tpu.reciprocal %77 {approx = true} : vector<128x1xf32> -> vector<128x1xf32>
    %79 = vector.broadcast %78 : vector<128x1xf32> to vector<128x256xf32>
    %80 = arith.mulf %75, %79 : vector<128x256xf32>
    %81 = arith.mulf %80, %17 : vector<128x256xf32>
    %82 = arith.truncf %81 : vector<128x256xf32> to vector<128x256xbf16>
    %cst_52 = arith.constant dense<0.000000e+00> : vector<128x32xf32>
    %83 = tpu.matmul %82, %65, %cst_52 {dimension_numbers = #tpu.dot_dimension_numbers<[1], [0], [0], [1], [0, 0, 1, 1], [], []>} : vector<128x256xbf16>, vector<256x32xbf16>, vector<128x32xf32> -> vector<128x32xf32>
    %84 = arith.addf %62, %83 : vector<128x32xf32>
    %c0_53 = arith.constant 0 : index
    %c48 = arith.constant 48 : index
    %85 = vector.load %arg12[%c0_53, %c48] : memref<128x64xbf16, #tpu.memory_space<vmem>>, vector<128x16xbf16>
    %c0_54 = arith.constant 0 : index
    %c48_55 = arith.constant 48 : index
    %86 = vector.load %arg13[%c0_54, %c48_55] : memref<256x192xbf16, #tpu.memory_space<vmem>>, vector<256x16xbf16>
    %c0_56 = arith.constant 0 : index
    %c160 = arith.constant 160 : index
    %87 = vector.load %arg13[%c0_56, %c160] : memref<256x192xbf16, #tpu.memory_space<vmem>>, vector<256x32xbf16>
    %cst_57 = arith.constant dense<0.000000e+00> : vector<128x256xf32>
    %88 = tpu.matmul %85, %86, %cst_57 {dimension_numbers = #tpu.dot_dimension_numbers<[1], [1], [0], [0], [0, 0, 1, 0], [], []>} : vector<128x16xbf16>, vector<256x16xbf16>, vector<128x256xf32> -> vector<128x256xf32>
    %89 = arith.mulf %88, %16 : vector<128x256xf32>
    %c3 = arith.constant 3 : index
    %c0_58 = arith.constant 0 : index
    %c0_59 = arith.constant 0 : index
    %90 = vector.load %arg7[%c3, %c0_58, %c0_59] : memref<4x128x256xf32, #tpu.memory_space<vmem>>, vector<1x128x256xf32>
    %91 = vector.shape_cast %90 : vector<1x128x256xf32> to vector<128x256xf32>
    %92 = arith.addf %89, %91 : vector<128x256xf32>
    %cst_60 = arith.constant dense<0xFF800000> : vector<128xf32>
    %93 = vector.multi_reduction <maximumf>, %92, %cst_60 [1] : vector<128x256xf32> to vector<128xf32>
    %94 = vector.shape_cast %93 : vector<128xf32> to vector<128x1xf32>
    %95 = vector.broadcast %94 : vector<128x1xf32> to vector<128x256xf32>
    %96 = arith.subf %92, %95 : vector<128x256xf32>
    %97 = math.exp %96 : vector<128x256xf32>
    %cst_61 = arith.constant dense<0.000000e+00> : vector<128xf32>
    %98 = vector.multi_reduction <add>, %97, %cst_61 [1] : vector<128x256xf32> to vector<128xf32>
    %99 = vector.shape_cast %98 : vector<128xf32> to vector<128x1xf32>
    %100 = tpu.reciprocal %99 {approx = true} : vector<128x1xf32> -> vector<128x1xf32>
    %101 = vector.broadcast %100 : vector<128x1xf32> to vector<128x256xf32>
    %102 = arith.mulf %97, %101 : vector<128x256xf32>
    %103 = arith.mulf %102, %17 : vector<128x256xf32>
    %104 = arith.truncf %103 : vector<128x256xf32> to vector<128x256xbf16>
    %cst_62 = arith.constant dense<0.000000e+00> : vector<128x32xf32>
    %105 = tpu.matmul %104, %87, %cst_62 {dimension_numbers = #tpu.dot_dimension_numbers<[1], [0], [0], [1], [0, 0, 1, 1], [], []>} : vector<128x256xbf16>, vector<256x32xbf16>, vector<128x32xf32> -> vector<128x32xf32>
    %106 = arith.addf %84, %105 : vector<128x32xf32>
    %c0_63 = arith.constant 0 : index
    %c0_64 = arith.constant 0 : index
    %107 = vector.load %arg10[%c0_63, %c0_64] : memref<1x32xf32, #tpu.memory_space<vmem>>, vector<1x32xf32>
    %108 = vector.broadcast %107 : vector<1x32xf32> to vector<128x32xf32>
    %109 = arith.addf %106, %108 : vector<128x32xf32>
    %c0_65 = arith.constant 0 : index
    %c0_66 = arith.constant 0 : index
    %110 = vector.load %arg11[%c0_65, %c0_66] : memref<128x32xf32, #tpu.memory_space<vmem>>, vector<128x32xf32>
    tpu.vector_store %arg11[%c0_65, %c0_66], %109 {strides = array<i32>} : memref<128x32xf32, #tpu.memory_space<vmem>>, vector<128x32xf32>,
    return
  }
  func.func @transform_0(%arg0: i32) -> (i32, i32) {
    %c0_i32 = arith.constant 0 : i32
    %c0_i32_0 = arith.constant 0 : i32
    return %arg0, %c0_i32 : i32, i32
  }
  func.func @transform_1(%arg0: i32) -> (i32, i32) {
    %c0_i32 = arith.constant 0 : i32
    %c0_i32_0 = arith.constant 0 : i32
    %c0_i32_1 = arith.constant 0 : i32
    return %c0_i32, %c0_i32_0 : i32, i32
  }
  func.func @transform_2(%arg0: i32) -> (i32, i32) {
    %c0_i32 = arith.constant 0 : i32
    %c0_i32_0 = arith.constant 0 : i32
    %c0_i32_1 = arith.constant 0 : i32
    return %c0_i32, %c0_i32_0 : i32, i32
  }
  func.func @transform_3(%arg0: i32) -> (i32, i32) {
    %c0_i32 = arith.constant 0 : i32
    %c0_i32_0 = arith.constant 0 : i32
    %c0_i32_1 = arith.constant 0 : i32
    return %c0_i32, %c0_i32_0 : i32, i32
  }
  func.func @transform_4(%arg0: i32) -> (i32, i32) {
    %c0_i32 = arith.constant 0 : i32
    %c0_i32_0 = arith.constant 0 : i32
    %c0_i32_1 = arith.constant 0 : i32
    return %c0_i32, %c0_i32_0 : i32, i32
  }
  func.func @transform_5(%arg0: i32) -> (i32, i32) {
    %c0_i32 = arith.constant 0 : i32
    %c0_i32_0 = arith.constant 0 : i32
    %c0_i32_1 = arith.constant 0 : i32
    return %c0_i32, %c0_i32_0 : i32, i32
  }
  func.func @transform_6(%arg0: i32) -> (i32, i32, i32) {
    %c0_i32 = arith.constant 0 : i32
    %c0_i32_0 = arith.constant 0 : i32
    %c0_i32_1 = arith.constant 0 : i32
    return %c0_i32, %arg0, %c0_i32_0 : i32, i32, i32
  }
  func.func @transform_7(%arg0: i32) -> (i32, i32) {
    %c0_i32 = arith.constant 0 : i32
    %c0_i32_0 = arith.constant 0 : i32
    return %arg0, %c0_i32 : i32, i32
  }
  func.func @transform_8(%arg0: i32) -> (i32, i32) {
    %c0_i32 = arith.constant 0 : i32
    %c0_i32_0 = arith.constant 0 : i32
    return %arg0, %c0_i32 : i32, i32
  }
  func.func @transform_9(%arg0: i32) -> (i32, i32) {
    %c0_i32 = arith.constant 0 : i32
    %c0_i32_0 = arith.constant 0 : i32
    %c0_i32_1 = arith.constant 0 : i32
    return %c0_i32, %c0_i32_0 : i32, i32
  }
  func.func @transform_10(%arg0: i32) -> (i32, i32) {
    %c0_i32 = arith.constant 0 : i32
    %c0_i32_0 = arith.constant 0 : i32
    return %arg0, %c0_i32 : i32, i32
  }
}

</mosaic_0001>

<bundles_post_ra>
// kernel: tpu_custom_call.1
= control target key start
LH: loop header
LB: loop body
LE: loop exit
PB: predicated region body
PF: predicated region fallthrough
CT: control target
= control target key end

     0   :  { %s9279_s0 = inlined_call_operand.vmem [shape: bf16[256,32], index: 0, kind: input, shape index: {}]   ;;  %s9280_s1 = inlined_call_operand.vmem [shape: bf16[256,32], index: 1, kind: input, shape index: {}]   ;;  %s9281_s2 = inlined_call_operand.vmem [shape: bf16[32,64], index: 2, kind: input, shape index: {}]   ;;  %s9282_s3 = inlined_call_operand.vmem [shape: f32[1,64], index: 3, kind: input, shape index: {}]   ;;  %s9283_s4 = inlined_call_operand.vmem [shape: bf16[32,192], index: 4, kind: input, shape index: {}]   ;;  %s9284_s5 = inlined_call_operand.vmem [shape: f32[1,192], index: 5, kind: input, shape index: {}]   ;;  %s9285_s6 = inlined_call_operand.hbm [shape: f32[4,256,256], index: 6, kind: input, shape index: {}]   ;;  %s9286_s7 = inlined_call_operand.hbm [shape: f32[256,256], index: 7, kind: input, shape index: {}]   ;;  %s9287_s8 = inlined_call_operand.hbm [shape: f32[256,256], index: 8, kind: input, shape index: {}]   ;;  %s9288_s9 = inlined_call_operand.vmem [shape: f32[1,32], index: 9, kind: input, shape index: {}]   ;;  %s9289_s10 = inlined_call_operand.vmem [shape: f32[256,32], index: 10, kind: output, shape index: {}]  }
   0x1   :  { %9399 = sst [smem:[#allocation91_spill]] %s9285_s6 }
   0x2   :  { %9400 = sst [smem:[#allocation92_spill]] %s9289_s10 }
   0x3   :  { %15 = vsyncpa [#allocation5], 0 }
   0x4   :  { %17 = vsyncpa [#allocation5 + $0x1], 0 }
   0x5   :  { %18 = vsyncpa [#allocation7], 0 }
   0x6   :  { %20 = vsyncpa [#allocation7 + $0x1], 0  ;;  %s5863_s13 = smov 0   ;;  %s5865_s14 = smov 0  }
   0x7   :  { %s5867_s15 = smov 0   ;;  %s5869_s16 = smov 0  }
   0x8 LB: > { %9401 = sst [smem:[#allocation14_spill]] %s5790_s15  ;;  %s5882_s17 = sadd.s32 4294967295, %s5794_s16   ;;  %s5794_s16 = sphi %s5869_s16, %s9748_s16   ;;  %s5790_s15 = sphi %s5867_s15, %s9750_s15   ;;  %s5786_s14 = sphi %s5865_s14, %s9752_s14   ;;  %s5782_s13 = sphi %s5863_s13, %s9751_s13  }
   0x9   : > { %s5885_s18 = sadd.s32 1, %s5794_s16   ;;  %s164_s20 = sadd.s32 1, %s5790_s15 }
   0xa   : > { %9402 = sst [smem:[#allocation15_spill]] %s5885_s18  ;;  %s161_s19 = ssub.s32 %s5794_s16, %s5885_s18 }
   0xb   : > { %p162_p0 = scmp.eq.s32.totalorder %s161_s19, 0  ;;  %p171_p1 = scmp.ne.s32.totalorder %s5790_s15, %s5786_s14 }
   0xc   : > { %p172_p2 = scmp.eq.s32.totalorder %s5794_s16, 0  ;;  %p177_p3 = scmp.ne.s32.totalorder %s5786_s14, %s5782_s13 }
   0xd   : > { %s5895_s21 = scalar_select %p162_p0, %s5790_s15, %s164_s20  }
   0xe   : > { %p5897_p4 = por %p172_p2, %p171_p1  ;;  %p178_p5 = scmp.eq.s32.totalorder %s5882_s17, 0 }
   0xf   : > { %9403 = sst [smem:[#allocation16_spill]] %s5895_s21  ;;  %p4589_p7 = scmp.ge.s32.totalorder %s5794_s16, 2 }
  0x10   : > { %p5902_p6 = por %p178_p5, %p177_p3 }
  0x11   : > { %314 = sbr.rel (%p4589_p7) target bundleno = 66 (0x42), region = 40 }
  0x16   : > { %s5908_s24 = sand.u32 1, %s5790_s15   ;;  %s5911_s25 = sshll.u32 %s5794_s16, 8 }
  0x17   : > { %s4590_s26 = sshll.u32 %s5908_s24, 10  ;;  %s9406_s6 = sld [smem:[#allocation91_spill]] }
  0x18   : > { %s5182_s30 = scalar_select %p5897_p4, [#allocation0], [#allocation11] }
  0x19   : > { %s331_s12 = scalar_lea.vmem [#allocation4], %s4590_s26  ;;  %s5796_s20 = smov 8192  }
  0x1a   : > { %s352_s13 = sshll.u32 %s331_s12, 4  ;;  %s342_s19 = sld [smem:[%s5182_s30]]   ;;  %s353_s13 = int_to_ptr.vmem [resolvable:$true] %s352_s13 }
  0x1b   : > { %5183 = sst [smem:[#allocation10]] (%p5897_p4), %s5796_s20  ;;  %s5797_s21 = smov 4096  }
  0x1c   : > { %5184 = sst [smem:[#allocation10 + $0x1]] (%p5897_p4), %s5797_s21  ;;  %s5798_s27 = smov 16  }
  0x1d   : > { %s337_s29 = scalar_lea.hbm %s9406_s6, %s5911_s25  ;;  %5185 = sst [smem:[#allocation10 + $0x2]] (%p5897_p4), %s5798_s27 }
  0x1e   : > { %s350_s11 = sshll.u32 %s337_s29, 4  ;;  %s5799_s28 = smov 256   ;;  %s351_s11 = int_to_ptr.hbm [resolvable:$true] %s350_s11 }
  0x1f   : > { %5186 = sst [smem:[#allocation10 + $0x3]] (%p5897_p4), %s5799_s28  ;;  %s328_s30 = scalar_lea.sflag [#allocation5], %s5908_s24 }
  0x20   : > { %s4594_s26 = sshll.u32 %s342_s19, 26  ;;  %5187 = sst [smem:[#allocation10 + $0x4]] (%p5897_p4), %s5799_s28 }
  0x21   : > { %s4595_s29 = sadd.s32 134217728, %s4594_s26  ;;  %5188 = sst [smem:[#allocation10 + $0x5]] (%p5897_p4), %s5798_s27 }
  0x22   : > { %s5800_s12 = smov [#allocation9]   ;;  %s375_s21 = sand.u32 1, %s5794_s16  }
  0x23   : > { %5189 = dma.general (%p5897_p4), %s351_s11, 16384, %s353_s13, %s328_s30, %s5800_s12, [#allocation10], %s4595_s29, 0  }
  0x24   : > { %s4596_s20 = sshll.u32 %s5908_s24, 8  ;;  %s385_s18 = scalar_lea.hbm %s9286_s7, %s5911_s25 }
  0x25   : > { %s379_s19 = scalar_lea.vmem [#allocation6], %s4596_s20  ;;  %s386_s28 = sshll.u32 %s385_s18, 4  ;;  %s387_s28 = int_to_ptr.hbm [resolvable:$true] %s386_s28 }
  0x26   : > { %s388_s10 = sshll.u32 %s379_s19, 4  ;;  %s5941_s27 = scalar_lea.sflag [#allocation7], %s375_s21  ;;  %s389_s10 = int_to_ptr.vmem [resolvable:$true] %s388_s10 }
  0x27   : > { %s5700_s26 = sshra.s32 %s387_s28, 4  ;;  %s5706_s29 = scalar_lea.hbm %s9286_s7, 512  ;;  %s5701_s26 = int_to_ptr.hbm [resolvable:$true] %s5700_s26 }
  0x28   : > { %s5702_s11 = scalar_lea.hbm %s5701_s26, 256  ;;  %p5707_p11 = scmp.lt.s32.totalorder %s5701_s26, %s9286_s7 }
  0x29   : > { %p5703_p8 = scmp.ne.s32.totalorder %s5701_s26, %s5702_s11  ;;  %p5708_p12 = scmp.lt.s32.totalorder %s5706_s29, %s5702_s11 }
  0x2b   : > { %p5704_p9 = pnand %p5703_p8, %p5897_p4  ;;  %p5709_p13 = por %p5708_p12, %p5707_p11 }
  0x2d   : > { %p5705_p10 = pneg %p5704_p9 }
  0x2f   : > { %p5710_p0 = pnand %p5709_p13, %p5705_p10 }
  0x31   : > { %5713 = shalt.err (!%p5710_p0)
}
  0x32   : > { %s5801_s18 = smov 256   ;;  %s5802_s30 = smov 16  }
  0x33   : > { %5190 = dma.hbm_to_vmem [thread:$0]  (%p5897_p4), %s387_s28, 4096, %s389_s10, %s5941_s27, %s5801_s18, %s5801_s18, %s5802_s30  }
  0x34   : > { %s402_s12 = scalar_lea.vmem [#allocation8], %s4596_s20  ;;  %s408_s24 = scalar_lea.hbm %s9287_s8, %s5911_s25 }
  0x35   : > { %s411_s21 = sshll.u32 %s402_s12, 4  ;;  %s409_s6 = sshll.u32 %s408_s24, 4  ;;  %s412_s21 = int_to_ptr.vmem [resolvable:$true] %s411_s21  ;;  %s410_s6 = int_to_ptr.hbm [resolvable:$true] %s409_s6 }
  0x36   : > { %s5728_s26 = sshra.s32 %s410_s6, 4  ;;  %s5734_s10 = scalar_lea.hbm %s9287_s8, 512  ;;  %s5729_s26 = int_to_ptr.hbm [resolvable:$true] %s5728_s26 }
  0x37   : > { %s5730_s11 = scalar_lea.hbm %s5729_s26, 256  ;;  %p5735_p5 = scmp.lt.s32.totalorder %s5729_s26, %s9287_s8 }
  0x38   : > { %p5731_p1 = scmp.ne.s32.totalorder %s5729_s26, %s5730_s11  ;;  %p5736_p7 = scmp.lt.s32.totalorder %s5734_s10, %s5730_s11 }
  0x3a   : > { %p5732_p2 = pnand %p5731_p1, %p5897_p4  ;;  %p5737_p8 = por %p5736_p7, %p5735_p5 }
  0x3c   : > { %p5733_p3 = pneg %p5732_p2 }
  0x3e   : > { %p5738_p9 = pnand %p5737_p8, %p5733_p3 }
  0x40   : > { %5741 = shalt.err (!%p5738_p9)
}
  0x41   : > { %5191 = dma.hbm_to_vmem [thread:$0]  (%p5897_p4), %s410_s6, 4096, %s412_s21, %s5941_s27, %s5801_s18, %s5801_s18, %s5802_s30  }
  0x42 PF: > { %p4604_p10 = scmp.ge.s32.totalorder %s5794_s16, 1  ;;  %p419_p11 = scmp.lt.s32.totalorder %s5794_s16, 3 }
  0x44   : > { %p420_p12 = pnand %p4604_p10, %p419_p11 }
  0x46   : > { %423 = sbr.rel (%p420_p12) target bundleno = 2229 (0x8b5), region = 60 }
  0x4b   : > { %s5972_s25 = sand.u32 1, %s5786_s14  }
  0x4c   : > { %s4605_s12 = sshll.u32 %s5972_s25, 10  ;;  %s426_s19 = scalar_lea.sflag [#allocation5], %s5972_s25 }
  0x4d   : > { %s5976_s13 = scalar_lea.vmem [#allocation4], %s4605_s12 }
  0x4e   : > { %5773 = dma.done.wait (%p5902_p6), %s426_s19, 16384  }
  0x4f   : > { %5775 = vsyncadd (%p5902_p6), %s426_s19, 4294950912  ;;  %s435_s16 = sand.u32 1, %s5882_s17   ;;  %s4606_s22 = sshll.u32 %s5972_s25, 8 }
  0x50   : > { %s436_s27 = scalar_lea.sflag [#allocation7], %s435_s16  ;;  %s5986_s18 = scalar_lea.vmem [#allocation6], %s4606_s22 }
  0x51   : > { %5777 = dma.done.wait (%p5902_p6), %s436_s27, 8192  }
  0x52   : > { %5779 = vsyncadd (%p5902_p6), %s436_s27, 4294959104  ;;  %s4608_s30 = sshll.u32 %s5882_s17, 4  ;;  %v5109_v0 = vld [vmem:[%s9281_s2 + $0x8] sm:$0xff]  ;;  %v5108_v1 = vld [vmem:[%s9281_s2] sm:$0xff]  ;;  %vm594_vm0 = vcmask 261120   ;;  %vm684_vm1 = vcmask 519168  }
  0x53   : > { %p503_p4 = scmp.lt.s32.totalorder %s4608_s30, 31  ;;  %5170 = vmatpush.bf16.msra.mxu1 %v5109_v0  ;;  %5171 = vmatpush.bf16.msra.mxu2 %v5109_v0  ;;  %v5128_v2 = vld [vmem:[%s9283_s4 + $0x14] sm:$0xf]  ;;  %v4736_v3 = vld [vmem:[%s9283_s4 + $0x18] sm:$0xf0]  ;;  %v5110_v18 = vld [vmem:[%s9280_s1] sm:$0xff] }
  0x54   : > { %625 = vmatpush.bf16.msra.mxu0 %v5109_v0  ;;  %v4739_v4 = vor.u32 %v5128_v2, %v4736_v3  ;;  %v5126_v5 = vld [vmem:[%s9283_s4 + $0x4] sm:$0xf]  ;;  %v4728_v6 = vld [vmem:[%s9283_s4 + $0x8] sm:$0xf0]  ;;  %v4734_v11 = vld [vmem:[%s9283_s4 + $0x10] sm:$0xf] }
  0x55   : > { %s9754_s30 = smov (!%p503_p4, %s4608_s30), 31  ;;  %v4731_v10 = vor.u32 %v5126_v5, %v4728_v6  ;;  %v5129_v12 = vld [vmem:[%s9283_s4 + $0x14] sm:$0xf0]  ;;  %v4726_v14 = vld [vmem:[%s9283_s4] sm:$0xf]  ;;  %v5111_v21 = vld [vmem:[%s9280_s1 + $0x8] sm:$0xff] }
  0x56   : > { %s4609_s21 = sshll.u32 %s9754_s30, 2  ;;  %v4735_v13 = vor.u32 %v5129_v12, %v4734_v11  ;;  %v5127_v15 = vld [vmem:[%s9283_s4 + $0x4] sm:$0xf0]  ;;  %v5112_v22 = vld [vmem:[%s9280_s1 + $0x10] sm:$0xff]  ;;  %v5113_v23 = vld [vmem:[%s9280_s1 + $0x18] sm:$0xff]  ;;  %vm1101_vm2 = vcmask 1043456  }
  0x57   : > { %s6005_s23 = scalar_lea.vmem %s9279_s0, %s4609_s21  ;;  %5172 = vmatpush.bf16.msra.mxu1 %v5108_v1  ;;  %5173 = vmatpush.bf16.msra.mxu2 %v5108_v1  ;;  %v4727_v16 = vor.u32 %v5127_v15, %v4726_v14  ;;  %v5114_v24 = vld [vmem:[%s9280_s1 + $0x20] sm:$0xff]  ;;  %v5115_v25 = vld [vmem:[%s9280_s1 + $0x28] sm:$0xff]  ;;  %v5116_v26 = vld [vmem:[%s9280_s1 + $0x30] sm:$0xff]  ;;  %s5803_s21 = smov 112   ;;  %vm1102_vm3 = vcmask 523268   ;;  %vm1368_vm5 = vcmask 130048  }
  0x58   : > { %v5104_v7 = vld [vmem:[%s6005_s23 + $0x20] sm:$0xff]  ;;  %v5107_v8 = vld [vmem:[%s6005_s23 + $0x38] sm:$0xff]  ;;  %626 = vmatpush.bf16.msra.mxu0 %v5108_v1  ;;  %v5105_v17 = vld [vmem:[%s6005_s23 + $0x28] sm:$0xff]  ;;  %s5804_s27 = smov 32   ;;  %s5806_s24 = smov 80  }
  0x59   : > { %v5100_v9 = vld [vmem:[%s6005_s23] sm:$0xff]  ;;  %v5101_v19 = vld [vmem:[%s6005_s23 + $0x8] sm:$0xff]  ;;  %v5106_v20 = vld [vmem:[%s6005_s23 + $0x30] sm:$0xff]  ;;  %s5807_s6 = smov 64   ;;  %s7344_s26 = scalar_lea.vmem [#allocation8], %s4606_s22 }
  0x5a   : > { %4656 = vmatmul.msk.bf16.vlgmr.msra.gmra.mxu1 %vm594_vm0, %v5104_v7  ;;  %4659 = vmatmul.msk.bf16.vlgmr.msra.gmra.mxu2 %vm594_vm0, %v5107_v8  ;;  %v6079_v27 = vld [vmem:[%s9282_s3] ss:$0 sm:$0xff]  ;;  %v5117_v28 = vld [vmem:[%s9280_s1 + $0x38] sm:$0xff]  ;;  %v5119_v62 = vld [vmem:[%s9280_s1 + $0x48] sm:$0xff]  ;;  %s4611_s25 = sshll.u32 %s9754_s30, 3  ;;  %s9723_s29 = sld [smem:[#allocation92_spill]] }
  0x5b   : > { %986 = vmatpush.bf16.msrb.mxu2 %v4739_v4  ;;  %4652 = vmatmul.msk.bf16.vlgmr.msra.gmra.mxu0 %vm594_vm0, %v5100_v9  ;;  %v5118_v46 = vld [vmem:[%s9280_s1 + $0x40] sm:$0xff]  ;;  %v5120_v12 = vld [vmem:[%s9280_s1 + $0x50] sm:$0xff]  ;;  %vm6136_vm4 = vmor %vm1102_vm3, %vm1101_vm2 }
  0x5c   : > { %897 = vmatpush.bf16.msrb.mxu1 %v4735_v13  ;;  %v737_v5 = vld [vmem:[%s9284_s5] sm:$0x3] }
  0x5d   : > { %v6126_v8 = vperm.slane %v737_v5, 1  ;;  %v6129_v9 = vperm.slane %v737_v5, 0 }
  0x5f   : > { %987 = vmatpush.bf16.msrb.mxu2 %v4731_v10 }
  0x60   : > { %898 = vmatpush.bf16.msrb.mxu1 %v4727_v16  ;;  %s9167_s15 = scalar_lea.vmem %s9723_s29, %s4611_s25 }
  0x6a   : > { %4657 = vmatmul.msk.bf16.gmra.mxu1 %vm594_vm0, %v5105_v17  ;;  %4756 = vmatmul.msk.bf16.vlgmr.msrb.gmra.mxu2 %vm594_vm0, %v5110_v18 }
  0x6b   : > { %4653 = vmatmul.msk.bf16.gmra.mxu0 %vm594_vm0, %v5101_v19 }
  0x7a   : > { %4658 = vmatmul.msk.bf16.gmra.mxu1 %vm594_vm0, %v5106_v20  ;;  %4757 = vmatmul.msk.bf16.gmra.mxu2 %vm594_vm0, %v5111_v21 }
  0x8a   : > { %4740 = vmatmul.msk.bf16.vlgmr.msrb.gmra.mxu1 %vm594_vm0, %v5110_v18  ;;  %4758 = vmatmul.msk.bf16.gmra.mxu2 %vm594_vm0, %v5112_v22 }
  0x9a   : > { %4741 = vmatmul.msk.bf16.gmra.mxu1 %vm594_vm0, %v5111_v21  ;;  %4759 = vmatmul.msk.bf16.gmra.mxu2 %vm594_vm0, %v5113_v23 }
  0xaa   : > { %4742 = vmatmul.msk.bf16.gmra.mxu1 %vm594_vm0, %v5112_v22  ;;  %4760 = vmatmul.msk.bf16.gmra.mxu2 %vm594_vm0, %v5114_v24 }
  0xba   : > { %4743 = vmatmul.msk.bf16.gmra.mxu1 %vm594_vm0, %v5113_v23  ;;  %4761 = vmatmul.msk.bf16.gmra.mxu2 %vm594_vm0, %v5115_v25 }
  0xca   : > { %4744 = vmatmul.msk.bf16.gmra.mxu1 %vm594_vm0, %v5114_v24  ;;  %4762 = vmatmul.msk.bf16.gmra.mxu2 %vm594_vm0, %v5116_v26 }
  0xd7   : > { %v648_v29 = vpop.f32.mrf.mxu1 }
  0xd8   : > { %v649_v30 = vadd.f32 %v6079_v27, %v648_v29  ;;  %v628_v31 = vpop.f32.mrf.mxu0 }
  0xd9   : > { %v629_v32 = vadd.f32 %v6079_v27, %v628_v31 }
  0xda   : > { %v676_v33 = vpack.c.bf16 %v649_v30, %v649_v30  ;;  %4745 = vmatmul.msk.bf16.gmra.mxu1 %vm594_vm0, %v5115_v25  ;;  %4763 = vmatmul.msk.bf16.gmra.mxu2 %vm594_vm0, %v5117_v28  ;;  %v5121_v25 = vld [vmem:[%s9280_s1 + $0x58] sm:$0xff] }
  0xdb   : > { %v668_v34 = vpack.c.bf16 %v629_v32, %v629_v32 }
  0xdc   : > { %693 = vst.msk [vmem:[#allocation2 + $0x20] sm:$0xf] %vm684_vm1, %v676_v33 }
  0xdd   : > { %685 = vst.msk [vmem:[#allocation2] sm:$0xf] %vm684_vm1, %v668_v34  ;;  %v663_v35 = vpop.f32.mrf.mxu2 }
  0xde   : > { %v664_v36 = vadd.f32 %v6079_v27, %v663_v35 }
  0xdf   : > { %v650_v37 = vpop.f32.mrf.mxu1 }
  0xe0   : > { %v651_v38 = vadd.f32 %v6079_v27, %v650_v37  ;;  %v682_v39 = vpack.c.bf16 %v664_v36, %v664_v36  ;;  %v630_v40 = vpop.f32.mrf.mxu0 }
  0xe1   : > { %v631_v41 = vadd.f32 %v6079_v27, %v630_v40  ;;  %v5122_v40 = vld [vmem:[%s9280_s1 + $0x60] sm:$0xff] }
  0xe2   : > { %v677_v42 = vpack.c.bf16 %v651_v38, %v651_v38  ;;  %699 = vst.msk [vmem:[#allocation2 + $0x38] sm:$0xf] %vm684_vm1, %v682_v39 }
  0xe3   : > { %v669_v43 = vpack.c.bf16 %v631_v41, %v631_v41 }
  0xe4   : > { %694 = vst.msk [vmem:[#allocation2 + $0x24] sm:$0xf] %vm684_vm1, %v677_v42 }
  0xe5   : > { %686 = vst.msk [vmem:[#allocation2 + $0x4] sm:$0xf] %vm684_vm1, %v669_v43  ;;  %v665_v44 = vpop.f32.mrf.mxu2 }
  0xe6   : > { %v666_v45 = vadd.f32 %v6079_v27, %v665_v44 }
  0xe7   : > { %v653_v47 = vpop.f32.mrf.mxu1 }
  0xe8   : > { %v654_v48 = vadd.f32 %v6079_v27, %v653_v47  ;;  %v683_v49 = vpack.c.bf16 %v666_v45, %v666_v45  ;;  %v633_v50 = vpop.f32.mrf.mxu0 }
  0xe9   : > { %v634_v51 = vadd.f32 %v6079_v27, %v633_v50 }
  0xea   : > { %v678_v52 = vpack.c.bf16 %v654_v48, %v654_v48  ;;  %4746 = vmatmul.msk.bf16.gmra.mxu1 %vm594_vm0, %v5116_v26  ;;  %700 = vst.msk [vmem:[#allocation2 + $0x3c] sm:$0xf] %vm684_vm1, %v683_v49  ;;  %4764 = vmatmul.msk.bf16.gmra.mxu2 %vm594_vm0, %v5118_v46 }
  0xeb   : > { %v670_v53 = vpack.c.bf16 %v634_v51, %v634_v51 }
  0xec   : > { %695 = vst.msk [vmem:[#allocation2 + $0x28] sm:$0xf] %vm684_vm1, %v678_v52  ;;  %v6148_v22 = vld [vmem:[#allocation2] sm:$0xff] }
  0xed   : > { %687 = vst.msk [vmem:[#allocation2 + $0x8] sm:$0xf] %vm684_vm1, %v670_v53  ;;  %v989_v54 = vpop.f32.mrf.mxu2  ;;  %1923 = vrot.lane.b32.xlu1 %v6148_v22, %s5803_s21 }
  0xee   : > { %v990_v11 = vadd.f32 %v989_v54, %v6126_v8  ;;  %v5123_v54 = vld [vmem:[%s9280_s1 + $0x68] sm:$0xff] }
  0xef   : > { %v655_v55 = vpop.f32.mrf.mxu1 }
  0xf0   : > { %v656_v56 = vadd.f32 %v6079_v27, %v655_v55  ;;  %v635_v57 = vpop.f32.mrf.mxu0 }
  0xf1   : > { %v636_v58 = vadd.f32 %v6079_v27, %v635_v57  ;;  %v5102_v57 = vld [vmem:[%s6005_s23 + $0x10] sm:$0xff] }
  0xf2   : > { %v679_v59 = vpack.c.bf16 %v656_v56, %v656_v56  ;;  %4654 = vmatmul.msk.bf16.gmra.mxu0 %vm594_vm0, %v5102_v57 }
  0xf3   : > { %v671_v60 = vpack.c.bf16 %v636_v58, %v636_v58 }
  0xf4   : > { %696 = vst.msk [vmem:[#allocation2 + $0x2c] sm:$0xf] %vm684_vm1, %v679_v59 }
  0xf5   : > { %688 = vst.msk [vmem:[#allocation2 + $0xc] sm:$0xf] %vm684_vm1, %v671_v60  ;;  %v991_v61 = vpop.f32.mrf.mxu2 }
  0xf6   : > { %v992_v19 = vadd.f32 %v991_v61, %v6126_v8 }
  0xf7   : > { %v658_v63 = vpop.f32.mrf.mxu1 }
  0xf8   : > { %v659_v0 = vadd.f32 %v6079_v27, %v658_v63 }
  0xfa   : > { %v680_v1 = vpack.c.bf16 %v659_v0, %v659_v0  ;;  %4747 = vmatmul.msk.bf16.gmra.mxu1 %vm594_vm0, %v5117_v28  ;;  %4765 = vmatmul.msk.bf16.gmra.mxu2 %vm594_vm0, %v5119_v62 }
  0xfc   : > { %697 = vst.msk [vmem:[#allocation2 + $0x30] sm:$0xf] %vm684_vm1, %v680_v1  ;;  %v6118_v2 = vld [vmem:[#allocation2 + $0x8] sm:$0xff] }
  0xfd   : > { %v994_v3 = vpop.f32.mrf.mxu2  ;;  %1925 = vrot.lane.b32.xlu2 %v6118_v2, %s5803_s21 }
  0xfe   : > { %v995_v24 = vadd.f32 %v994_v3, %v6126_v8 }
  0xff   : > { %v660_v4 = vpop.f32.mrf.mxu1 }
 0x100   : > { %v661_v6 = vadd.f32 %v6079_v27, %v660_v4 }
 0x102   : > { %v681_v7 = vpack.c.bf16 %v661_v6, %v661_v6  ;;  %v5124_v6 = vld [vmem:[%s9280_s1 + $0x70] sm:$0xff] }
 0x104   : > { %698 = vst.msk [vmem:[#allocation2 + $0x34] sm:$0xf] %vm684_vm1, %v681_v7 }
 0x105   : > { %v996_v10 = vpop.f32.mrf.mxu2 }
 0x106   : > { %v997_v35 = vadd.f32 %v996_v10, %v6126_v8 }
 0x107   : > { %v900_v13 = vpop.f32.mrf.mxu1 }
 0x108   : > { %v901_v14 = vadd.f32 %v900_v13, %v6129_v9 }
 0x10a   : > { %v1069_v16 = vpack.c.bf16 %v990_v11, %v901_v14  ;;  %4748 = vmatmul.msk.bf16.gmra.mxu1 %vm594_vm0, %v5118_v46  ;;  %4766 = vmatmul.msk.bf16.gmra.mxu2 %vm594_vm0, %v5120_v12  ;;  %v5103_v11 = vld [vmem:[%s6005_s23 + $0x18] sm:$0xff] }
 0x10b   : > { %4655 = vmatmul.msk.bf16.gmra.mxu0 %vm594_vm0, %v5103_v11 }
 0x10c   : > { %1104 = vst.msk [vmem:[#allocation3] sm:$0xff] %vm6136_vm4, %v1069_v16 }
 0x10d   : > { %v999_v17 = vpop.f32.mrf.mxu2 }
 0x10e   : > { %v1000_v39 = vadd.f32 %v999_v17, %v6126_v8 }
 0x10f   : > { %v902_v18 = vpop.f32.mrf.mxu1 }
 0x110   : > { %v903_v20 = vadd.f32 %v902_v18, %v6129_v9 }
 0x112   : > { %v1070_v21 = vpack.c.bf16 %v992_v19, %v903_v20 }
 0x113   : > { %v4806_v30 = vld [vmem:[#allocation3] sm:$0xf] }
 0x114   : > { %1105 = vst.msk [vmem:[#allocation3 + $0x8] sm:$0xff] %vm6136_vm4, %v1070_v21 }
 0x115   : > { %v1001_v23 = vpop.f32.mrf.mxu2 }
 0x116   : > { %v1002_v49 = vadd.f32 %v1001_v23, %v6126_v8 }
 0x117   : > { %v905_v26 = vpop.f32.mrf.mxu1 }
 0x118   : > { %v906_v28 = vadd.f32 %v905_v26, %v6129_v9 }
 0x11a   : > { %v1071_v29 = vpack.c.bf16 %v995_v24, %v906_v28  ;;  %4749 = vmatmul.msk.bf16.gmra.mxu1 %vm594_vm0, %v5119_v62  ;;  %4767 = vmatmul.msk.bf16.gmra.mxu2 %vm594_vm0, %v5121_v25 }
 0x11b   : > { %v5138_v31 = vld [vmem:[#allocation3 + $0x4] sm:$0xf0] }
 0x11c   : > { %1106 = vst.msk [vmem:[#allocation3 + $0x10] sm:$0xff] %vm6136_vm4, %v1071_v29  ;;  %v6161_v32 = vor.u32 %v5138_v31, %v4806_v30 }
 0x11d   : > { %v1004_v33 = vpop.f32.mrf.mxu2 }
 0x11e   : > { %1939 = vrot.lane.b32.xlu2 %v6161_v32, %s5803_s21  ;;  %v1005_v53 = vadd.f32 %v1004_v33, %v6126_v8 }
 0x11f   : > { %v907_v34 = vpop.f32.mrf.mxu1 }
 0x120   : > { %v908_v36 = vadd.f32 %v907_v34, %v6129_v9 }
 0x122   : > { %v1072_v37 = vpack.c.bf16 %v997_v35, %v908_v36 }
 0x123   : > { %v4810_v44 = vld [vmem:[#allocation3 + $0x10] sm:$0xf] }
 0x124   : > { %1107 = vst.msk [vmem:[#allocation3 + $0x18] sm:$0xff] %vm6136_vm4, %v1072_v37 }
 0x125   : > { %v1006_v38 = vpop.f32.mrf.mxu2 }
 0x126   : > { %v1007_v0 = vadd.f32 %v1006_v38, %v6126_v8 }
 0x127   : > { %v910_v41 = vpop.f32.mrf.mxu1 }
 0x128   : > { %v911_v42 = vadd.f32 %v910_v41, %v6129_v9 }
 0x12a   : > { %v1073_v43 = vpack.c.bf16 %v1000_v39, %v911_v42  ;;  %4750 = vmatmul.msk.bf16.gmra.mxu1 %vm594_vm0, %v5120_v12  ;;  %4768 = vmatmul.msk.bf16.gmra.mxu2 %vm594_vm0, %v5122_v40 }
 0x12b   : > { %v5139_v45 = vld [vmem:[#allocation3 + $0x14] sm:$0xf0] }
 0x12c   : > { %1108 = vst.msk [vmem:[#allocation3 + $0x20] sm:$0xff] %vm6136_vm4, %v1073_v43  ;;  %v6178_v46 = vor.u32 %v5139_v45, %v4810_v44 }
 0x12d   : > { %v1009_v47 = vpop.f32.mrf.mxu2 }
 0x12e   : > { %1941 = vrot.lane.b32.xlu0 %v6178_v46, %s5803_s21  ;;  %v1010_v5 = vadd.f32 %v1009_v47, %v6126_v8 }
 0x12f   : > { %v912_v48 = vpop.f32.mrf.mxu1 }
 0x130   : > { %v913_v50 = vadd.f32 %v912_v48, %v6129_v9 }
 0x132   : > { %v1074_v51 = vpack.c.bf16 %v1002_v49, %v913_v50 }
 0x133   : > { %v4814_v59 = vld [vmem:[#allocation3 + $0x20] sm:$0xf] }
 0x134   : > { %1109 = vst.msk [vmem:[#allocation3 + $0x28] sm:$0xff] %vm6136_vm4, %v1074_v51 }
 0x135   : > { %v1011_v52 = vpop.f32.mrf.mxu2 }
 0x136   : > { %v1012_v19 = vadd.f32 %v1011_v52, %v6126_v8 }
 0x137   : > { %v915_v55 = vpop.f32.mrf.mxu1 }
 0x138   : > { %v916_v56 = vadd.f32 %v915_v55, %v6129_v9 }
 0x13a   : > { %v1075_v58 = vpack.c.bf16 %v1005_v53, %v916_v56  ;;  %4751 = vmatmul.msk.bf16.gmra.mxu1 %vm594_vm0, %v5121_v25  ;;  %4769 = vmatmul.msk.bf16.gmra.mxu2 %vm594_vm0, %v5123_v54  ;;  %v5125_v25 = vld [vmem:[%s9280_s1 + $0x78] sm:$0xff] }
 0x13b   : > { %v5140_v60 = vld [vmem:[#allocation3 + $0x24] sm:$0xf0] }
 0x13c   : > { %1110 = vst.msk [vmem:[#allocation3 + $0x30] sm:$0xff] %vm6136_vm4, %v1075_v58  ;;  %v6197_v61 = vor.u32 %v5140_v60, %v4814_v59 }
 0x13d   : > { %v1014_v62 = vpop.f32.mrf.mxu2 }
 0x13e   : > { %1943 = vrot.lane.b32.xlu1 %v6197_v61, %s5803_s21  ;;  %v1015_v24 = vadd.f32 %v1014_v62, %v6126_v8 }
 0x13f   : > { %v917_v63 = vpop.f32.mrf.mxu1 }
 0x140   : > { %v918_v1 = vadd.f32 %v917_v63, %v6129_v9 }
 0x142   : > { %v1076_v3 = vpack.c.bf16 %v1007_v0, %v918_v1 }
 0x143   : > { %v4818_v13 = vld [vmem:[#allocation3 + $0x30] sm:$0xf] }
 0x144   : > { %1111 = vst.msk [vmem:[#allocation3 + $0x38] sm:$0xff] %vm6136_vm4, %v1076_v3 }
 0x145   : > { %v1016_v4 = vpop.f32.mrf.mxu2 }
 0x146   : > { %v1017_v36 = vadd.f32 %v1016_v4, %v6126_v8 }
 0x147   : > { %v920_v7 = vpop.f32.mrf.mxu1 }
 0x148   : > { %v921_v10 = vadd.f32 %v920_v7, %v6129_v9 }
 0x14a   : > { %v1077_v12 = vpack.c.bf16 %v1010_v5, %v921_v10  ;;  %4752 = vmatmul.msk.bf16.gmra.mxu1 %vm594_vm0, %v5122_v40  ;;  %4770 = vmatmul.msk.bf16.gmra.mxu2 %vm594_vm0, %v5124_v6 }
 0x14b   : > { %v5141_v14 = vld [vmem:[#allocation3 + $0x34] sm:$0xf0] }
 0x14c   : > { %1112 = vst.msk [vmem:[#allocation3 + $0x40] sm:$0xff] %vm6136_vm4, %v1077_v12  ;;  %v6216_v16 = vor.u32 %v5141_v14, %v4818_v13 }
 0x14d   : > { %v1019_v17 = vpop.f32.mrf.mxu2 }
 0x14e   : > { %1945 = vrot.lane.b32.xlu2 %v6216_v16, %s5803_s21  ;;  %v1020_v40 = vadd.f32 %v1019_v17, %v6126_v8 }
 0x14f   : > { %v922_v18 = vpop.f32.mrf.mxu1 }
 0x150   : > { %v923_v20 = vadd.f32 %v922_v18, %v6129_v9 }
 0x152   : > { %v1078_v21 = vpack.c.bf16 %v1012_v19, %v923_v20 }
 0x153   : > { %v4822_v30 = vld [vmem:[#allocation3 + $0x40] sm:$0xf] }
 0x154   : > { %1113 = vst.msk [vmem:[#allocation3 + $0x48] sm:$0xff] %vm6136_vm4, %v1078_v21 }
 0x155   : > { %v1021_v23 = vpop.f32.mrf.mxu2 }
 0x156   : > { %v1022_v50 = vadd.f32 %v1021_v23, %v6126_v8 }
 0x157   : > { %v925_v26 = vpop.f32.mrf.mxu1 }
 0x158   : > { %v926_v28 = vadd.f32 %v925_v26, %v6129_v9 }
 0x15a   : > { %v1079_v29 = vpack.c.bf16 %v1015_v24, %v926_v28  ;;  %4753 = vmatmul.msk.bf16.gmra.mxu1 %vm594_vm0, %v5123_v54  ;;  %4771 = vmatmul.msk.bf16.gmra.mxu2 %vm594_vm0, %v5125_v25 }
 0x15b   : > { %v5142_v31 = vld [vmem:[#allocation3 + $0x44] sm:$0xf0] }
 0x15c   : > { %1114 = vst.msk [vmem:[#allocation3 + $0x50] sm:$0xff] %vm6136_vm4, %v1079_v29  ;;  %v6233_v33 = vor.u32 %v5142_v31, %v4822_v30 }
 0x15d   : > { %v1024_v34 = vpop.f32.mrf.mxu2 }
 0x15e   : > { %1947 = vrot.lane.b32.xlu0 %v6233_v33, %s5803_s21  ;;  %v1025_v54 = vadd.f32 %v1024_v34, %v6126_v8 }
 0x15f   : > { %v927_v35 = vpop.f32.mrf.mxu1 }
 0x160   : > { %v928_v37 = vadd.f32 %v927_v35, %v6129_v9 }
 0x162   : > { %v1080_v38 = vpack.c.bf16 %v1017_v36, %v928_v37 }
 0x163   : > { %v4826_v44 = vld [vmem:[#allocation3 + $0x50] sm:$0xf] }
 0x164   : > { %1115 = vst.msk [vmem:[#allocation3 + $0x58] sm:$0xff] %vm6136_vm4, %v1080_v38 }
 0x165   : > { %v1026_v39 = vpop.f32.mrf.mxu2 }
 0x166   : > { %v1027_v0 = vadd.f32 %v1026_v39, %v6126_v8 }
 0x167   : > { %v930_v41 = vpop.f32.mrf.mxu1 }
 0x168   : > { %v931_v42 = vadd.f32 %v930_v41, %v6129_v9 }
 0x16a   : > { %v1081_v43 = vpack.c.bf16 %v1020_v40, %v931_v42  ;;  %4754 = vmatmul.msk.bf16.gmra.mxu1 %vm594_vm0, %v5124_v6  ;;  %v1406_v42 = vsel %vm1368_vm5, %v6233_v33, 0 }
 0x16b   : > { %v5143_v45 = vld [vmem:[#allocation3 + $0x54] sm:$0xf0] }
 0x16c   : > { %1116 = vst.msk [vmem:[#allocation3 + $0x60] sm:$0xff] %vm6136_vm4, %v1081_v43  ;;  %v6246_v47 = vor.u32 %v5143_v45, %v4826_v44 }
 0x16d   : > { %v1029_v48 = vpop.f32.mrf.mxu2 }
 0x16e   : > { %1949 = vrot.lane.b32.xlu2 %v6246_v47, %s5803_s21  ;;  %v1030_v5 = vadd.f32 %v1029_v48, %v6126_v8  ;;  %v1409_v35 = vsel %vm1368_vm5, %v6246_v47, 0 }
 0x16f   : > { %v932_v49 = vpop.f32.mrf.mxu1 }
 0x170   : > { %v933_v51 = vadd.f32 %v932_v49, %v6129_v9 }
 0x172   : > { %v1082_v52 = vpack.c.bf16 %v1022_v50, %v933_v51 }
 0x173   : > { %v4830_v58 = vld [vmem:[#allocation3 + $0x60] sm:$0xf] }
 0x174   : > { %1117 = vst.msk [vmem:[#allocation3 + $0x68] sm:$0xff] %vm6136_vm4, %v1082_v52  ;;  %v1403_v52 = vsel %vm1368_vm5, %v6216_v16, 0 }
 0x175   : > { %v1031_v53 = vpop.f32.mrf.mxu2 }
 0x176   : > { %v1032_v19 = vadd.f32 %v1031_v53, %v6126_v8 }
 0x177   : > { %v935_v55 = vpop.f32.mrf.mxu1 }
 0x178   : > { %v936_v56 = vadd.f32 %v935_v55, %v6129_v9 }
 0x17a   : > { %v1083_v57 = vpack.c.bf16 %v1025_v54, %v936_v56  ;;  %4755 = vmatmul.msk.bf16.gmra.mxu1 %vm594_vm0, %v5125_v25 }
 0x17b   : > { %v5144_v59 = vld [vmem:[#allocation3 + $0x64] sm:$0xf0] }
 0x17c   : > { %1118 = vst.msk [vmem:[#allocation3 + $0x70] sm:$0xff] %vm6136_vm4, %v1083_v57  ;;  %v6259_v60 = vor.u32 %v5144_v59, %v4830_v58  ;;  %v1400_v58 = vsel %vm1368_vm5, %v6197_v61, 0 }
 0x17d   : > { %v1034_v62 = vpop.f32.mrf.mxu2 }
 0x17e   : > { %1951 = vrot.lane.b32.xlu1 %v6259_v60, %s5803_s21  ;;  %v1035_v23 = vadd.f32 %v1034_v62, %v6126_v8  ;;  %v1412_v24 = vsel %vm1368_vm5, %v6259_v60, 0 }
 0x17f   : > { %v937_v63 = vpop.f32.mrf.mxu1 }
 0x180   : > { %v938_v1 = vadd.f32 %v937_v63, %v6129_v9 }
 0x182   : > { %v1084_v3 = vpack.c.bf16 %v1027_v0, %v938_v1  ;;  %v638_v0 = vpop.f32.mrf.mxu0 }
 0x183   : > { %v4834_v11 = vld [vmem:[#allocation3 + $0x70] sm:$0xf]  ;;  %v639_v1 = vadd.f32 %v6079_v27, %v638_v0 }
 0x184   : > { %1119 = vst.msk [vmem:[#allocation3 + $0x78] sm:$0xff] %vm6136_vm4, %v1084_v3 }
 0x185   : > { %v1036_v4 = vpop.f32.mrf.mxu2 }
 0x186   : > { %v1037_v37 = vadd.f32 %v1036_v4, %v6126_v8 }
 0x187   : > { %v940_v6 = vpop.f32.mrf.mxu1 }
 0x188   : > { %v941_v7 = vadd.f32 %v940_v6, %v6129_v9  ;;  %v672_v6 = vpack.c.bf16 %v639_v1, %v639_v1 }
 0x18a   : > { %v1085_v10 = vpack.c.bf16 %v1030_v5, %v941_v7  ;;  %689 = vst.msk [vmem:[#allocation2 + $0x10] sm:$0xf] %vm684_vm1, %v672_v6 }
 0x18b   : > { %v5145_v12 = vld [vmem:[#allocation3 + $0x74] sm:$0xf0] }
 0x18c   : > { %1120 = vst.msk [vmem:[#allocation3 + $0x80] sm:$0xff] %vm6136_vm4, %v1085_v10  ;;  %v6271_v13 = vor.u32 %v5145_v12, %v4834_v11  ;;  %v1397_v10 = vsel %vm1368_vm5, %v6178_v46, 0 }
 0x18d   : > { %v1039_v18 = vpop.f32.mrf.mxu2 }
 0x18e   : > { %1953 = vrot.lane.b32.xlu0 %v6271_v13, %s5803_s21  ;;  %v1415_v14 = vsel %vm1368_vm5, %v6271_v13, 0  ;;  %v1040_v41 = vadd.f32 %v1039_v18, %v6126_v8 }
 0x18f   : > { %v942_v17 = vpop.f32.mrf.mxu1  ;;  %1441 = vmatpush.bf16.xpose.msra.mxu3 %v1415_v14 }
 0x190   : > { %v943_v20 = vadd.f32 %v942_v17, %v6129_v9  ;;  %v640_v17 = vpop.f32.mrf.mxu0 }
 0x192   : > { %v1086_v21 = vpack.c.bf16 %v1032_v19, %v943_v20  ;;  %v641_v19 = vadd.f32 %v6079_v27, %v640_v17 }
 0x193   : > { %v4838_v30 = vld [vmem:[#allocation3 + $0x80] sm:$0xf] }
 0x194   : > { %1121 = vst.msk [vmem:[#allocation3 + $0x88] sm:$0xff] %vm6136_vm4, %v1086_v21  ;;  %v673_v21 = vpack.c.bf16 %v641_v19, %v641_v19 }
 0x195   : > { %v1041_v28 = vpop.f32.mrf.mxu2 }
 0x196   : > { %v1042_v54 = vadd.f32 %v1041_v28, %v6126_v8  ;;  %690 = vst.msk [vmem:[#allocation2 + $0x14] sm:$0xf] %vm684_vm1, %v673_v21  ;;  %v6383_v21 = vpop.permute.xlu2 %1925 }
 0x197   : > { %v945_v25 = vpop.f32.mrf.mxu1  ;;  %1442 = vmatpush.bf16.xpose.msra.mxu3 %v1412_v24  ;;  %v1394_v24 = vsel %vm1368_vm5, %v6161_v32, 0 }
 0x198   : > { %v946_v26 = vadd.f32 %v945_v25, %v6129_v9  ;;  %v643_v28 = vpop.f32.mrf.mxu0 }
 0x19a   : > { %v1087_v29 = vpack.c.bf16 %v1035_v23, %v946_v26 }
 0x19b   : > { %v5146_v31 = vld [vmem:[#allocation3 + $0x84] sm:$0xf0] }
 0x19c   : > { %1122 = vst.msk [vmem:[#allocation3 + $0x90] sm:$0xff] %vm6136_vm4, %v1087_v29  ;;  %v6287_v34 = vor.u32 %v5146_v31, %v4838_v30  ;;  %v644_v29 = vadd.f32 %v6079_v27, %v643_v28 }
 0x19d   : > { %v1044_v40 = vpop.f32.mrf.mxu2 }
 0x19e   : > { %9409 = vst [vmem:[#allocation17_spill] sm:$0xff] %v6287_v34  ;;  %1955 = vrot.lane.b32.xlu0 %v6287_v34, %s5803_s21  ;;  %v1045_v57 = vadd.f32 %v1044_v40, %v6126_v8 }
 0x19f   : > { %v947_v36 = vpop.f32.mrf.mxu1  ;;  %1443 = vmatpush.bf16.xpose.msra.mxu3 %v1409_v35 }
 0x1a0   : > { %v948_v38 = vadd.f32 %v947_v36, %v6129_v9 }
 0x1a2   : > { %v1088_v39 = vpack.c.bf16 %v1037_v37, %v948_v38  ;;  %v674_v37 = vpack.c.bf16 %v644_v29, %v644_v29 }
 0x1a3   : > { %v4842_v48 = vld [vmem:[#allocation3 + $0x90] sm:$0xf] }
 0x1a4   : > { %1123 = vst.msk [vmem:[#allocation3 + $0x98] sm:$0xff] %vm6136_vm4, %v1088_v39 }
 0x1a5   : > { %v1046_v51 = vpop.f32.mrf.mxu2  ;;  %691 = vst.msk [vmem:[#allocation2 + $0x18] sm:$0xf] %vm684_vm1, %v674_v37  ;;  %v6399_v37 = vld [vmem:[#allocation2 + $0x38] sm:$0xff] }
 0x1a6   : > { %v1047_v12 = vadd.f32 %v1046_v51, %v6126_v8 }
 0x1a7   : > { %v950_v43 = vpop.f32.mrf.mxu1  ;;  %1444 = vmatpush.bf16.xpose.msra.mxu3 %v1406_v42  ;;  %v645_v42 = vpop.f32.mrf.mxu0 }
 0x1a8   : > { %v951_v44 = vadd.f32 %v950_v43, %v6129_v9  ;;  %v646_v43 = vadd.f32 %v6079_v27, %v645_v42 }
 0x1aa   : > { %v1089_v45 = vpack.c.bf16 %v1040_v41, %v951_v44 }
 0x1ab   : > { %v5147_v49 = vld [vmem:[#allocation3 + $0x94] sm:$0xf0] }
 0x1ac   : > { %1124 = vst.msk [vmem:[#allocation3 + $0xa0] sm:$0xff] %vm6136_vm4, %v1089_v45  ;;  %v6303_v50 = vor.u32 %v5147_v49, %v4842_v48  ;;  %v675_v45 = vpack.c.bf16 %v646_v43, %v646_v43 }
 0x1ad   : > { %v1049_v62 = vpop.f32.mrf.mxu2 }
 0x1ae   : > { %9410 = vst [vmem:[#allocation18_spill] sm:$0xff] %v6303_v50  ;;  %1957 = vrot.lane.b32.xlu1 %v6303_v50, %s5803_s21  ;;  %v1050_v23 = vadd.f32 %v1049_v62, %v6126_v8 }
 0x1af   : > { %v952_v53 = vpop.f32.mrf.mxu1  ;;  %1445 = vmatpush.bf16.xpose.msra.mxu3 %v1403_v52  ;;  %692 = vst.msk [vmem:[#allocation2 + $0x1c] sm:$0xf] %vm684_vm1, %v675_v45 }
 0x1b0   : > { %v953_v55 = vadd.f32 %v952_v53, %v6129_v9 }
 0x1b2   : > { %v1090_v56 = vpack.c.bf16 %v1042_v54, %v953_v55 }
 0x1b3   : > { %v4846_v4 = vld [vmem:[#allocation3 + $0xa0] sm:$0xf] }
 0x1b4   : > { %1125 = vst.msk [vmem:[#allocation3 + $0xa8] sm:$0xff] %vm6136_vm4, %v1090_v56 }
 0x1b5   : > { %v1051_v18 = vpop.f32.mrf.mxu2 }
 0x1b6   : > { %v1052_v40 = vadd.f32 %v1051_v18, %v6126_v8 }
 0x1b7   : > { %v955_v59 = vpop.f32.mrf.mxu1  ;;  %1446 = vmatpush.bf16.xpose.msra.mxu3 %v1400_v58 }
 0x1b8   : > { %v956_v63 = vadd.f32 %v955_v59, %v6129_v9 }
 0x1ba   : > { %v1091_v3 = vpack.c.bf16 %v1045_v57, %v956_v63 }
 0x1bb   : > { %v5148_v5 = vld [vmem:[#allocation3 + $0xa4] sm:$0xf0] }
 0x1bc   : > { %1126 = vst.msk [vmem:[#allocation3 + $0xb0] sm:$0xff] %vm6136_vm4, %v1091_v3  ;;  %v6320_v7 = vor.u32 %v5148_v5, %v4846_v4  ;;  %v6369_v5 = vld [vmem:[#allocation2 + $0x10] sm:$0xff] }
 0x1bd   : > { %v1054_v36 = vpop.f32.mrf.mxu2 }
 0x1be   : > { %9411 = vst [vmem:[#allocation19_spill] sm:$0xff] %v6320_v7  ;;  %1959 = vrot.lane.b32.xlu2 %v6320_v7, %s5803_s21  ;;  %v1055_v49 = vadd.f32 %v1054_v36, %v6126_v8  ;;  %v6395_v36 = vld [vmem:[#allocation2 + $0x18] sm:$0xff] }
 0x1bf   : > { %v957_v11 = vpop.f32.mrf.mxu1  ;;  %1447 = vmatpush.bf16.xpose.msra.mxu3 %v1397_v10 }
 0x1c0   : > { %v958_v14 = vadd.f32 %v957_v11, %v6129_v9 }
 0x1c2   : > { %v1092_v20 = vpack.c.bf16 %v1047_v12, %v958_v14  ;;  %v6379_v14 = vpop.permute.xlu0 %1941 }
 0x1c3   : > { %v4850_v31 = vld [vmem:[#allocation3 + $0xb0] sm:$0xf] }
 0x1c4   : > { %1127 = vst.msk [vmem:[#allocation3 + $0xb8] sm:$0xff] %vm6136_vm4, %v1092_v20 }
 0x1c5   : > { %v1056_v48 = vpop.f32.mrf.mxu2 }
 0x1c6   : > { %v1057_v58 = vadd.f32 %v1056_v48, %v6126_v8 }
 0x1c7   : > { %v960_v25 = vpop.f32.mrf.mxu1  ;;  %1448 = vmatpush.bf16.xpose.msra.mxu3 %v1394_v24  ;;  %v6389_v24 = vld [vmem:[#allocation2 + $0x20] sm:$0xff] }
 0x1c8   : > { %v961_v26 = vadd.f32 %v960_v25, %v6129_v9 }
 0x1ca   : > { %v1093_v30 = vpack.c.bf16 %v1050_v23, %v961_v26  ;;  %v6385_v23 = vpop.permute.xlu1 %1923 }
 0x1cb   : > { %v5149_v35 = vld [vmem:[#allocation3 + $0xb4] sm:$0xf0] }
 0x1cc   : > { %1128 = vst.msk [vmem:[#allocation3 + $0xc0] sm:$0xff] %vm6136_vm4, %v1093_v30  ;;  %v6340_v38 = vor.u32 %v5149_v35, %v4850_v31 }
 0x1cd   : > { %v1059_v57 = vpop.f32.mrf.mxu2 }
 0x1ce   : > { %9412 = vst [vmem:[#allocation20_spill] sm:$0xff] %v6340_v38  ;;  %1961 = vrot.lane.b32.xlu0 %v6340_v38, %s5803_s21  ;;  %4868 = vmatmul.msk.bf16.vlgmr.msra.gmra.mxu3 %vm1368_vm5, %v6148_v22  ;;  %v1060_v63 = vadd.f32 %v1059_v57, %v6126_v8 }
 0x1cf   : > { %v962_v39 = vpop.f32.mrf.mxu1 }
 0x1d0   : > { %v963_v41 = vadd.f32 %v962_v39, %v6129_v9  ;;  %v1948_v28 = vpop.permute.xlu0 %1947 }
 0x1d2   : > { %v1094_v44 = vpack.c.bf16 %v1052_v40, %v963_v41  ;;  %v6403_v41 = vpop.permute.xlu2 %1939  ;;  %v1944_v42 = vpop.permute.xlu1 %1943 }
 0x1d3   : > { %v4854_v54 = vld [vmem:[#allocation3 + $0xc0] sm:$0xf] }
 0x1d4   : > { %1129 = vst.msk [vmem:[#allocation3 + $0xc8] sm:$0xff] %vm6136_vm4, %v1094_v44 }
 0x1d5   : > { %v1061_v3 = vpop.f32.mrf.mxu2 }
 0x1d6   : > { %v1062_v17 = vadd.f32 %v1061_v3, %v6126_v8 }
 0x1d7   : > { %v965_v51 = vpop.f32.mrf.mxu1 }
 0x1d8   : > { %v966_v52 = vadd.f32 %v965_v51, %v6129_v9 }
 0x1da   : > { %v1095_v53 = vpack.c.bf16 %v1055_v49, %v966_v52  ;;  %v1946_v52 = vpop.permute.xlu2 %1945 }
 0x1db   : > { %v5150_v55 = vld [vmem:[#allocation3 + $0xc4] sm:$0xf0] }
 0x1dc   : > { %1130 = vst.msk [vmem:[#allocation3 + $0xd0] sm:$0xff] %vm6136_vm4, %v1095_v53  ;;  %v6357_v27 = vor.u32 %v5150_v55, %v4854_v54 }
 0x1dd   : > { %v1064_v20 = vpop.f32.mrf.mxu2 }
 0x1de   : > { %1963 = vrot.lane.b32.xlu1 %v6357_v27, %s5803_s21  ;;  %4869 = vmatmul.msk.bf16.gmra.mxu3 %vm1368_vm5, %v6118_v2  ;;  %v1065_v25 = vadd.f32 %v1064_v20, %v6126_v8  ;;  %v1430_v3 = vsel %vm1368_vm5, %v6357_v27, 0 }
 0x1df   : > { %v967_v56 = vpop.f32.mrf.mxu1 }
 0x1e0   : > { %v968_v59 = vadd.f32 %v967_v56, %v6129_v9  ;;  %v6423_v56 = vld [vmem:[#allocation2 + $0x30] sm:$0xff] }
 0x1e2   : > { %v1096_v62 = vpack.c.bf16 %v1057_v58, %v968_v59  ;;  %v1950_v15 = vpop.permute.xlu2 %1949 }
 0x1e3   : > { %v4858_v6 = vld [vmem:[#allocation3 + $0xd0] sm:$0xf]  ;;  %v2011_v58 = vsel %vm1368_vm5, %v1950_v15, 0 }
 0x1e4   : > { %1131 = vst.msk [vmem:[#allocation3 + $0xd8] sm:$0xff] %vm6136_vm4, %v1096_v62  ;;  %v2008_v62 = vsel %vm1368_vm5, %v1948_v28, 0 }
 0x1e5   : > { %v1066_v40 = vpop.f32.mrf.mxu2 }
 0x1e6   : > { %v1067_v44 = vadd.f32 %v1066_v40, %v6126_v8 }
 0x1e7   : > { %v970_v0 = vpop.f32.mrf.mxu1 }
 0x1e8   : > { %v971_v1 = vadd.f32 %v970_v0, %v6129_v9 }
 0x1ea   : > { %v1097_v4 = vpack.c.bf16 %v1060_v63, %v971_v1  ;;  %v6445_v63 = vld [vmem:[#allocation2 + $0x28] sm:$0xff]  ;;  %v2005_v1 = vsel %vm1368_vm5, %v1946_v52, 0 }
 0x1eb   : > { %v5151_v10 = vld [vmem:[#allocation3 + $0xd4] sm:$0xf0] }
 0x1ec   : > { %1132 = vst.msk [vmem:[#allocation3 + $0xe0] sm:$0xff] %vm6136_vm4, %v1097_v4  ;;  %v6373_v11 = vor.u32 %v5151_v10, %v4858_v6  ;;  %v2002_v4 = vsel %vm1368_vm5, %v1944_v42, 0  ;;  %v1427_v6 = vsel %vm1368_vm5, %v6340_v38, 0  ;;  %v1999_v10 = vsel %vm1368_vm5, %v6379_v14, 0 }
 0x1ed   : > { %v1421_v14 = vsel %vm1368_vm5, %v6303_v50, 0 }
 0x1ee   : > { %1965 = vrot.lane.b32.xlu2 %v6373_v11, %s5803_s21  ;;  %4870 = vmatmul.msk.bf16.gmra.mxu3 %vm1368_vm5, %v6369_v5  ;;  %v1433_v0 = vsel %vm1368_vm5, %v6373_v11, 0 }
 0x1ef   : > { %v972_v12 = vpop.f32.mrf.mxu1 }
 0x1f0   : > { %v973_v18 = vadd.f32 %v972_v12, %v6129_v9  ;;  %v1952_v53 = vpop.permute.xlu1 %1951  ;;  %v1424_v12 = vsel %vm1368_vm5, %v6320_v7, 0 }
 0x1f1   : > { %v2014_v8 = vsel %vm1368_vm5, %v1952_v53, 0 }
 0x1f2   : > { %v1098_v19 = vpack.c.bf16 %v1062_v17, %v973_v18  ;;  %v1996_v17 = vsel %vm1368_vm5, %v6403_v41, 0 }
 0x1f3   : > { %v4862_v31 = vld [vmem:[#allocation3 + $0xe0] sm:$0xf] }
 0x1f4   : > { %1133 = vst.msk [vmem:[#allocation3 + $0xe8] sm:$0xff] %vm6136_vm4, %v1098_v19  ;;  %v1418_v19 = vsel %vm1368_vm5, %v6287_v34, 0 }
 0x1f6   : > { %1931 = vrot.lane.b32.xlu2 %v6389_v24, %s5803_s21 }
 0x1f7   : > { %v975_v26 = vpop.f32.mrf.mxu1 }
 0x1f8   : > { %v976_v29 = vadd.f32 %v975_v26, %v6129_v9 }
 0x1fa   : > { %v1099_v30 = vpack.c.bf16 %v1065_v25, %v976_v29 }
 0x1fb   : > { %v5152_v35 = vld [vmem:[#allocation3 + $0xe4] sm:$0xf0] }
 0x1fc   : > { %1134 = vst.msk [vmem:[#allocation3 + $0xf0] sm:$0xff] %vm6136_vm4, %v1099_v30  ;;  %v6401_v39 = vor.u32 %v5152_v35, %v4862_v31 }
 0x1fe   : > { %1937 = vrot.lane.b32.xlu2 %v6399_v37, %s5803_s21  ;;  %1967 = vrot.lane.b32.xlu1 %v6401_v39, %s5803_s21  ;;  %v1436_v59 = vsel %vm1368_vm5, %v6401_v39, 0 }
 0x1ff   : > { %4871 = vmatmul.msk.bf16.gmra.mxu3 %vm1368_vm5, %v6395_v36  ;;  %v977_v43 = vpop.f32.mrf.mxu1 }
 0x200   : > { %v978_v45 = vadd.f32 %v977_v43, %v6129_v9  ;;  %v1954_v48 = vpop.permute.xlu0 %1953 }
 0x201   : > { %v2017_v49 = vsel %vm1368_vm5, %v1954_v48, 0 }
 0x202   : > { %v1100_v51 = vpack.c.bf16 %v1067_v44, %v978_v45  ;;  %2043 = vmatpush.bf16.xpose.msrb.mxu3 %v2017_v49 }
 0x203   : > { %v4866_v9 = vld [vmem:[#allocation3 + $0xf0] sm:$0xf] }
 0x204   : > { %1135 = vst.msk [vmem:[#allocation3 + $0xf8] sm:$0xff] %vm6136_vm4, %v1100_v51 }
 0x206   : > { %2538 = vrot.lane.b32.xlu2 %v6259_v60, %s5804_s27  ;;  %1929 = vrot.lane.b32.xlu1 %v6395_v36, %s5803_s21 }
 0x20a   : > { %2044 = vmatpush.bf16.xpose.msrb.mxu3 %v2014_v8 }
 0x20b   : > { %v5153_v54 = vld [vmem:[#allocation3 + $0xf4] sm:$0xf0] }
 0x20c   : > { %v6421_v55 = vor.u32 %v5153_v54, %v4866_v9 }
 0x20e   : > { %1969 = vrot.lane.b32.xlu0 %v6421_v55, %s5803_s21  ;;  %2550 = vrot.lane.b32.xlu2 %v6357_v27, %s5804_s27  ;;  %v1439_v57 = vsel %vm1368_vm5, %v6421_v55, 0 }
 0x20f   : > { %1935 = vrot.lane.b32.xlu1 %v6423_v56, %s5803_s21  ;;  %4872 = vmatmul.msk.bf16.gmra.mxu3 %vm1368_vm5, %v6389_v24 }
 0x210   : > { %1490 = vmatpush.bf16.xpose.msrb.mxu0 %v1439_v57 }
 0x212   : > { %2045 = vmatpush.bf16.xpose.msrb.mxu3 %v2011_v58 }
 0x216   : > { %1927 = vrot.lane.b32.xlu0 %v6369_v5, %s5803_s21  ;;  %2536 = vrot.lane.b32.xlu2 %v6246_v47, %s5804_s27 }
 0x217   : > { %2540 = vrot.lane.b32.xlu1 %v6271_v13, %s5804_s27 }
 0x218   : > { %1491 = vmatpush.bf16.xpose.msrb.mxu0 %v1436_v59  ;;  %v6499_v18 = vpop.permute.xlu2 %1959 }
 0x21a   : > { %2046 = vmatpush.bf16.xpose.msrb.mxu3 %v2008_v62 }
 0x21e   : > { %1933 = vrot.lane.b32.xlu0 %v6445_v63, %s5803_s21  ;;  %2548 = vrot.lane.b32.xlu2 %v6340_v38, %s5804_s27  ;;  %s5805_s21 = smov 96  }
 0x21f   : > { %2546 = vrot.lane.b32.xlu1 %v6320_v7, %s5804_s27  ;;  %4873 = vmatmul.msk.bf16.gmra.mxu3 %vm1368_vm5, %v6445_v63 }
 0x220   : > { %1492 = vmatpush.bf16.xpose.msrb.mxu0 %v1433_v0  ;;  %v6539_v28 = vpop.permute.xlu1 %1957 }
 0x222   : > { %2047 = vmatpush.bf16.xpose.msrb.mxu3 %v2005_v1  ;;  %v2026_v1 = vsel %vm1368_vm5, %v6499_v18, 0 }
 0x226   : > { %2554 = vrot.lane.b32.xlu0 %v6401_v39, %s5804_s27  ;;  %2544 = vrot.lane.b32.xlu2 %v6303_v50, %s5804_s27 }
 0x227   : > { %2878 = vrot.lane.b32.xlu1 %v6259_v60, %s5805_s21 }
 0x228   : > { %1493 = vmatpush.bf16.xpose.msrb.mxu0 %v1430_v3 }
 0x22a   : > { %2048 = vmatpush.bf16.xpose.msrb.mxu3 %v2002_v4 }
 0x22e   : > { %2552 = vrot.lane.b32.xlu0 %v6373_v11, %s5804_s27  ;;  %2542 = vrot.lane.b32.xlu2 %v6287_v34, %s5804_s27 }
 0x22f   : > { %2886 = vrot.lane.b32.xlu1 %v6320_v7, %s5805_s21  ;;  %4874 = vmatmul.msk.bf16.gmra.mxu3 %vm1368_vm5, %v6423_v56 }
 0x230   : > { %1494 = vmatpush.bf16.xpose.msrb.mxu0 %v1427_v6  ;;  %v2023_v6 = vsel %vm1368_vm5, %v6539_v28, 0 }
 0x232   : > { %2049 = vmatpush.bf16.xpose.msrb.mxu3 %v1999_v10 }
 0x236   : > { %2534 = vrot.lane.b32.xlu0 %v6233_v33, %s5804_s27  ;;  %2528 = vrot.lane.b32.xlu2 %v6178_v46, %s5804_s27 }
 0x237   : > { %2884 = vrot.lane.b32.xlu1 %v6303_v50, %s5805_s21 }
 0x238   : > { %1495 = vmatpush.bf16.xpose.msrb.mxu0 %v1424_v12 }
 0x23a   : > { %2050 = vmatpush.bf16.xpose.msrb.mxu3 %v1996_v17 }
 0x23e   : > { %2532 = vrot.lane.b32.xlu0 %v6216_v16, %s5804_s27  ;;  %2880 = vrot.lane.b32.xlu2 %v6271_v13, %s5805_s21 }
 0x23f   : > { %2866 = vrot.lane.b32.xlu1 %v6161_v32, %s5805_s21  ;;  %4875 = vmatmul.msk.bf16.gmra.mxu3 %vm1368_vm5, %v6399_v37 }
 0x240   : > { %1496 = vmatpush.bf16.xpose.msrb.mxu0 %v1421_v14 }
 0x246   : > { %2530 = vrot.lane.b32.xlu0 %v6197_v61, %s5804_s27  ;;  %2872 = vrot.lane.b32.xlu2 %v6216_v16, %s5805_s21 }
 0x247   : > { %2852 = vrot.lane.b32.xlu1 %v6118_v2, %s5805_s21 }
 0x248   : > { %1497 = vmatpush.bf16.xpose.msrb.mxu0 %v1418_v19  ;;  %v6509_v20 = vpop.permute.xlu2 %1965 }
 0x249   : > { %v2035_v9 = vsel %vm1368_vm5, %v6509_v20, 0 }
 0x24e   : > { %2526 = vrot.lane.b32.xlu0 %v6161_v32, %s5804_s27  ;;  %2870 = vrot.lane.b32.xlu2 %v6197_v61, %s5805_s21 }
 0x24f   : > { %2856 = vrot.lane.b32.xlu1 %v6395_v36, %s5805_s21  ;;  %4876 = vmatmul.msk.bf16.vlgmr.msrb.gmra.mxu0 %vm1368_vm5, %v6148_v22 }
 0x250   : > { %v6519_v25 = vpop.permute.xlu2 %1931  ;;  %4884 = vmatmul.msk.bf16.vlgmr.msrb.gmra.mxu3 %vm1368_vm5, %v6385_v23 }
 0x251   : > { %v6597_v51 = vpop.f32.mrf.mxu3 }
 0x256   : > { %2894 = vrot.lane.b32.xlu0 %v6401_v39, %s5805_s21  ;;  %2868 = vrot.lane.b32.xlu2 %v6178_v46, %s5805_s21 }
 0x257   : > { %2858 = vrot.lane.b32.xlu1 %v6389_v24, %s5805_s21 }
 0x258   : > { %v6529_v26 = vpop.permute.xlu2 %1937 }
 0x25e   : > { %2892 = vrot.lane.b32.xlu0 %v6373_v11, %s5805_s21  ;;  %2850 = vrot.lane.b32.xlu2 %v6148_v22, %s5805_s21  ;;  %v1964_v22 = vpop.permute.xlu1 %1963 }
 0x25f   : > { %3693 = vrot.lane.b32.xlu1 %v6271_v13, %s5806_s24  ;;  %4877 = vmatmul.msk.bf16.gmra.mxu0 %vm1368_vm5, %v6118_v2  ;;  %v6555_v2 = vpop.permute.xlu0 %1955  ;;  %v2032_v15 = vsel %vm1368_vm5, %v1964_v22, 0 }
 0x260   : > { %v2539_v29 = vpop.permute.xlu2 %2538  ;;  %4885 = vmatmul.msk.bf16.gmra.mxu3 %vm1368_vm5, %v6383_v21  ;;  %v2020_v14 = vsel %vm1368_vm5, %v6555_v2, 0 }
 0x266   : > { %2876 = vrot.lane.b32.xlu0 %v6246_v47, %s5805_s21  ;;  %2854 = vrot.lane.b32.xlu2 %v6369_v5, %s5805_s21 }
 0x267   : > { %3707 = vrot.lane.b32.xlu1 %v6401_v39, %s5806_s24  ;;  %v1962_v40 = vpop.permute.xlu0 %1961 }
 0x268   : > { %v6549_v30 = vpop.permute.xlu2 %2550  ;;  %v2029_v0 = vsel %vm1368_vm5, %v1962_v40, 0 }
 0x26e   : > { %2890 = vrot.lane.b32.xlu0 %v6357_v27, %s5805_s21  ;;  %2860 = vrot.lane.b32.xlu2 %v6445_v63, %s5805_s21 }
 0x26f   : > { %2686 = vrot.lane.b32.xlu1 %v6271_v13, %s5807_s6  ;;  %4878 = vmatmul.msk.bf16.gmra.mxu0 %vm1368_vm5, %v6369_v5 }
 0x270   : > { %v2537_v31 = vpop.permute.xlu2 %2536  ;;  %v1968_v35 = vpop.permute.xlu1 %1967 }
 0x271   : > { %v2038_v49 = vsel %vm1368_vm5, %v1968_v35, 0  ;;  %v6722_v35 = vld [vmem:[%s5986_s18] sm:$0xff] }
 0x276   : > { %2874 = vrot.lane.b32.xlu0 %v6233_v33, %s5805_s21  ;;  %3703 = vrot.lane.b32.xlu2 %v6357_v27, %s5806_s24 }
 0x277   : > { %3687 = vrot.lane.b32.xlu1 %v6233_v33, %s5806_s24 }
 0x278   : > { %v6567_v41 = vpop.permute.xlu2 %2548  ;;  %v6569_v42 = vpop.permute.xlu1 %1929 }
 0x27e   : > { %2888 = vrot.lane.b32.xlu0 %v6340_v38, %s5805_s21  ;;  %2684 = vrot.lane.b32.xlu2 %v6259_v60, %s5807_s6 }
 0x27f   : > { %2862 = vrot.lane.b32.xlu1 %v6423_v56, %s5805_s21  ;;  %4879 = vmatmul.msk.bf16.gmra.mxu0 %vm1368_vm5, %v6395_v36 }
 0x280   : > { %v1970_v13 = vpop.permute.xlu0 %1969  ;;  %v6579_v5 = vpop.permute.xlu2 %2544 }
 0x281   : > { %v2041_v43 = vsel %vm1368_vm5, %v1970_v13, 0  ;;  %v6582_v44 = vpop.permute.xlu1 %1935  ;;  %v1572_v13 = vld [vmem:[%s5976_s13 + $0x8] sm:$0xff] }
 0x282   : > { %2092 = vmatpush.bf16.xpose.msra.mxu0 %v2041_v43  ;;  %v1539_v43 = vmul.f32 %v6597_v51, %v6722_v35 }
 0x286   : > { %2882 = vrot.lane.b32.xlu0 %v6287_v34, %s5805_s21  ;;  %3683 = vrot.lane.b32.xlu2 %v6197_v61, %s5806_s24 }
 0x287   : > { %2682 = vrot.lane.b32.xlu1 %v6246_v47, %s5807_s6 }
 0x288   : > { %v6590_v45 = vpop.permute.xlu0 %1927  ;;  %v6592_v36 = vpop.permute.xlu2 %2542 }
 0x289   : > { %v2541_v48 = vpop.permute.xlu1 %2540  ;;  %4886 = vmatmul.msk.bf16.gmra.mxu3 %vm1368_vm5, %v6590_v45 }
 0x28a   : > { %2574 = vmatpush.bf16.msra.mxu1 %v2541_v48  ;;  %2093 = vmatpush.bf16.xpose.msra.mxu0 %v2038_v49 }
 0x28e   : > { %2575 = vmatpush.bf16.msra.mxu1 %v2539_v29  ;;  %3691 = vrot.lane.b32.xlu0 %v6259_v60, %s5806_s24  ;;  %v6613_v60 = vpop.f32.mrf.mxu3 }
 0x28f   : > { %2676 = vrot.lane.b32.xlu2 %v6197_v61, %s5807_s6  ;;  %3685 = vrot.lane.b32.xlu1 %v6216_v16, %s5806_s24 }
 0x290   : > { %4880 = vmatmul.msk.bf16.gmra.mxu0 %vm1368_vm5, %v6389_v24  ;;  %v6607_v52 = vpop.permute.xlu0 %1933  ;;  %v2529_v53 = vpop.permute.xlu2 %2528 }
 0x291   : > { %v6609_v8 = vpop.permute.xlu1 %2546 }
 0x292   : > { %2576 = vmatpush.bf16.msra.mxu1 %v2537_v31  ;;  %2094 = vmatpush.bf16.xpose.msra.mxu0 %v2035_v9 }
 0x296   : > { %3705 = vrot.lane.b32.xlu0 %v6373_v11, %s5806_s24  ;;  %v6630_v57 = vpop.f32.mrf.mxu3 }
 0x297   : > { %2674 = vrot.lane.b32.xlu2 %v6178_v46, %s5807_s6  ;;  %3699 = vrot.lane.b32.xlu1 %v6320_v7, %s5806_s24  ;;  %v6896_v7 = vld [vmem:[%s5986_s18 + $0x60] sm:$0xff] }
 0x298   : > { %v6621_v61 = vpop.permute.xlu0 %2554  ;;  %v2881_v24 = vpop.permute.xlu2 %2880 }
 0x299   : > { %v6623_v54 = vpop.permute.xlu1 %2878  ;;  %4887 = vmatmul.msk.bf16.gmra.mxu3 %vm1368_vm5, %v6569_v42  ;;  %v2944_v19 = vsel %vm1368_vm5, %v2881_v24, 0 }
 0x29a   : > { %2095 = vmatpush.bf16.xpose.msra.mxu0 %v2032_v15  ;;  %v2941_v2 = vsel %vm1368_vm5, %v6623_v54, 0 }
 0x29e   : > { %3689 = vrot.lane.b32.xlu0 %v6246_v47, %s5806_s24 }
 0x29f   : > { %2700 = vrot.lane.b32.xlu2 %v6401_v39, %s5807_s6  ;;  %2680 = vrot.lane.b32.xlu1 %v6233_v33, %s5807_s6  ;;  %v6653_v39 = vpop.f32.mrf.mxu3 }
 0x2a0   : > { %4881 = vmatmul.msk.bf16.gmra.mxu0 %vm1368_vm5, %v6445_v63  ;;  %v6638_v58 = vpop.permute.xlu0 %2552  ;;  %v6640_v59 = vpop.permute.xlu2 %2872 }
 0x2a1   : > { %v6642_v62 = vpop.permute.xlu1 %2886 }
 0x2a2   : > { %2096 = vmatpush.bf16.xpose.msra.mxu0 %v2029_v0 }
 0x2a6   : > { %3701 = vrot.lane.b32.xlu0 %v6340_v38, %s5806_s24 }
 0x2a7   : > { %3679 = vrot.lane.b32.xlu2 %v6161_v32, %s5806_s24  ;;  %2678 = vrot.lane.b32.xlu1 %v6216_v16, %s5807_s6  ;;  %v6675_v10 = vpop.f32.mrf.mxu3 }
 0x2a8   : > { %v2535_v33 = vpop.permute.xlu0 %2534  ;;  %v6651_v47 = vpop.permute.xlu2 %2870 }
 0x2a9   : > { %v6655_v63 = vpop.permute.xlu1 %2884  ;;  %4888 = vmatmul.msk.bf16.gmra.mxu3 %vm1368_vm5, %v6519_v25  ;;  %2577 = vmatpush.bf16.msra.mxu1 %v2535_v33 }
 0x2aa   : > { %2097 = vmatpush.bf16.xpose.msra.mxu0 %v2026_v1 }
 0x2ae   : > { %2864 = vrot.lane.b32.xlu0 %v6399_v37, %s5805_s21 }
 0x2af   : > { %2556 = vrot.lane.b32.xlu2 %v6421_v55, %s5804_s27  ;;  %3697 = vrot.lane.b32.xlu1 %v6303_v50, %s5806_s24  ;;  %v6689_v18 = vpop.f32.mrf.mxu3 }
 0x2b0   : > { %4882 = vmatmul.msk.bf16.gmra.mxu0 %vm1368_vm5, %v6423_v56  ;;  %v2533_v16 = vpop.permute.xlu0 %2532  ;;  %v6669_v3 = vpop.permute.xlu2 %2868 }
 0x2b1   : > { %v6671_v4 = vpop.permute.xlu1 %2866  ;;  %2578 = vmatpush.bf16.msra.mxu1 %v2533_v16 }
 0x2b2   : > { %2098 = vmatpush.bf16.xpose.msra.mxu0 %v2023_v6  ;;  %v6757_v6 = vld [vmem:[%s5986_s18 + $0x30] sm:$0xff] }
 0x2b6   : > { %3681 = vrot.lane.b32.xlu0 %v6178_v46, %s5806_s24 }
 0x2b7   : > { %2696 = vrot.lane.b32.xlu1 %v6357_v27, %s5807_s6  ;;  %v6704_v28 = vpop.f32.mrf.mxu3 }
 0x2b8   : > { %v2531_v12 = vpop.permute.xlu0 %2530  ;;  %v6681_v56 = vpop.permute.xlu2 %2850 }
 0x2b9   : > { %9413 = vst [vmem:[#allocation21_spill] sm:$0xff] %v6681_v56  ;;  %v6683_v17 = vpop.permute.xlu1 %2852  ;;  %4889 = vmatmul.msk.bf16.gmra.mxu3 %vm1368_vm5, %v6607_v52  ;;  %2579 = vmatpush.bf16.msra.mxu1 %v2531_v12  ;;  %v1581_v56 = vld [vmem:[%s5976_s13 + $0x50] sm:$0xff] }
 0x2ba   : > { %9414 = vst [vmem:[#allocation22_spill] sm:$0xff] %v6683_v17  ;;  %2099 = vmatpush.bf16.xpose.msra.mxu0 %v2020_v14  ;;  %v6824_v17 = vld [vmem:[%s5986_s18 + $0x18] sm:$0xff] }
 0x2bd   : > { %2580 = vmatpush.bf16.msra.mxu1 %v2529_v53  ;;  %v1571_v53 = vld [vmem:[%s5976_s13] sm:$0xff] }
 0x2be   : > { %3695 = vrot.lane.b32.xlu0 %v6287_v34, %s5806_s24  ;;  %v1582_v34 = vld [vmem:[%s5976_s13 + $0x58] sm:$0xff] }
 0x2bf   : > { %2896 = vrot.lane.b32.xlu1 %v6421_v55, %s5805_s21  ;;  %v6739_v24 = vpop.f32.mrf.mxu3 }
 0x2c0   : > { %4883 = vmatmul.msk.bf16.gmra.mxu0 %vm1368_vm5, %v6399_v37  ;;  %v2527_v46 = vpop.permute.xlu0 %2526  ;;  %v6697_v27 = vpop.permute.xlu2 %2854 }
 0x2c1   : > { %9415 = vst [vmem:[#allocation23_spill] sm:$0xff] %v6697_v27  ;;  %v6700_v20 = vpop.permute.xlu1 %2856  ;;  %2581 = vmatpush.bf16.msra.mxu1 %v2527_v46 }
 0x2c2   : > { %9416 = vst [vmem:[#allocation24_spill] sm:$0xff] %v6700_v20 }
 0x2c5   : > { %2970 = vmatpush.bf16.xpose.msrb.mxu1 %v2944_v19  ;;  %v6766_v19 = vld [vmem:[%s5986_s18 + $0x38] sm:$0xff] }
 0x2c6   : > { %2672 = vrot.lane.b32.xlu0 %v6161_v32, %s5807_s6  ;;  %v6719_v32 = vld [vmem:[%s5986_s18 + $0x8] sm:$0xff] }
 0x2c7   : > { %3709 = vrot.lane.b32.xlu1 %v6421_v55, %s5806_s24 }
 0x2c8   : > { %v6708_v37 = vpop.permute.xlu0 %2894  ;;  %v6710_v29 = vpop.permute.xlu2 %2860 }
 0x2c9   : > { %9417 = vst [vmem:[#allocation25_spill] sm:$0xff] %v6710_v29  ;;  %v6712_v22 = vpop.permute.xlu1 %2858  ;;  %4890 = vmatmul.msk.bf16.gmra.mxu3 %vm1368_vm5, %v6582_v44 }
 0x2ca   : > { %9418 = vst [vmem:[#allocation26_spill] sm:$0xff] %v6712_v22 }
 0x2cc   : > { %v1499_v31 = vpop.f32.mrf.mxu0 }
 0x2cd   : > { %2971 = vmatpush.bf16.xpose.msrb.mxu1 %v2941_v2  ;;  %v1540_v40 = vmul.f32 %v1499_v31, %v6719_v32  ;;  %v1545_v2 = vmul.f32 %v6653_v39, %v6757_v6  ;;  %v6771_v31 = vld [vmem:[%s5986_s18 + $0x28] sm:$0xff] }
 0x2ce   : > { %2698 = vrot.lane.b32.xlu0 %v6373_v11, %s5807_s6  ;;  %v6743_v11 = vadd.f32 %v1571_v53, %v1539_v43  ;;  %v1578_v43 = vld [vmem:[%s5976_s13 + $0x38] sm:$0xff]  ;;  %v6777_v53 = vld [vmem:[%s5986_s18 + $0x20] sm:$0xff]  ;;  %v1576_v39 = vld [vmem:[%s5976_s13 + $0x28] sm:$0xff] }
 0x2cf   : > { %v6741_v54 = vadd.f32 %v1572_v13, %v1540_v40  ;;  %v1577_v13 = vld [vmem:[%s5976_s13 + $0x30] sm:$0xff]  ;;  %v1543_v22 = vmul.f32 %v6630_v57, %v6777_v53 }
 0x2d0   : > { %4892 = vmatmul.msk.bf16.vlgmr.msra.gmra.mxu0 %vm1368_vm5, %v6385_v23  ;;  %v6732_v48 = vpop.permute.xlu0 %2892  ;;  %v6734_v49 = vpop.permute.xlu2 %3703 }
 0x2d1   : > { %9419 = vst [vmem:[#allocation27_spill] sm:$0xff] %v6734_v49  ;;  %v6737_v9 = vpop.permute.xlu1 %3693  ;;  %v1635_v23 = vmax.f32 %v6743_v11, %v6741_v54  ;;  %v1574_v49 = vld [vmem:[%s5976_s13 + $0x18] sm:$0xff] }
 0x2d2   : > { %9420 = vst [vmem:[#allocation28_spill] sm:$0xff] %v6737_v9 }
 0x2d4   : > { %v1501_v15 = vpop.f32.mrf.mxu0 }
 0x2d6   : > { %2702 = vrot.lane.b32.xlu0 %v6421_v55, %s5807_s6  ;;  %v6754_v55 = vpop.f32.mrf.mxu3 }
 0x2d8   : > { %1636 = vmax.xlane.f32.xlu2 %v1635_v23  ;;  %v2877_v51 = vpop.permute.xlu0 %2876  ;;  %v2685_v0 = vpop.permute.xlu2 %2684 }
 0x2d9   : > { %v6749_v33 = vpop.permute.xlu1 %3707  ;;  %4891 = vmatmul.msk.bf16.gmra.mxu3 %vm1368_vm5, %v6529_v26  ;;  %v2938_v1 = vsel %vm1368_vm5, %v2877_v51, 0 }
 0x2da   : > { %9421 = vst [vmem:[#allocation29_spill] sm:$0xff] %v6749_v33  ;;  %2972 = vmatpush.bf16.xpose.msrb.mxu1 %v2938_v1  ;;  %v6782_v1 = vadd.f32 %v1577_v13, %v1545_v2 }
 0x2dc   : > { %v1504_v16 = vpop.f32.mrf.mxu0 }
 0x2dd   : > { %v1544_v51 = vmul.f32 %v1504_v16, %v6771_v31  ;;  %v1575_v16 = vld [vmem:[%s5976_s13 + $0x20] sm:$0xff] }
 0x2de   : > { %v6779_v23 = vpop.f32.mrf.mxu3 }
 0x2df   : > { %v6797_v2 = vadd.f32 %v1576_v39, %v1544_v51 }
 0x2e0   : > { %4893 = vmatmul.msk.bf16.gmra.mxu0 %vm1368_vm5, %v6383_v21  ;;  %v6761_v12 = vpop.permute.xlu0 %2890  ;;  %v6763_v14 = vpop.permute.xlu2 %3683 }
 0x2e1   : > { %9422 = vst [vmem:[#allocation30_spill] sm:$0xff] %v6763_v14  ;;  %v2687_v46 = vpop.permute.xlu1 %2686  ;;  %v6829_v14 = vld [vmem:[%s5986_s18 + $0x10] sm:$0xff] }
 0x2e2   : > { %2720 = vmatpush.bf16.msra.mxu3 %v2687_v46 }
 0x2e4   : > { %v1506_v40 = vpop.f32.mrf.mxu0 }
 0x2e5   : > { %v1546_v21 = vmul.f32 %v1506_v40, %v6766_v19 }
 0x2e6   : > { %2721 = vmatpush.bf16.msra.mxu3 %v2685_v0 }
 0x2e7   : > { %v6784_v46 = vadd.f32 %v1578_v43, %v1546_v21  ;;  %v6799_v43 = vadd.f32 %v1575_v16, %v1543_v22  ;;  %v6806_v21 = vpop.f32.mrf.mxu3  ;;  %v2932_v22 = vsel %vm1368_vm5, %v6640_v59, 0 }
 0x2e8   : > { %v2875_v29 = vpop.permute.xlu0 %2874  ;;  %9424 = vst [vmem:[#allocation32_spill] sm:$0xff] %v6806_v21 }
 0x2e9   : > { %v6789_v20 = vpop.permute.xlu2 %2676  ;;  %v6791_v40 = vpop.permute.xlu1 %3687  ;;  %v2935_v27 = vsel %vm1368_vm5, %v2875_v29, 0  ;;  %v1644_v0 = vmax.f32 %v6782_v1, %v6784_v46  ;;  %v1641_v57 = vmax.f32 %v6799_v43, %v6797_v2  ;;  %v6804_v29 = vld [vmem:[%s5986_s18 + $0x50] sm:$0xff] }
 0x2ea   : > { %9423 = vst [vmem:[#allocation31_spill] sm:$0xff] %v6791_v40  ;;  %2973 = vmatpush.bf16.xpose.msrb.mxu1 %v2935_v27  ;;  %v1549_v16 = vmul.f32 %v6689_v18, %v6804_v29  ;;  %v1541_v18 = vmul.f32 %v6613_v60, %v6829_v14 }
 0x2eb   : > { %1645 = vmax.xlane.f32.xlu2 %v1644_v0  ;;  %v6819_v0 = vld [vmem:[%s5986_s18 + $0x58] sm:$0xff] }
 0x2ec   : > { %v1509_v13 = vpop.f32.mrf.mxu0  ;;  %v6833_v59 = vadd.f32 %v1581_v56, %v1549_v16 }
 0x2ee   : > { %9426 = vst [vmem:[#allocation34_spill] sm:$0xff] %v6833_v59 }
 0x2ef   : > { %v6851_v60 = vpop.f32.mrf.mxu3 }
 0x2f0   : > { %4894 = vmatmul.msk.bf16.gmra.mxu0 %vm1368_vm5, %v6590_v45  ;;  %v6810_v27 = vpop.permute.xlu0 %2888  ;;  %9428 = vst [vmem:[#allocation36_spill] sm:$0xff] %v6851_v60  ;;  %v6889_v60 = vld [vmem:[%s5986_s18 + $0x68] sm:$0xff] }
 0x2f1   : > { %v6812_v51 = vpop.permute.xlu2 %2674  ;;  %v6814_v39 = vpop.permute.xlu1 %2862  ;;  %1642 = vmax.xlane.f32.xlu1 %v1641_v57  ;;  %v1542_v57 = vmul.f32 %v1501_v15, %v6824_v17 }
 0x2f2   : > { %9425 = vst [vmem:[#allocation33_spill] sm:$0xff] %v6814_v39  ;;  %2974 = vmatpush.bf16.xpose.msrb.mxu1 %v2932_v22 }
 0x2f3   : > { %v6849_v15 = vadd.f32 %v1574_v49, %v1542_v57  ;;  %v6868_v57 = vld [vmem:[%s5986_s18 + $0x70] sm:$0xff] }
 0x2f4   : > { %v1511_v45 = vpop.f32.mrf.mxu0  ;;  %9429 = vst [vmem:[#allocation37_spill] sm:$0xff] %v6868_v57 }
 0x2f5   : > { %v1550_v39 = vmul.f32 %v1511_v45, %v6819_v0  ;;  %v2929_v45 = vsel %vm1368_vm5, %v6651_v47, 0  ;;  %v6859_v47 = vld [vmem:[%s5986_s18 + $0x40] sm:$0xff] }
 0x2f6   : > { %v1547_v49 = vmul.f32 %v6675_v10, %v6859_v47  ;;  %v2926_v10 = vsel %vm1368_vm5, %v6669_v3, 0 }
 0x2f7   : > { %v6835_v22 = vadd.f32 %v1582_v34, %v1550_v39  ;;  %v1573_v34 = vld [vmem:[%s5976_s13 + $0x10] sm:$0xff]  ;;  %v6854_v39 = vld [vmem:[%s5986_s18 + $0x48] sm:$0xff]  ;;  %v6898_v3 = vpop.f32.mrf.mxu3 }
 0x2f8   : > { %v6840_v40 = vpop.permute.xlu0 %2882  ;;  %v6856_v21 = vadd.f32 %v1573_v34, %v1541_v18  ;;  %v1548_v50 = vmul.f32 %v1509_v13, %v6854_v39  ;;  %v1579_v13 = vld [vmem:[%s5976_s13 + $0x40] sm:$0xff]  ;;  %9435 = vst [vmem:[#allocation43_spill] sm:$0xff] %v6898_v3 }
 0x2f9   : > { %9427 = vst [vmem:[#allocation35_spill] sm:$0xff] %v6835_v22  ;;  %v6842_v33 = vpop.permute.xlu2 %2700  ;;  %v2683_v9 = vpop.permute.xlu1 %2682  ;;  %v1650_v56 = vmax.f32 %v6833_v59, %v6835_v22  ;;  %v6884_v59 = vld [vmem:[%s5986_s18 + $0x78] sm:$0xff]  ;;  %v6915_v3 = vld [vmem:[%s5986_s18 + $0x80] sm:$0xff] }
 0x2fa   : > { %2722 = vmatpush.bf16.msra.mxu3 %v2683_v9  ;;  %2975 = vmatpush.bf16.xpose.msrb.mxu1 %v2929_v45  ;;  %v1638_v9 = vmax.f32 %v6856_v21, %v6849_v15  ;;  %v1580_v45 = vld [vmem:[%s5976_s13 + $0x48] sm:$0xff]  ;;  %9434 = vst [vmem:[#allocation42_spill] sm:$0xff] %v6884_v59 }
 0x2fb   : > { %1651 = vmax.xlane.f32.xlu2 %v1650_v56  ;;  %v6881_v22 = vadd.f32 %v1580_v45, %v1548_v50 }
 0x2fc   : > { %v1514_v16 = vpop.f32.mrf.mxu0 }
 0x2fd   : > { %9433 = vst [vmem:[#allocation41_spill] sm:$0xff] %v6881_v22  ;;  %v1552_v45 = vmul.f32 %v1514_v16, %v6889_v60 }
 0x300   : > { %4895 = vmatmul.msk.bf16.gmra.mxu0 %vm1368_vm5, %v6569_v42  ;;  %v6872_v18 = vpop.permute.xlu0 %3691  ;;  %1639 = vmax.xlane.f32.xlu0 %v1638_v9  ;;  %v1553_v42 = vmul.f32 %v6739_v24, %v6868_v57  ;;  %v6891_v9 = vadd.f32 %v1579_v13, %v1547_v49  ;;  %v1551_v13 = vmul.f32 %v6704_v28, %v6896_v7  ;;  %v6926_v28 = vld [vmem:[%s5986_s18 + $0x88] sm:$0xff] }
 0x301   : > { %9430 = vst [vmem:[#allocation38_spill] sm:$0xff] %v6872_v18  ;;  %v6875_v56 = vpop.permute.xlu2 %3679  ;;  %v6877_v34 = vpop.permute.xlu1 %3685  ;;  %v1586_v18 = vld [vmem:[%s5976_s13 + $0x78] sm:$0xff] }
 0x302   : > { %9431 = vst [vmem:[#allocation39_spill] sm:$0xff] %v6875_v56  ;;  %2976 = vmatpush.bf16.xpose.msrb.mxu1 %v2926_v10  ;;  %v1647_v24 = vmax.f32 %v6891_v9, %v6881_v22  ;;  %v1584_v10 = vld [vmem:[%s5976_s13 + $0x68] sm:$0xff] }
 0x303   : > { %9432 = vst [vmem:[#allocation40_spill] sm:$0xff] %v6877_v34  ;;  %v1585_v34 = vld [vmem:[%s5976_s13 + $0x70] sm:$0xff] }
 0x304   : > { %v1516_v56 = vpop.f32.mrf.mxu0  ;;  %v6905_v38 = vadd.f32 %v1585_v34, %v1553_v42  ;;  %v2923_v34 = vsel %vm1368_vm5, %v6671_v4, 0  ;;  %v6923_v42 = vadd.f32 %v1584_v10, %v1552_v45  ;;  %v1588_v4 = vld [vmem:[%s5976_s13 + $0x88] sm:$0xff]  ;;  %v6938_v10 = vpop.f32.mrf.mxu3 }
 0x305   : > { %v1554_v50 = vmul.f32 %v1516_v56, %v6884_v59  ;;  %v1583_v56 = vld [vmem:[%s5976_s13 + $0x60] sm:$0xff]  ;;  %9442 = vst [vmem:[#allocation50_spill] sm:$0xff] %v6938_v10 }
 0x306   : > { %9436 = vst [vmem:[#allocation44_spill] sm:$0xff] %v6905_v38 }
 0x307   : > { %v6907_v49 = vadd.f32 %v1586_v18, %v1554_v50  ;;  %9440 = vst [vmem:[#allocation48_spill] sm:$0xff] %v6923_v42  ;;  %v6928_v50 = vadd.f32 %v1583_v56, %v1551_v13 }
 0x308   : > { %v6911_v57 = vpop.permute.xlu0 %3705  ;;  %1648 = vmax.xlane.f32.xlu0 %v1647_v24  ;;  %v1555_v24 = vmul.f32 %v6754_v55, %v6915_v3 }
 0x309   : > { %9437 = vst [vmem:[#allocation45_spill] sm:$0xff] %v6907_v49  ;;  %v2557_v16 = vpop.permute.xlu2 %2556  ;;  %v6917_v59 = vpop.permute.xlu1 %3699  ;;  %v1656_v18 = vmax.f32 %v6905_v38, %v6907_v49  ;;  %v1653_v45 = vmax.f32 %v6928_v50, %v6923_v42  ;;  %v5160_v38 = vld [vmem:[#allocation3 + $0x68] sm:$0xf0] }
 0x30a   : > { %9438 = vst [vmem:[#allocation46_spill] sm:$0xff] %v6911_v57  ;;  %2623 = vmatpush.bf16.msra.mxu2 %v2557_v16  ;;  %2977 = vmatpush.bf16.xpose.msrb.mxu1 %v2923_v34  ;;  %v6955_v34 = vld [vmem:[%s5986_s18 + $0x98] sm:$0xff] }
 0x30b   : > { %9439 = vst [vmem:[#allocation47_spill] sm:$0xff] %v6917_v59  ;;  %1657 = vmax.xlane.f32.xlu2 %v1656_v18  ;;  %v1587_v59 = vld [vmem:[%s5976_s13 + $0x80] sm:$0xff]  ;;  %v1590_v18 = vld [vmem:[%s5976_s13 + $0x98] sm:$0xff] }
 0x30c   : > { %9441 = vst [vmem:[#allocation49_spill] sm:$0xff] %v6928_v50  ;;  %v6940_v13 = vadd.f32 %v1587_v59, %v1555_v24 }
 0x30d   : > { %v1519_v57 = vpop.f32.mrf.mxu0 }
 0x30e   : > { %v1556_v22 = vmul.f32 %v1519_v57, %v6926_v28  ;;  %2624 = vmatpush.bf16.msra.mxu2 %v6621_v61  ;;  %9443 = vst [vmem:[#allocation51_spill] sm:$0xff] %v6940_v13  ;;  %v6949_v57 = vld [vmem:[%s5986_s18 + $0x90] sm:$0xff] }
 0x30f   : > { %v1557_v59 = vmul.f32 %v6779_v23, %v6949_v57 }
 0x310   : > { %v6942_v56 = vadd.f32 %v1588_v4, %v1556_v22  ;;  %4896 = vmatmul.msk.bf16.gmra.mxu0 %vm1368_vm5, %v6519_v25  ;;  %v6946_v55 = vpop.permute.xlu0 %3689  ;;  %1654 = vmax.xlane.f32.xlu0 %v1653_v45  ;;  %v1589_v25 = vld [vmem:[%s5976_s13 + $0x90] sm:$0xff] }
 0x311   : > { %9445 = vst [vmem:[#allocation53_spill] sm:$0xff] %v6946_v55  ;;  %v2681_v61 = vpop.permute.xlu1 %2680 }
 0x312   : > { %9444 = vst [vmem:[#allocation52_spill] sm:$0xff] %v6942_v56  ;;  %2625 = vmatpush.bf16.msra.mxu2 %v6638_v58  ;;  %2723 = vmatpush.bf16.msra.mxu3 %v2681_v61  ;;  %v1659_v16 = vmax.f32 %v6940_v13, %v6942_v56  ;;  %v6965_v58 = vadd.f32 %v1589_v25, %v1557_v59  ;;  %v6969_v61 = vpop.f32.mrf.mxu3  ;;  %v4986_v13 = vld [vmem:[#allocation3 + $0x14] sm:$0xf] }
 0x313   : > { %9449 = vst [vmem:[#allocation57_spill] sm:$0xff] %v6969_v61  ;;  %v5156_v61 = vld [vmem:[#allocation3 + $0x28] sm:$0xf0] }
 0x314   : > { %1660 = vmax.xlane.f32.xlu1 %v1659_v16  ;;  %9447 = vst [vmem:[#allocation55_spill] sm:$0xff] %v6965_v58 }
 0x315   : > { %v1521_v22 = vpop.f32.mrf.mxu0 }
 0x316   : > { %v1558_v24 = vmul.f32 %v1521_v22, %v6955_v34  ;;  %2626 = vmatpush.bf16.msra.mxu2 %v6549_v30 }
 0x318   : > { %v6963_v4 = vpop.permute.xlu0 %3701  ;;  %v6967_v45 = vadd.f32 %v1590_v18, %v1558_v24  ;;  %v5161_v24 = vld [vmem:[#allocation3 + $0x78] sm:$0xf0] }
 0x319   : > { %9446 = vst [vmem:[#allocation54_spill] sm:$0xff] %v6963_v4  ;;  %v2679_v49 = vpop.permute.xlu1 %2678  ;;  %v7287_v4 = vld [vmem:[%s5986_s18 + $0xf8] sm:$0xff] }
 0x31a   : > { %9448 = vst [vmem:[#allocation56_spill] sm:$0xff] %v6967_v45  ;;  %2627 = vmatpush.bf16.msra.mxu2 %v6567_v41  ;;  %2724 = vmatpush.bf16.msra.mxu3 %v2679_v49  ;;  %v1662_v23 = vmax.f32 %v6965_v58, %v6967_v45  ;;  %v6986_v41 = vpop.f32.mrf.mxu3  ;;  %v5006_v45 = vld [vmem:[#allocation3 + $0x64] sm:$0xf]  ;;  %v5159_v58 = vld [vmem:[#allocation3 + $0x58] sm:$0xf0] }
 0x31b   : > { %9452 = vst [vmem:[#allocation60_spill] sm:$0xff] %v6986_v41 }
 0x31c   : > { %1663 = vmax.xlane.f32.xlu2 %v1662_v23  ;;  %v5010_v23 = vld [vmem:[#allocation3 + $0x74] sm:$0xf]  ;;  %9477 = vst [vmem:[#allocation81_spill] sm:$0xff] %v7287_v4 }
 0x31d   : > { %v6974_v16 = vpop.f32.mrf.mxu0  ;;  %v7006_v41 = vor.u32 %v5161_v24, %v5010_v23 }
 0x31e   : > { %2628 = vmatpush.bf16.msra.mxu2 %v6609_v8  ;;  %2725 = vmatpush.bf16.msra.mxu3 %v6789_v20 }
 0x31f   : > { %9457 = vst [vmem:[#allocation65_spill] sm:$0xff] %v7006_v41 }
 0x320   : > { %4897 = vmatmul.msk.bf16.gmra.mxu0 %vm1368_vm5, %v6607_v52  ;;  %v6980_v30 = vpop.permute.xlu0 %2864 }
 0x321   : > { %9450 = vst [vmem:[#allocation58_spill] sm:$0xff] %v6980_v30  ;;  %v6982_v59 = vpop.permute.xlu1 %3697 }
 0x322   : > { %9451 = vst [vmem:[#allocation59_spill] sm:$0xff] %v6982_v59  ;;  %2629 = vmatpush.bf16.msra.mxu2 %v6579_v5  ;;  %2726 = vmatpush.bf16.msra.mxu3 %v6812_v51  ;;  %v2052_v22 = vpop.f32.mrf.mxu3 }
 0x325   : > { %v6988_v49 = vpop.f32.mrf.mxu0 }
 0x326   : > { %2630 = vmatpush.bf16.msra.mxu2 %v6592_v36 }
 0x328   : > { %v6991_v8 = vpop.permute.xlu0 %3681 }
 0x329   : > { %9453 = vst [vmem:[#allocation61_spill] sm:$0xff] %v6991_v8  ;;  %v6993_v20 = vpop.permute.xlu1 %2696 }
 0x32a   : > { %v7004_v36 = vpop.f32.mrf.mxu3 }
 0x32d   : > { %v6995_v52 = vpop.f32.mrf.mxu0 }
 0x32e   : > { %9454 = vst [vmem:[#allocation62_spill] sm:$0xff] %v6995_v52 }
 0x330   : > { %4898 = vmatmul.msk.bf16.gmra.mxu0 %vm1368_vm5, %v6582_v44  ;;  %v6999_v25 = vpop.permute.xlu0 %3695  ;;  %v2965_v44 = vsel %vm1368_vm5, %v6708_v37, 0  ;;  %v5158_v37 = vld [vmem:[#allocation3 + $0x48] sm:$0xf0] }
 0x331   : > { %9455 = vst [vmem:[#allocation63_spill] sm:$0xff] %v6999_v25  ;;  %v2897_v5 = vpop.permute.xlu1 %2896  ;;  %v5002_v25 = vld [vmem:[#allocation3 + $0x54] sm:$0xf] }
 0x332   : > { %v2968_v51 = vsel %vm1368_vm5, %v2897_v5, 0  ;;  %v7011_v5 = vor.u32 %v5160_v38, %v5006_v45  ;;  %v7018_v24 = vor.u32 %v5159_v58, %v5002_v25  ;;  %v7020_v23 = vpop.f32.mrf.mxu3  ;;  %v4998_v38 = vld [vmem:[#allocation3 + $0x44] sm:$0xf] }
 0x333   : > { %3019 = vmatpush.bf16.xpose.msrb.mxu2 %v2968_v51  ;;  %v7025_v45 = vor.u32 %v5158_v37, %v4998_v38  ;;  %v4990_v38 = vld [vmem:[#allocation3 + $0x24] sm:$0xf] }
 0x334   : > { %9458 = vst [vmem:[#allocation66_spill] sm:$0xff] %v7011_v5 }
 0x335   : > { %v7002_v18 = vpop.f32.mrf.mxu0  ;;  %9460 = vst [vmem:[#allocation68_spill] sm:$0xff] %v7018_v24 }
 0x336   : > { %9456 = vst [vmem:[#allocation64_spill] sm:$0xff] %v7002_v18  ;;  %v4928_v18 = vld [vmem:[%s5976_s13 + $0x1e0] sm:$0xff] }
 0x337   : > { %9461 = vst [vmem:[#allocation69_spill] sm:$0xff] %v7025_v45 }
 0x338   : > { %v2673_v30 = vpop.permute.xlu0 %2672 }
 0x339   : > { %2727 = vmatpush.bf16.msra.mxu3 %v2673_v30 }
 0x33a   : > { %v7035_v37 = vpop.f32.mrf.mxu3 }
 0x33b   : > { %3020 = vmatpush.bf16.xpose.msrb.mxu2 %v2965_v44  ;;  %v2962_v44 = vsel %vm1368_vm5, %v6732_v48, 0  ;;  %v2959_v48 = vsel %vm1368_vm5, %v6761_v12, 0  ;;  %v5155_v12 = vld [vmem:[#allocation3 + $0x18] sm:$0xf0] }
 0x33d   : > { %3549 = vmatpush.bf16.msrb.mxu3 %v7006_v41  ;;  %v7013_v51 = vpop.f32.mrf.mxu0 }
 0x33e   : > { %9459 = vst [vmem:[#allocation67_spill] sm:$0xff] %v7013_v51  ;;  %v4901_v51 = vld [vmem:[%s5976_s13 + $0x108] sm:$0xff] }
 0x340   : > { %4899 = vmatmul.msk.bf16.gmra.mxu0 %vm1368_vm5, %v6529_v26  ;;  %v2699_v30 = vpop.permute.xlu0 %2698  ;;  %v4994_v26 = vld [vmem:[#allocation3 + $0x34] sm:$0xf] }
 0x341   : > { %3550 = vmatpush.bf16.msrb.mxu3 %v7011_v5  ;;  %v5157_v5 = vld [vmem:[#allocation3 + $0x38] sm:$0xf0] }
 0x342   : > { %v7030_v25 = vor.u32 %v5157_v5, %v4994_v26  ;;  %v7040_v5 = vor.u32 %v5156_v61, %v4990_v38  ;;  %v4900_v26 = vld [vmem:[%s5976_s13 + $0x100] sm:$0xff]  ;;  %v5154_v61 = vld [vmem:[#allocation3 + $0x8] sm:$0xf0]  ;;  %v2145_v38 = vmul.f32 %v7020_v23, %v6777_v53 }
 0x343   : > { %3021 = vmatpush.bf16.xpose.msrb.mxu2 %v2962_v44 }
 0x344   : > { %9463 = vst [vmem:[#allocation71_spill] sm:$0xff] %v7030_v25 }
 0x345   : > { %3551 = vmatpush.bf16.msrb.mxu3 %v7018_v24  ;;  %v7027_v41 = vpop.f32.mrf.mxu0  ;;  %9464 = vst [vmem:[#allocation72_spill] sm:$0xff] %v7040_v5 }
 0x346   : > { %9462 = vst [vmem:[#allocation70_spill] sm:$0xff] %v7027_v41 }
 0x348   : > { %v2703_v58 = vpop.permute.xlu0 %2702 }
 0x349   : > { %3552 = vmatpush.bf16.msrb.mxu3 %v7025_v45  ;;  %2769 = vmatpush.bf16.msrb.mxu0 %v2703_v58  ;;  %v2141_v45 = vmul.f32 %v2052_v22, %v6722_v35  ;;  %v4982_v22 = vld [vmem:[#allocation3 + $0x4] sm:$0xf] }
 0x34b   : > { %3022 = vmatpush.bf16.xpose.msrb.mxu2 %v2959_v48  ;;  %v1637_v44 = vpop.xlane.xlu2 %1636  ;;  %v7047_v35 = vadd.f32 %v4900_v26, %v2141_v45  ;;  %v4903_v45 = vld [vmem:[%s5976_s13 + $0x118] sm:$0xff] }
 0x34c   : > { %v1683_v24 = vsub.f32 %v6743_v11, %v1637_v44  ;;  %v1684_v41 = vsub.f32 %v6741_v54, %v1637_v44  ;;  %v7051_v54 = vor.u32 %v5155_v12, %v4986_v13  ;;  %v7060_v13 = vor.u32 %v5154_v61, %v4982_v22  ;;  %v4902_v44 = vld [vmem:[%s5976_s13 + $0x110] sm:$0xff] }
 0x34d   : > { %3553 = vmatpush.bf16.msrb.mxu3 %v7030_v25  ;;  %v2101_v58 = vpop.f32.mrf.mxu0  ;;  %2770 = vmatpush.bf16.msrb.mxu0 %v6842_v33  ;;  %v2956_v33 = vsel %vm1368_vm5, %v6810_v27, 0 }
 0x34e   : > { %v1715_v25 = vmul.f32 1.442695, %v1683_v24  ;;  %v1717_v56 = vmul.f32 1.442695, %v1684_v41  ;;  %v2142_v48 = vmul.f32 %v2101_v58, %v6719_v32  ;;  %9465 = vst [vmem:[#allocation73_spill] sm:$0xff] %v7051_v54  ;;  %v7058_v41 = vpop.f32.mrf.mxu3  ;;  %v4904_v58 = vld [vmem:[%s5976_s13 + $0x120] sm:$0xff] }
 0x34f   : > { %9466 = vst [vmem:[#allocation74_spill] sm:$0xff] %v7060_v13 }
 0x350   : > { %5241 = vpow2.f32 %v1715_v25  ;;  %v7049_v11 = vadd.f32 %v4901_v51, %v2142_v48  ;;  %v2143_v25 = vmul.f32 %v7004_v36, %v6829_v14  ;;  %v4905_v48 = vld [vmem:[%s5976_s13 + $0x128] sm:$0xff]  ;;  %v7088_v36 = vadd.f32 %v4904_v58, %v2145_v38 }
 0x351   : > { %3554 = vmatpush.bf16.msrb.mxu3 %v7040_v5  ;;  %5243 = vpow2.f32 %v1717_v56  ;;  %2771 = vmatpush.bf16.msrb.mxu0 %v2699_v30 }
 0x352   : > { %v2238_v32 = vmax.f32 %v7047_v35, %v7049_v11 }
 0x353   : > { %3023 = vmatpush.bf16.xpose.msrb.mxu2 %v2956_v33 }
 0x354   : > { %2239 = vmax.xlane.f32.xlu0 %v2238_v32  ;;  %v7084_v32 = vadd.f32 %v4902_v44, %v2143_v25 }
 0x355   : > { %3555 = vmatpush.bf16.msrb.mxu3 %v7051_v54  ;;  %v2103_v56 = vpop.f32.mrf.mxu0  ;;  %2772 = vmatpush.bf16.msrb.mxu0 %v6993_v20  ;;  %v2953_v20 = vsel %vm1368_vm5, %v6642_v62, 0  ;;  %v7249_v54 = vld [vmem:[%s5986_s18 + $0xd8] sm:$0xff] }
 0x356   : > { %v7063_v51 = vpop.eup %5241  ;;  %v2144_v30 = vmul.f32 %v2103_v56, %v6824_v17  ;;  %v2064_v17 = vpop.f32.mrf.mxu3  ;;  %9472 = vst [vmem:[#allocation76_spill] sm:$0xff] %v7249_v54 }
 0x357   : > { %v7066_v27 = vpop.eup %5243 }
 0x358   : > { %v1779_v24 = vadd.f32 %v7066_v27, %v7063_v51  ;;  %v7079_v26 = vadd.f32 %v4903_v45, %v2144_v30  ;;  %v4907_v45 = vld [vmem:[%s5976_s13 + $0x138] sm:$0xff] }
 0x359   : > { %3556 = vmatpush.bf16.msrb.mxu3 %v7060_v13 }
 0x35a   : > { %1780 = vadd.xlane.f32.xlu1 %v1779_v24  ;;  %v2241_v23 = vmax.f32 %v7084_v32, %v7079_v26  ;;  %v4906_v24 = vld [vmem:[%s5976_s13 + $0x130] sm:$0xff] }
 0x35b   : > { %3024 = vmatpush.bf16.xpose.msrb.mxu2 %v2953_v20 }
 0x35d   : > { %v2106_v12 = vpop.f32.mrf.mxu0 }
 0x35e   : > { %v2146_v61 = vmul.f32 %v2106_v12, %v6771_v31  ;;  %v1646_v33 = vpop.xlane.xlu2 %1645  ;;  %v2950_v31 = vsel %vm1368_vm5, %v6655_v63, 0  ;;  %v2067_v20 = vpop.f32.mrf.mxu3 }
 0x35f   : > { %v1689_v14 = vsub.f32 %v6782_v1, %v1646_v33  ;;  %v1690_v62 = vsub.f32 %v6784_v46, %v1646_v33  ;;  %v2147_v46 = vmul.f32 %v7035_v37, %v6757_v6  ;;  %v2947_v6 = vsel %vm1368_vm5, %v6840_v40, 0  ;;  %v7115_v12 = vpop.permute.xlu1 %3709 }
 0x360   : > { %v7090_v53 = vadd.f32 %v4905_v48, %v2146_v61 }
 0x361   : > { %v1727_v22 = vmul.f32 1.442695, %v1689_v14  ;;  %v1729_v56 = vmul.f32 1.442695, %v1690_v62  ;;  %v7103_v44 = vadd.f32 %v4906_v24, %v2147_v46  ;;  %v2151_v62 = vmul.f32 %v2064_v17, %v6804_v29 }
 0x362   : > { %2242 = vmax.xlane.f32.xlu1 %v2241_v23  ;;  %v2244_v1 = vmax.f32 %v7088_v36, %v7090_v53 }
 0x363   : > { %5245 = vpow2.f32 %v1727_v22  ;;  %3025 = vmatpush.bf16.xpose.msrb.mxu2 %v2950_v31  ;;  %v4911_v31 = vld [vmem:[%s5976_s13 + $0x158] sm:$0xff] }
 0x364   : > { %5247 = vpow2.f32 %v1729_v56  ;;  %2245 = vmax.xlane.f32.xlu2 %v2244_v1  ;;  %v4910_v56 = vld [vmem:[%s5976_s13 + $0x150] sm:$0xff] }
 0x365   : > { %v2108_v30 = vpop.f32.mrf.mxu0 }
 0x366   : > { %v2148_v25 = vmul.f32 %v2108_v30, %v6766_v19  ;;  %v2069_v61 = vpop.f32.mrf.mxu3 }
 0x367   : > { %v1643_v33 = vpop.xlane.xlu1 %1642 }
 0x368   : > { %v7105_v38 = vadd.f32 %v4907_v45, %v2148_v25  ;;  %v1687_v1 = vsub.f32 %v6799_v43, %v1643_v33  ;;  %v1688_v45 = vsub.f32 %v6797_v2, %v1643_v33  ;;  %v7127_v25 = vadd.f32 %v4910_v56, %v2151_v62 }
 0x369   : > { %v7107_v63 = vpop.eup %5245  ;;  %v2153_v43 = vmul.f32 %v2067_v20, %v6896_v7 }
 0x36a   : > { %v7109_v58 = vpop.eup %5247  ;;  %v2247_v37 = vmax.f32 %v7103_v44, %v7105_v38 }
 0x36b   : > { %3026 = vmatpush.bf16.xpose.msrb.mxu2 %v2947_v6  ;;  %v1788_v19 = vadd.f32 %v7109_v58, %v7107_v63  ;;  %v1725_v6 = vmul.f32 1.442695, %v1688_v45 }
 0x36c   : > { %2248 = vmax.xlane.f32.xlu2 %v2247_v37 }
 0x36d   : > { %v2111_v48 = vpop.f32.mrf.mxu0  ;;  %1789 = vadd.xlane.f32.xlu1 %v1788_v19  ;;  %v4913_v19 = vld [vmem:[%s5976_s13 + $0x168] sm:$0xff] }
 0x36e   : > { %v2072_v17 = vpop.f32.mrf.mxu3 }
 0x36f   : > { %v2157_v45 = vmul.f32 %v2072_v17, %v6915_v3  ;;  %v4915_v17 = vld [vmem:[%s5976_s13 + $0x178] sm:$0xff] }
 0x373   : > { %v1640_v14 = vpop.xlane.xlu0 %1639 }
 0x374   : > { %v1685_v40 = vsub.f32 %v6856_v21, %v1640_v14  ;;  %v1686_v23 = vsub.f32 %v6849_v15, %v1640_v14  ;;  %v1723_v21 = vmul.f32 1.442695, %v1687_v1 }
 0x375   : > { %v2113_v22 = vpop.f32.mrf.mxu0 }
 0x376   : > { %v2152_v46 = vmul.f32 %v2113_v22, %v6819_v0  ;;  %v1719_v30 = vmul.f32 1.442695, %v1685_v40  ;;  %v1721_v24 = vmul.f32 1.442695, %v1686_v23  ;;  %v4912_v0 = vld [vmem:[%s5976_s13 + $0x160] sm:$0xff]  ;;  %v2074_v22 = vpop.f32.mrf.mxu3 }
 0x377   : > { %v7141_v62 = vadd.f32 %v4912_v0, %v2153_v43  ;;  %v4917_v43 = vld [vmem:[%s5976_s13 + $0x188] sm:$0xff] }
 0x378   : > { %5249 = vpow2.f32 %v1719_v30  ;;  %v7129_v29 = vadd.f32 %v4911_v31, %v2152_v46  ;;  %v2150_v31 = vmul.f32 %v2111_v48, %v6854_v39  ;;  %v4909_v46 = vld [vmem:[%s5976_s13 + $0x148] sm:$0xff]  ;;  %v2149_v30 = vmul.f32 %v7058_v41, %v6859_v47 }
 0x379   : > { %5251 = vpow2.f32 %v1721_v24  ;;  %v4908_v24 = vld [vmem:[%s5976_s13 + $0x140] sm:$0xff] }
 0x37a   : > { %v2253_v15 = vmax.f32 %v7127_v25, %v7129_v29  ;;  %5253 = vpow2.f32 %v1723_v21  ;;  %v7161_v21 = vadd.f32 %v4909_v46, %v2150_v31  ;;  %v7165_v0 = vadd.f32 %v4908_v24, %v2149_v30  ;;  %v4919_v24 = vld [vmem:[%s5976_s13 + $0x198] sm:$0xff] }
 0x37b   : > { %5255 = vpow2.f32 %v1725_v6  ;;  %v7251_v5 = vpop.xlane.xlu0 %1648 }
 0x37c   : > { %2254 = vmax.xlane.f32.xlu1 %v2253_v15  ;;  %v4916_v15 = vld [vmem:[%s5976_s13 + $0x180] sm:$0xff]  ;;  %v2250_v3 = vmax.f32 %v7165_v0, %v7161_v21 }
 0x37d   : > { %v2116_v37 = vpop.f32.mrf.mxu0 }
 0x37e   : > { %v7136_v14 = vpop.eup %5249  ;;  %v2154_v2 = vmul.f32 %v2116_v37, %v6889_v60  ;;  %v2077_v48 = vpop.f32.mrf.mxu3  ;;  %v7168_v37 = vadd.f32 %v4916_v15, %v2157_v45  ;;  %v2159_v45 = vmul.f32 %v2074_v22, %v6949_v57  ;;  %v7190_v15 = vld [vmem:[%s5986_s18 + $0xa0] sm:$0xff] }
 0x37f   : > { %v7139_v33 = vpop.eup %5251 }
 0x380   : > { %v7143_v40 = vadd.f32 %v4913_v19, %v2154_v2  ;;  %v1782_v7 = vadd.f32 %v7139_v33, %v7136_v14  ;;  %v7149_v23 = vpop.eup %5253  ;;  %v9467_v19 = vld [vmem:[#allocation42_spill] sm:$0xff]  ;;  %v9468_v2 = vld [vmem:[#allocation37_spill] sm:$0xff] }
 0x381   : > { %v7151_v60 = vpop.eup %5255 }
 0x382   : > { %1783 = vadd.xlane.f32.xlu0 %v1782_v7  ;;  %v2256_v20 = vmax.f32 %v7141_v62, %v7143_v40  ;;  %v1785_v1 = vadd.f32 %v7151_v60, %v7149_v23  ;;  %v2155_v7 = vmul.f32 %v2069_v61, %v9468_v2 }
 0x384   : > { %2257 = vmax.xlane.f32.xlu1 %v2256_v20  ;;  %v4914_v20 = vld [vmem:[%s5976_s13 + $0x170] sm:$0xff] }
 0x385   : > { %v2118_v56 = vpop.f32.mrf.mxu0 }
 0x386   : > { %v2156_v47 = vmul.f32 %v2118_v56, %v9467_v19  ;;  %v2079_v61 = vpop.f32.mrf.mxu3  ;;  %v7197_v19 = vld [vmem:[%s5986_s18 + $0xa8] sm:$0xff] }
 0x388   : > { %v7180_v31 = vadd.f32 %v4915_v17, %v2156_v47 }
 0x38a   : > { %1786 = vadd.xlane.f32.xlu0 %v1785_v1  ;;  %v7182_v1 = vadd.f32 %v4914_v20, %v2155_v7 }
 0x38c   : > { %v2259_v30 = vmax.f32 %v7182_v1, %v7180_v31 }
 0x38d   : > { %v2121_v6 = vpop.f32.mrf.mxu0 }
 0x38e   : > { %v2158_v39 = vmul.f32 %v2121_v6, %v6926_v28  ;;  %v4918_v6 = vld [vmem:[%s5976_s13 + $0x190] sm:$0xff]  ;;  %v2082_v20 = vpop.f32.mrf.mxu3 }
 0x38f   : > { %v7202_v57 = vadd.f32 %v4918_v6, %v2159_v45  ;;  %v4923_v45 = vld [vmem:[%s5976_s13 + $0x1b8] sm:$0xff] }
 0x390   : > { %v7171_v41 = vadd.f32 %v4917_v43, %v2158_v39  ;;  %v2161_v43 = vmul.f32 %v2077_v48, %v7190_v15 }
 0x392   : > { %2251 = vmax.xlane.f32.xlu0 %v2250_v3  ;;  %v2262_v28 = vmax.f32 %v7168_v37, %v7171_v41  ;;  %v4921_v3 = vld [vmem:[%s5976_s13 + $0x1a8] sm:$0xff] }
 0x394   : > { %2263 = vmax.xlane.f32.xlu1 %v2262_v28  ;;  %v7213_v28 = vld [vmem:[%s5986_s18 + $0xb0] sm:$0xff] }
 0x395   : > { %v2123_v56 = vpop.f32.mrf.mxu0 }
 0x396   : > { %v2160_v46 = vmul.f32 %v2123_v56, %v6955_v34  ;;  %v4920_v34 = vld [vmem:[%s5976_s13 + $0x1a0] sm:$0xff]  ;;  %v2163_v56 = vmul.f32 %v2079_v61, %v7213_v28 }
 0x397   : > { %v7204_v22 = vadd.f32 %v4920_v34, %v2161_v43 }
 0x398   : > { %v7194_v39 = vadd.f32 %v4919_v24, %v2160_v46  ;;  %v7217_v46 = vld [vmem:[%s5986_s18 + $0xb8] sm:$0xff]  ;;  %v4922_v24 = vld [vmem:[%s5976_s13 + $0x1b0] sm:$0xff] }
 0x399   : > { %v7222_v43 = vadd.f32 %v4922_v24, %v2163_v56  ;;  %v4925_v56 = vld [vmem:[%s5976_s13 + $0x1c8] sm:$0xff] }
 0x39a   : > { %2260 = vmax.xlane.f32.xlu0 %v2259_v30  ;;  %v2265_v48 = vmax.f32 %v7202_v57, %v7194_v39 }
 0x39d   : > { %v2126_v47 = vpop.f32.mrf.mxu0 }
 0x39e   : > { %v2162_v17 = vmul.f32 %v2126_v47, %v7197_v19 }
 0x3a0   : > { %v7206_v2 = vadd.f32 %v4921_v3, %v2162_v17  ;;  %v7229_v3 = vld [vmem:[%s5986_s18 + $0xc0] sm:$0xff]  ;;  %v7233_v17 = vld [vmem:[%s5986_s18 + $0xc8] sm:$0xff] }
 0x3a1   : > { %9469 = vst [vmem:[#allocation42_spill] sm:$0xff] %v7229_v3  ;;  %v2165_v61 = vmul.f32 %v2082_v20, %v7229_v3  ;;  %v7245_v20 = vld [vmem:[%s5986_s18 + $0xd0] sm:$0xff] }
 0x3a2   : > { %2266 = vmax.xlane.f32.xlu0 %v2265_v48  ;;  %v2268_v7 = vmax.f32 %v7204_v22, %v7206_v2  ;;  %9470 = vst [vmem:[#allocation37_spill] sm:$0xff] %v7233_v17  ;;  %v4924_v48 = vld [vmem:[%s5976_s13 + $0x1c0] sm:$0xff]  ;;  %v4930_v3 = vld [vmem:[%s5976_s13 + $0x1f0] sm:$0xff] }
 0x3a3   : > { %9471 = vst [vmem:[#allocation75_spill] sm:$0xff] %v7245_v20 }
 0x3a4   : > { %2269 = vmax.xlane.f32.xlu1 %v2268_v7  ;;  %v2084_v7 = vpop.f32.mrf.mxu3 }
 0x3a5   : > { %v2128_v30 = vpop.f32.mrf.mxu0 }
 0x3a6   : > { %v2164_v6 = vmul.f32 %v2128_v30, %v7217_v46 }
 0x3a8   : > { %v7224_v34 = vadd.f32 %v4923_v45, %v2164_v6  ;;  %v7238_v45 = vadd.f32 %v4924_v48, %v2165_v61  ;;  %v4926_v48 = vld [vmem:[%s5976_s13 + $0x1d0] sm:$0xff] }
 0x3aa   : > { %v2271_v47 = vmax.f32 %v7222_v43, %v7224_v34 }
 0x3ac   : > { %2272 = vmax.xlane.f32.xlu1 %v2271_v47  ;;  %v2167_v47 = vmul.f32 %v2084_v7, %v7245_v20  ;;  %v7267_v20 = vld [vmem:[%s5986_s18 + $0xe8] sm:$0xff] }
 0x3ad   : > { %v2131_v30 = vpop.f32.mrf.mxu0  ;;  %9474 = vst [vmem:[#allocation78_spill] sm:$0xff] %v7267_v20 }
 0x3ae   : > { %v2166_v24 = vmul.f32 %v2131_v30, %v7233_v17  ;;  %v4927_v30 = vld [vmem:[%s5976_s13 + $0x1d8] sm:$0xff]  ;;  %v7256_v59 = vadd.f32 %v4926_v48, %v2167_v47  ;;  %v4929_v47 = vld [vmem:[%s5976_s13 + $0x1e8] sm:$0xff] }
 0x3b0   : > { %v7240_v6 = vadd.f32 %v4925_v56, %v2166_v24  ;;  %v2087_v24 = vpop.f32.mrf.mxu3 }
 0x3b2   : > { %v2274_v13 = vmax.f32 %v7238_v45, %v7240_v6 }
 0x3b4   : > { %2275 = vmax.xlane.f32.xlu1 %v2274_v13  ;;  %v7263_v13 = vld [vmem:[%s5986_s18 + $0xe0] sm:$0xff] }
 0x3b5   : > { %v2133_v61 = vpop.f32.mrf.mxu0  ;;  %9473 = vst [vmem:[#allocation77_spill] sm:$0xff] %v7263_v13  ;;  %v2169_v10 = vmul.f32 %v2087_v24, %v7263_v13  ;;  %v7283_v13 = vld [vmem:[%s5986_s18 + $0xf0] sm:$0xff] }
 0x3b6   : > { %v2168_v56 = vmul.f32 %v2133_v61, %v7249_v54  ;;  %9476 = vst [vmem:[#allocation80_spill] sm:$0xff] %v7283_v13 }
 0x3b7   : > { %v7276_v54 = vadd.f32 %v4928_v18, %v2169_v10 }
 0x3b8   : > { %v7258_v8 = vadd.f32 %v4927_v30, %v2168_v56  ;;  %v7272_v30 = vpop.xlane.xlu2 %1651  ;;  %v7274_v56 = vpop.xlane.xlu0 %1654 }
 0x3b9   : > { %9475 = vst [vmem:[#allocation79_spill] sm:$0xff] %v7274_v56  ;;  %v2089_v24 = vpop.f32.mrf.mxu3  ;;  %v4931_v56 = vld [vmem:[%s5976_s13 + $0x1f8] sm:$0xff] }
 0x3ba   : > { %v2277_v7 = vmax.f32 %v7256_v59, %v7258_v8  ;;  %v2171_v50 = vmul.f32 %v2089_v24, %v7283_v13 }
 0x3bc   : > { %2278 = vmax.xlane.f32.xlu2 %v2277_v7  ;;  %v7298_v17 = vadd.f32 %v4930_v3, %v2171_v50 }
 0x3bd   : > { %v2136_v61 = vpop.f32.mrf.mxu0 }
 0x3be   : > { %v2170_v48 = vmul.f32 %v2136_v61, %v7267_v20  ;;  %v7289_v61 = vpop.xlane.xlu1 %1660 }
 0x3bf   : > { %9478 = vst [vmem:[#allocation82_spill] sm:$0xff] %v7289_v61 }
 0x3c0   : > { %v7278_v42 = vadd.f32 %v4929_v47, %v2170_v48  ;;  %v7294_v18 = vpop.xlane.xlu2 %1657 }
 0x3c1   : > { %9479 = vst [vmem:[#allocation83_spill] sm:$0xff] %v7294_v18 }
 0x3c2   : > { %v2280_v7 = vmax.f32 %v7276_v54, %v7278_v42 }
 0x3c4   : > { %2281 = vmax.xlane.f32.xlu1 %v2280_v7 }
 0x3c5   : > { %v2138_v20 = vpop.f32.mrf.mxu0 }
 0x3c6   : > { %v2172_v10 = vmul.f32 %v2138_v20, %v7287_v4 }
 0x3c7   : > { %v2240_v47 = vpop.xlane.xlu0 %2239 }
 0x3c8   : > { %v2286_v48 = vsub.f32 %v7047_v35, %v2240_v47  ;;  %v2287_v52 = vsub.f32 %v7049_v11, %v2240_v47  ;;  %v7300_v24 = vadd.f32 %v4931_v56, %v2172_v10  ;;  %v7304_v4 = vpop.xlane.xlu2 %1663 }
 0x3c9   : > { %9480 = vst [vmem:[#allocation84_spill] sm:$0xff] %v7304_v4 }
 0x3ca   : > { %v2318_v7 = vmul.f32 1.442695, %v2286_v48  ;;  %v2320_v13 = vmul.f32 1.442695, %v2287_v52  ;;  %v2283_v61 = vmax.f32 %v7298_v17, %v7300_v24 }
 0x3cc   : > { %5257 = vpow2.f32 %v2318_v7  ;;  %2284 = vmax.xlane.f32.xlu2 %v2283_v61 }
 0x3cd   : > { %5259 = vpow2.f32 %v2320_v13  ;;  %v1781_v20 = vpop.xlane.xlu1 %1780 }
 0x3d2   : > { %v7306_v18 = vpop.eup %5257 }
 0x3d3   : > { %v7308_v35 = vpop.eup %5259 }
 0x3d4   : > { %v2382_v50 = vadd.f32 %v7308_v35, %v7306_v18 }
 0x3d5   : > { %v2243_v11 = vpop.xlane.xlu1 %2242 }
 0x3d6   : > { %v2288_v3 = vsub.f32 %v7084_v32, %v2243_v11  ;;  %v2289_v52 = vsub.f32 %v7079_v26, %v2243_v11  ;;  %2383 = vadd.xlane.f32.xlu2 %v2382_v50 }
 0x3d7   : > { %v2246_v56 = vpop.xlane.xlu2 %2245 }
 0x3d8   : > { %v2322_v10 = vmul.f32 1.442695, %v2288_v3  ;;  %v2324_v61 = vmul.f32 1.442695, %v2289_v52  ;;  %v2290_v13 = vsub.f32 %v7088_v36, %v2246_v56  ;;  %v2291_v47 = vsub.f32 %v7090_v53, %v2246_v56 }
 0x3da   : > { %5261 = vpow2.f32 %v2322_v10  ;;  %v2326_v48 = vmul.f32 1.442695, %v2290_v13  ;;  %v2328_v7 = vmul.f32 1.442695, %v2291_v47 }
 0x3db   : > { %5263 = vpow2.f32 %v2324_v61 }
 0x3dc   : > { %5265 = vpow2.f32 %v2326_v48 }
 0x3dd   : > { %5267 = vpow2.f32 %v2328_v7 }
 0x3df   : > { %v2249_v4 = vpop.xlane.xlu2 %2248 }
 0x3e0   : > { %v7316_v55 = vpop.eup %5261  ;;  %v2292_v32 = vsub.f32 %v7103_v44, %v2249_v4  ;;  %v2293_v26 = vsub.f32 %v7105_v38, %v2249_v4  ;;  %v1790_v44 = vpop.xlane.xlu1 %1789 }
 0x3e1   : > { %v7320_v50 = vpop.eup %5263 }
 0x3e2   : > { %v7322_v11 = vpop.eup %5265  ;;  %v2330_v36 = vmul.f32 1.442695, %v2292_v32  ;;  %v2332_v3 = vmul.f32 1.442695, %v2293_v26  ;;  %v2385_v53 = vadd.f32 %v7320_v50, %v7316_v55 }
 0x3e3   : > { %v7326_v52 = vpop.eup %5267 }
 0x3e4   : > { %5269 = vpow2.f32 %v2330_v36  ;;  %2386 = vadd.xlane.f32.xlu1 %v2385_v53  ;;  %v2388_v56 = vadd.f32 %v7326_v52, %v7322_v11 }
 0x3e5   : > { %5271 = vpow2.f32 %v2332_v3 }
 0x3e6   : > { %2389 = vadd.xlane.f32.xlu2 %v2388_v56  ;;  %5273 = vrcp.f32 %v1781_v20  ;;  %v7352_v56 = vld [vmem:[%s7344_s26 + $0x8] sm:$0xff] }
 0x3ea   : > { %v7330_v4 = vpop.eup %5269 }
 0x3eb   : > { %v7332_v38 = vpop.eup %5271 }
 0x3ec   : > { %v2391_v10 = vadd.f32 %v7332_v38, %v7330_v4  ;;  %v5274_v26 = vpop.eup %5273 }
 0x3ed   : > { %v1844_v20 = vmul.f32 %v5274_v26, %v7066_v27 }
 0x3ee   : > { %2392 = vadd.xlane.f32.xlu1 %v2391_v10  ;;  %v7355_v10 = vld [vmem:[%s7344_s26 + $0x10] sm:$0xff] }
 0x3ef   : > { %v2255_v61 = vpop.xlane.xlu1 %2254  ;;  %v7366_v27 = vmul.f32 %v1844_v20, %v7352_v56 }
 0x3f0   : > { %v2296_v13 = vsub.f32 %v7127_v25, %v2255_v61  ;;  %v2297_v47 = vsub.f32 %v7129_v29, %v2255_v61  ;;  %v7347_v25 = vld [vmem:[%s7344_s26] sm:$0xff]  ;;  %v1843_v29 = vmul.f32 %v5274_v26, %v7063_v51 }
 0x3f1   : > { %9483 = vst [vmem:[#allocation87_spill] sm:$0xff] %v7366_v27 }
 0x3f2   : > { %v2338_v48 = vmul.f32 1.442695, %v2296_v13  ;;  %v2340_v7 = vmul.f32 1.442695, %v2297_v47  ;;  %v1875_v51 = vmul.f32 %v1843_v29, %v7347_v25  ;;  %v7379_v29 = vld [vmem:[%s7344_s26 + $0x38] sm:$0xff] }
 0x3f4   : > { %5275 = vpow2.f32 %v2338_v48 }
 0x3f5   : > { %5277 = vpow2.f32 %v2340_v7  ;;  %v1784_v32 = vpop.xlane.xlu0 %1783 }
 0x3f6   : > { %5279 = vrcp.f32 %v1784_v32 }
 0x3f7   : > { %5281 = vrcp.f32 %v1790_v44  ;;  %v7358_v44 = vld [vmem:[%s7344_s26 + $0x18] sm:$0xff]  ;;  %v2258_v20 = vpop.xlane.xlu1 %2257 }
 0x3fa   : > { %v7338_v36 = vpop.eup %5275 }
 0x3fb   : > { %9481 = vst [vmem:[#allocation85_spill] sm:$0xff] %v7338_v36  ;;  %v7340_v3 = vpop.eup %5277 }
 0x3fc   : > { %9482 = vst [vmem:[#allocation86_spill] sm:$0xff] %v7340_v3  ;;  %v5280_v53 = vpop.eup %5279  ;;  %v2397_v61 = vadd.f32 %v7340_v3, %v7338_v36 }
 0x3fd   : > { %v1845_v13 = vmul.f32 %v5280_v53, %v7136_v14  ;;  %v1846_v47 = vmul.f32 %v5280_v53, %v7139_v33  ;;  %v1787_v48 = vpop.xlane.xlu0 %1786  ;;  %v5282_v26 = vpop.eup %5281 }
 0x3fe   : > { %2398 = vadd.xlane.f32.xlu0 %v2397_v61  ;;  %5283 = vrcp.f32 %v1787_v48  ;;  %v1850_v33 = vmul.f32 %v5282_v26, %v7109_v58  ;;  %v7376_v61 = vld [vmem:[%s7344_s26 + $0x28] sm:$0xff] }
 0x3ff   : > { %v1877_v7 = vmul.f32 %v1845_v13, %v7355_v10  ;;  %v7370_v32 = vmul.f32 %v1846_v47, %v7358_v44 }
 0x400   : > { %v7388_v58 = vmul.f32 %v1850_v33, %v7379_v29  ;;  %v7400_v33 = vld [vmem:[%s7344_s26 + $0x30] sm:$0xff] }
 0x401   : > { %9484 = vst [vmem:[#allocation88_spill] sm:$0xff] %v7370_v32  ;;  %v1907_v3 = vpack.c.bf16 %v1877_v7, %v1875_v51  ;;  %v2299_v32 = vsub.f32 %v7143_v40, %v2258_v20 }
 0x402   : > { %9486 = vst [vmem:[#allocation90_spill] sm:$0xff] %v7388_v58 }
 0x403   : > { %2728 = vmatmul.bf16.vlgmr.msra.gmra.mxu3 %v1907_v3  ;;  %v2298_v3 = vsub.f32 %v7141_v62, %v2258_v20 }
 0x404   : > { %v5284_v53 = vpop.eup %5283 }
 0x405   : > { %v1848_v13 = vmul.f32 %v5284_v53, %v7151_v60  ;;  %v2252_v48 = vpop.xlane.xlu0 %2251  ;;  %v1847_v60 = vmul.f32 %v5284_v53, %v7149_v23 }
 0x406   : > { %v2294_v47 = vsub.f32 %v7165_v0, %v2252_v48  ;;  %v2295_v51 = vsub.f32 %v7161_v21, %v2252_v48  ;;  %v7396_v0 = vld [vmem:[%s7344_s26 + $0x20] sm:$0xff]  ;;  %v1849_v21 = vmul.f32 %v5282_v26, %v7107_v63  ;;  %v2344_v48 = vmul.f32 1.442695, %v2299_v32 }
 0x407   : > { %v7385_v7 = vmul.f32 %v1848_v13, %v7376_v61  ;;  %v2342_v13 = vmul.f32 1.442695, %v2298_v3  ;;  %v2264_v62 = vpop.xlane.xlu1 %2263 }
 0x408   : > { %v2334_v14 = vmul.f32 1.442695, %v2294_v47  ;;  %v2336_v27 = vmul.f32 1.442695, %v2295_v51  ;;  %v1879_v51 = vmul.f32 %v1847_v60, %v7396_v0  ;;  %v1881_v53 = vmul.f32 %v1849_v21, %v7400_v33  ;;  %v5625_v60 = vld [vmem:[#allocation2] sm:$0xff] }
 0x409   : > { %9485 = vst [vmem:[#allocation89_spill] sm:$0xff] %v7385_v7  ;;  %v2303_v32 = vsub.f32 %v7171_v41, %v2264_v62 }
 0x40a   : > { %5285 = vpow2.f32 %v2334_v14  ;;  %v1909_v3 = vpack.c.bf16 %v1881_v53, %v1879_v51 }
 0x40b   : > { %5287 = vpow2.f32 %v2336_v27  ;;  %v2302_v27 = vsub.f32 %v7168_v37, %v2264_v62  ;;  %v2352_v37 = vmul.f32 1.442695, %v2303_v32 }
 0x40c   : > { %5289 = vpow2.f32 %v2342_v13 }
 0x40d   : > { %v2261_v47 = vpop.xlane.xlu0 %2260  ;;  %5291 = vpow2.f32 %v2344_v48 }
 0x40e   : > { %v2300_v40 = vsub.f32 %v7182_v1, %v2261_v47  ;;  %v2301_v23 = vsub.f32 %v7180_v31, %v2261_v47  ;;  %v2350_v1 = vmul.f32 1.442695, %v2302_v27 }
 0x410   : > { %v7406_v14 = vpop.eup %5285  ;;  %v2346_v63 = vmul.f32 1.442695, %v2300_v40  ;;  %v2348_v26 = vmul.f32 1.442695, %v2301_v23 }
 0x411   : > { %v7409_v20 = vpop.eup %5287 }
 0x412   : > { %5293 = vpow2.f32 %v2346_v63  ;;  %3663 = vrot.lane.b32.xlu0 %v5625_v60, %s5806_s24  ;;  %v2394_v31 = vadd.f32 %v7409_v20, %v7406_v14  ;;  %v7415_v21 = vpop.eup %5289 }
 0x413   : > { %5295 = vpow2.f32 %v2348_v26  ;;  %2733 = vmatmul.bf16.gmra.mxu3 %v1909_v3  ;;  %v7417_v13 = vpop.eup %5291 }
 0x414   : > { %2395 = vadd.xlane.f32.xlu1 %v2394_v31  ;;  %5297 = vpow2.f32 %v2350_v1  ;;  %v2400_v62 = vadd.f32 %v7417_v13, %v7415_v21  ;;  %v9487_v31 = vld [vmem:[#allocation20_spill] sm:$0xff] }
 0x415   : > { %5299 = vpow2.f32 %v2352_v37 }
 0x417   : > { %v7427_v51 = vpop.xlane.xlu1 %2269 }
 0x418   : > { %v7419_v48 = vpop.eup %5293 }
 0x419   : > { %v7421_v41 = vpop.eup %5295 }
 0x41a   : > { %v2403_v47 = vadd.f32 %v7421_v41, %v7419_v48  ;;  %v7429_v40 = vpop.eup %5297 }
 0x41b   : > { %v7431_v23 = vpop.eup %5299 }
 0x41c   : > { %2401 = vadd.xlane.f32.xlu1 %v2400_v62  ;;  %2404 = vadd.xlane.f32.xlu2 %v2403_v47  ;;  %v2406_v53 = vadd.f32 %v7431_v23, %v7429_v40 }
 0x41f   : > { %v2273_v27 = vpop.xlane.xlu1 %2272 }
 0x420   : > { %v2308_v63 = vsub.f32 %v7222_v43, %v2273_v27  ;;  %v2309_v26 = vsub.f32 %v7224_v34, %v2273_v27  ;;  %v9488_v27 = vld [vmem:[#allocation19_spill] sm:$0xff] }
 0x422   : > { %v2362_v32 = vmul.f32 1.442695, %v2308_v63  ;;  %v2364_v3 = vmul.f32 1.442695, %v2309_v26 }
 0x424   : > { %2407 = vadd.xlane.f32.xlu1 %v2406_v53  ;;  %5301 = vpow2.f32 %v2362_v32 }
 0x425   : > { %5303 = vpow2.f32 %v2364_v3 }
 0x427   : > { %v2276_v60 = vpop.xlane.xlu1 %2275 }
 0x42a   : > { %v7439_v1 = vpop.eup %5301 }
 0x42b   : > { %v7441_v37 = vpop.eup %5303 }
 0x42c   : > { %v2415_v34 = vadd.f32 %v7441_v37, %v7439_v1 }
 0x42f   : > { %v7449_v63 = vpop.xlane.xlu2 %2278 }
 0x434   : > { %2694 = vrot.lane.b32.xlu2 %v9487_v31, %s5807_s6 }
 0x437   : > { %v2282_v62 = vpop.xlane.xlu1 %2281 }
 0x438   : > { %v2314_v47 = vsub.f32 %v7276_v54, %v2282_v62  ;;  %v2315_v53 = vsub.f32 %v7278_v42, %v2282_v62  ;;  %v2267_v54 = vpop.xlane.xlu0 %2266 }
 0x439   : > { %v2304_v31 = vsub.f32 %v7202_v57, %v2267_v54 }
 0x43a   : > { %v2374_v43 = vmul.f32 1.442695, %v2314_v47  ;;  %v2376_v36 = vmul.f32 1.442695, %v2315_v53 }
 0x43b   : > { %v2354_v62 = vmul.f32 1.442695, %v2304_v31  ;;  %v9489_v31 = vld [vmem:[#allocation18_spill] sm:$0xff] }
 0x43c   : > { %5305 = vpow2.f32 %v2374_v43  ;;  %2416 = vadd.xlane.f32.xlu0 %v2415_v34  ;;  %v2310_v43 = vsub.f32 %v7238_v45, %v2276_v60  ;;  %v2311_v34 = vsub.f32 %v7240_v6, %v2276_v60  ;;  %v2307_v45 = vsub.f32 %v7206_v2, %v7427_v51  ;;  %v1591_v2 = vld [vmem:[%s5976_s13 + $0xa0] sm:$0xff] }
 0x43d   : > { %5307 = vpow2.f32 %v2376_v36  ;;  %2692 = vrot.lane.b32.xlu1 %v9488_v27, %s5807_s6  ;;  %v2305_v36 = vsub.f32 %v7194_v39, %v2267_v54  ;;  %v2306_v39 = vsub.f32 %v7204_v22, %v7427_v51  ;;  %v1560_v60 = vmul.f32 %v6974_v16, %v7197_v19  ;;  %v1592_v22 = vld [vmem:[%s5976_s13 + $0xa8] sm:$0xff] }
 0x43e   : > { %5309 = vpow2.f32 %v2354_v62  ;;  %v2368_v57 = vmul.f32 1.442695, %v2311_v34  ;;  %v2360_v51 = vmul.f32 1.442695, %v2307_v45  ;;  %v2312_v16 = vsub.f32 %v7256_v59, %v7449_v63 }
 0x43f   : > { %v7457_v3 = vpop.xlane.xlu2 %2284  ;;  %v2356_v47 = vmul.f32 1.442695, %v2305_v36  ;;  %v2358_v36 = vmul.f32 1.442695, %v2306_v39  ;;  %v2313_v45 = vsub.f32 %v7258_v8, %v7449_v63  ;;  %v1562_v8 = vmul.f32 %v6988_v49, %v7217_v46 }
 0x440   : > { %v2316_v59 = vsub.f32 %v7298_v17, %v7457_v3  ;;  %v3781_v63 = vsel %vm1368_vm5, %v7115_v12, 0  ;;  %v2370_v17 = vmul.f32 1.442695, %v2312_v16 }
 0x441   : > { %5311 = vpow2.f32 %v2356_v47 }
 0x442   : > { %v7451_v26 = vpop.eup %5305  ;;  %v2378_v49 = vmul.f32 1.442695, %v2316_v59 }
 0x443   : > { %v7453_v32 = vpop.eup %5307 }
 0x444   : > { %v2424_v42 = vadd.f32 %v7453_v32, %v7451_v26  ;;  %v7463_v27 = vpop.eup %5309 }
 0x446   : > { %2425 = vadd.xlane.f32.xlu0 %v2424_v42  ;;  %v2366_v42 = vmul.f32 1.442695, %v2310_v43 }
 0x447   : > { %v7465_v58 = vpop.eup %5311 }
 0x448   : > { %v2409_v6 = vadd.f32 %v7465_v58, %v7463_v27 }
 0x449   : > { %v2384_v53 = vpop.xlane.xlu2 %2383 }
 0x44a   : > { %5313 = vrcp.f32 %v2384_v53  ;;  %v9490_v53 = vld [vmem:[#allocation32_spill] sm:$0xff] }
 0x44b   : > { %v1559_v43 = vmul.f32 %v9490_v53, %v7190_v15 }
 0x450   : > { %v5314_v54 = vpop.eup %5313 }
 0x451   : > { %v2446_v62 = vmul.f32 %v5314_v54, %v7306_v18 }
 0x453   : > { %v2478_v18 = vmul.f32 %v2446_v62, %v7347_v25  ;;  %v1594_v62 = vld [vmem:[%s5976_s13 + $0xb8] sm:$0xff] }
 0x457   : > { %v2387_v7 = vpop.xlane.xlu1 %2386 }
 0x458   : > { %5315 = vrcp.f32 %v2387_v7  ;;  %v2447_v7 = vmul.f32 %v5314_v54, %v7308_v35 }
 0x459   : > { %5317 = vpow2.f32 %v2366_v42 }
 0x45a   : > { %2690 = vrot.lane.b32.xlu0 %v9489_v31, %s5807_s6  ;;  %5319 = vpow2.f32 %v2368_v57  ;;  %v7485_v31 = vadd.f32 %v1592_v22, %v1560_v60  ;;  %v2479_v35 = vmul.f32 %v2447_v7, %v7352_v56  ;;  %v2390_v57 = vpop.xlane.xlu2 %2389  ;;  %v2372_v7 = vmul.f32 1.442695, %v2313_v45 }
 0x45b   : > { %5321 = vpow2.f32 %v2358_v36 }
 0x45d   : > { %2410 = vadd.xlane.f32.xlu2 %v2409_v6  ;;  %v2317_v6 = vsub.f32 %v7300_v24, %v7457_v3  ;;  %v9492_v24 = vld [vmem:[#allocation36_spill] sm:$0xff] }
 0x45e   : > { %v5316_v47 = vpop.eup %5315  ;;  %v1561_v3 = vmul.f32 %v9492_v24, %v7213_v28  ;;  %v9493_v28 = vld [vmem:[#allocation34_spill] sm:$0xff] }
 0x45f   : > { %v2448_v34 = vmul.f32 %v5316_v47, %v7316_v55  ;;  %v2449_v42 = vmul.f32 %v5316_v47, %v7320_v50  ;;  %v7489_v19 = vpop.eup %5317  ;;  %v7497_v50 = vadd.f32 %v1591_v2, %v1559_v43  ;;  %v1593_v47 = vld [vmem:[%s5976_s13 + $0xb0] sm:$0xff]  ;;  %v2380_v46 = vmul.f32 1.442695, %v2317_v6 }
 0x460   : > { %v7495_v54 = vpop.eup %5319  ;;  %v7523_v43 = vadd.f32 %v1594_v62, %v1562_v8 }
 0x461   : > { %v2480_v15 = vmul.f32 %v2448_v34, %v7355_v10  ;;  %v2481_v39 = vmul.f32 %v2449_v42, %v7358_v44  ;;  %v2393_v55 = vpop.xlane.xlu1 %2392  ;;  %v9491_v10 = vld [vmem:[#allocation28_spill] sm:$0xff]  ;;  %v1665_v60 = vmax.f32 %v7497_v50, %v7485_v31  ;;  %v2418_v36 = vadd.f32 %v7495_v54, %v7489_v19  ;;  %v7515_v22 = vpop.eup %5321 }
 0x462   : > { %5323 = vrcp.f32 %v2393_v55  ;;  %v3757_v44 = vsel %vm1368_vm5, %v9491_v10, 0  ;;  %v1693_v34 = vsub.f32 %v9493_v28, %v7272_v30 }
 0x463   : > { %5325 = vpow2.f32 %v2360_v51  ;;  %v2510_v25 = vpack.c.bf16 %v2480_v15, %v2478_v18  ;;  %v2511_v56 = vpack.c.bf16 %v2481_v39, %v2479_v35  ;;  %v7525_v51 = vadd.f32 %v1593_v47, %v1561_v3  ;;  %v9494_v18 = vld [vmem:[#allocation35_spill] sm:$0xff]  ;;  %v9495_v15 = vld [vmem:[#allocation38_spill] sm:$0xff] }
 0x464   : > { %5327 = vrcp.f32 %v2390_v57  ;;  %v1694_v35 = vsub.f32 %v9494_v18, %v7272_v30  ;;  %v3754_v39 = vsel %vm1368_vm5, %v9495_v15, 0  ;;  %v9496_v57 = vld [vmem:[#allocation29_spill] sm:$0xff]  ;;  %v9498_v3 = vld [vmem:[#allocation46_spill] sm:$0xff] }
 0x465   : > { %2582 = vmatmul.bf16.vlgmr.msra.gmra.mxu1 %v2510_v25  ;;  %2631 = vmatmul.bf16.vlgmr.msra.gmra.mxu2 %v2511_v56  ;;  %5329 = vpow2.f32 %v2370_v17  ;;  %v3778_v55 = vsel %vm1368_vm5, %v9496_v57, 0  ;;  %v3775_v62 = vsel %vm1368_vm5, %v9498_v3, 0  ;;  %v9503_v15 = vld [vmem:[#allocation62_spill] sm:$0xff] }
 0x466   : > { %3783 = vmatpush.bf16.xpose.msra.mxu1 %v3757_v44  ;;  %3832 = vmatpush.bf16.xpose.msra.mxu2 %v3781_v63  ;;  %5331 = vpow2.f32 %v2372_v7  ;;  %v1691_v44 = vsub.f32 %v6891_v9, %v7251_v5  ;;  %v9499_v7 = vld [vmem:[#allocation53_spill] sm:$0xff] }
 0x467   : > { %1666 = vmax.xlane.f32.xlu2 %v1665_v60  ;;  %2419 = vadd.xlane.f32.xlu1 %v2418_v36  ;;  %5333 = vpow2.f32 %v2378_v49  ;;  %v9497_v60 = vld [vmem:[#allocation41_spill] sm:$0xff] }
 0x468   : > { %v5324_v12 = vpop.eup %5323  ;;  %5335 = vpow2.f32 %v2380_v46  ;;  %v1692_v8 = vsub.f32 %v9497_v60, %v7251_v5  ;;  %v1731_v24 = vmul.f32 1.442695, %v1691_v44  ;;  %v3751_v5 = vsel %vm1368_vm5, %v9499_v7, 0  ;;  %v9508_v60 = vld [vmem:[#allocation79_spill] sm:$0xff] }
 0x469   : > { %v7521_v53 = vpop.eup %5325  ;;  %v2452_v42 = vmul.f32 %v5324_v12, %v7330_v4  ;;  %v2453_v16 = vmul.f32 %v5324_v12, %v7332_v38  ;;  %v1668_v4 = vmax.f32 %v7525_v51, %v7523_v43  ;;  %v1735_v38 = vmul.f32 1.442695, %v1693_v34  ;;  %v9500_v12 = vld [vmem:[#allocation31_spill] sm:$0xff] }
 0x46a   : > { %v5328_v2 = vpop.eup %5327  ;;  %v2412_v25 = vadd.f32 %v7521_v53, %v7515_v22  ;;  %v1733_v9 = vmul.f32 1.442695, %v1692_v8  ;;  %v3748_v46 = vsel %vm1368_vm5, %v9500_v12, 0  ;;  %v9509_v8 = vld [vmem:[#allocation49_spill] sm:$0xff]  ;;  %v9513_v12 = vld [vmem:[#allocation75_spill] sm:$0xff] }
 0x46b   : > { %v2450_v45 = vmul.f32 %v5328_v2, %v7322_v11  ;;  %v2451_v59 = vmul.f32 %v5328_v2, %v7326_v52  ;;  %v7543_v30 = vpop.eup %5329  ;;  %v2484_v56 = vmul.f32 %v2452_v42, %v7400_v33  ;;  %v2485_v10 = vmul.f32 %v2453_v16, %v7379_v29  ;;  %v9501_v2 = vld [vmem:[#allocation27_spill] sm:$0xff] }
 0x46c   : > { %v7547_v11 = vpop.eup %5331  ;;  %v1737_v52 = vmul.f32 1.442695, %v1694_v35  ;;  %5337 = vpow2.f32 %v1735_v38  ;;  %v3772_v28 = vsel %vm1368_vm5, %v9501_v2, 0  ;;  %v9502_v35 = vld [vmem:[#allocation37_spill] sm:$0xff]  ;;  %v9506_v38 = vld [vmem:[#allocation40_spill] sm:$0xff] }
 0x46d   : > { %v7551_v6 = vpop.eup %5333  ;;  %v2482_v63 = vmul.f32 %v2450_v45, %v7396_v0  ;;  %v2483_v17 = vmul.f32 %v2451_v59, %v7376_v61  ;;  %v2421_v0 = vadd.f32 %v7547_v11, %v7543_v30  ;;  %v9504_v45 = vld [vmem:[#allocation42_spill] sm:$0xff]  ;;  %v9505_v59 = vld [vmem:[#allocation43_spill] sm:$0xff] }
 0x46e   : > { %3784 = vmatpush.bf16.xpose.msra.mxu1 %v3754_v39  ;;  %3833 = vmatpush.bf16.xpose.msra.mxu2 %v3778_v55  ;;  %v7557_v36 = vpop.eup %5335  ;;  %5339 = vpow2.f32 %v1737_v52  ;;  %v1564_v39 = vmul.f32 %v9503_v15, %v9502_v35  ;;  %v1596_v55 = vld [vmem:[%s5976_s13 + $0xc8] sm:$0xff] }
 0x46f   : > { %2413 = vadd.xlane.f32.xlu2 %v2412_v25  ;;  %1669 = vmax.xlane.f32.xlu1 %v1668_v4  ;;  %v2512_v33 = vpack.c.bf16 %v2484_v56, %v2482_v63  ;;  %v2513_v29 = vpack.c.bf16 %v2485_v10, %v2483_v17  ;;  %v2427_v61 = vadd.f32 %v7557_v36, %v7551_v6  ;;  %5341 = vpow2.f32 %v1731_v24  ;;  %v1595_v4 = vld [vmem:[%s5976_s13 + $0xc0] sm:$0xff]  ;;  %v9507_v10 = vld [vmem:[#allocation54_spill] sm:$0xff] }
 0x470   : > { %5343 = vpow2.f32 %v1733_v9  ;;  %v1563_v25 = vmul.f32 %v9505_v59, %v9504_v45  ;;  %v3745_v56 = vsel %vm1368_vm5, %v9506_v38, 0  ;;  %v3769_v52 = vsel %vm1368_vm5, %v9507_v10, 0  ;;  %v9512_v9 = vld [vmem:[#allocation64_spill] sm:$0xff]  ;;  %v9516_v35 = vld [vmem:[#allocation86_spill] sm:$0xff]  ;;  %v1597_v59 = vld [vmem:[%s5976_s13 + $0xd0] sm:$0xff] }
 0x471   : > { %v2399_v18 = vpop.xlane.xlu0 %2398  ;;  %v7593_v44 = vadd.f32 %v1596_v55, %v1564_v39  ;;  %v1695_v63 = vsub.f32 %v9509_v8, %v9508_v60  ;;  %v9517_v39 = vld [vmem:[#allocation30_spill] sm:$0xff]  ;;  %v9518_v55 = vld [vmem:[#allocation47_spill] sm:$0xff] }
 0x472   : > { %v7567_v47 = vpop.eup %5337  ;;  %5345 = vrcp.f32 %v2399_v18  ;;  %v3766_v45 = vsel %vm1368_vm5, %v9518_v55, 0  ;;  %v7624_v10 = vld [vmem:[%s7344_s26 + $0x48] sm:$0xff] }
 0x474   : > { %v7569_v49 = vpop.eup %5339 }
 0x475   : > { %2587 = vmatmul.bf16.gmra.mxu1 %v2512_v33  ;;  %2636 = vmatmul.bf16.gmra.mxu2 %v2513_v29  ;;  %v1794_v34 = vadd.f32 %v7569_v49, %v7567_v47  ;;  %v7577_v42 = vpop.eup %5341  ;;  %v7597_v33 = vadd.f32 %v1595_v4, %v1563_v25  ;;  %v9510_v29 = vld [vmem:[#allocation48_spill] sm:$0xff]  ;;  %v7616_v25 = vld [vmem:[%s7344_s26 + $0x50] sm:$0xff] }
 0x476   : > { %3785 = vmatpush.bf16.xpose.msra.mxu1 %v3751_v5  ;;  %3834 = vmatpush.bf16.xpose.msra.mxu2 %v3775_v62  ;;  %v7579_v16 = vpop.eup %5343  ;;  %v1696_v24 = vsub.f32 %v9510_v29, %v9508_v60  ;;  %v9511_v62 = vld [vmem:[#allocation76_spill] sm:$0xff]  ;;  %v9519_v29 = vld [vmem:[#allocation17_spill] sm:$0xff] }
 0x477   : > { %2422 = vadd.xlane.f32.xlu2 %v2421_v0  ;;  %2428 = vadd.xlane.f32.xlu1 %v2427_v61  ;;  %v1791_v57 = vadd.f32 %v7579_v16, %v7577_v42  ;;  %v1566_v7 = vmul.f32 %v9512_v9, %v9511_v62  ;;  %v1671_v5 = vmax.f32 %v7597_v33, %v7593_v44  ;;  %v1739_v0 = vmul.f32 1.442695, %v1695_v63  ;;  %v1598_v61 = vld [vmem:[%s5976_s13 + $0xd8] sm:$0xff] }
 0x478   : > { %v5346_v3 = vpop.eup %5345 }
 0x479   : > { %v2457_v15 = vmul.f32 %v5346_v3, %v9516_v35  ;;  %v7618_v38 = vadd.f32 %v1598_v61, %v1566_v7  ;;  %v9520_v61 = vld [vmem:[#allocation61_spill] sm:$0xff] }
 0x47e   : > { %3786 = vmatpush.bf16.xpose.msra.mxu1 %v3748_v46  ;;  %3835 = vmatpush.bf16.xpose.msra.mxu2 %v3772_v28  ;;  %v9514_v46 = vld [vmem:[#allocation50_spill] sm:$0xff]  ;;  %v1741_v28 = vmul.f32 1.442695, %v1696_v24 }
 0x47f   : > { %1795 = vadd.xlane.f32.xlu2 %v1794_v34  ;;  %v1565_v2 = vmul.f32 %v9514_v46, %v9513_v12  ;;  %v9515_v34 = vld [vmem:[#allocation85_spill] sm:$0xff]  ;;  %v3739_v12 = vsel %vm1368_vm5, %v9520_v61, 0  ;;  %v9521_v46 = vld [vmem:[#allocation59_spill] sm:$0xff] }
 0x480   : > { %v2456_v18 = vmul.f32 %v5346_v3, %v9515_v34 }
 0x481   : > { %v7633_v24 = vadd.f32 %v1597_v59, %v1565_v2  ;;  %v3763_v2 = vsel %vm1368_vm5, %v9521_v46, 0  ;;  %v7672_v46 = vld [vmem:[%s7344_s26 + $0x68] sm:$0xff] }
 0x482   : > { %v2488_v3 = vmul.f32 %v2456_v18, %v7616_v25  ;;  %v5626_v18 = vld [vmem:[#allocation2 + $0x8] sm:$0xff] }
 0x484   : > { %1792 = vadd.xlane.f32.xlu0 %v1791_v57  ;;  %v3742_v57 = vsel %vm1368_vm5, %v9517_v39, 0  ;;  %v9522_v39 = vld [vmem:[#allocation82_spill] sm:$0xff] }
 0x486   : > { %3787 = vmatpush.bf16.xpose.msra.mxu1 %v3745_v56  ;;  %3836 = vmatpush.bf16.xpose.msra.mxu2 %v3769_v52  ;;  %v7621_v56 = vld [vmem:[%s7344_s26 + $0x40] sm:$0xff]  ;;  %v7627_v52 = vld [vmem:[%s7344_s26 + $0x58] sm:$0xff] }
 0x487   : > { %v2396_v17 = vpop.xlane.xlu1 %2395  ;;  %v2489_v7 = vmul.f32 %v2457_v15, %v7627_v52 }
 0x488   : > { %5347 = vrcp.f32 %v2396_v17 }
 0x489   : > { %5349 = vpow2.f32 %v1739_v0 }
 0x48a   : > { %5351 = vpow2.f32 %v1741_v28 }
 0x48c   : > { %1672 = vmax.xlane.f32.xlu0 %v1671_v5 }
 0x48e   : > { %v5348_v4 = vpop.eup %5347  ;;  %3788 = vmatpush.bf16.xpose.msra.mxu1 %v3742_v57  ;;  %3837 = vmatpush.bf16.xpose.msra.mxu2 %v3766_v45  ;;  %v9523_v57 = vld [vmem:[#allocation51_spill] sm:$0xff]  ;;  %v9524_v45 = vld [vmem:[#allocation52_spill] sm:$0xff] }
 0x48f   : > { %v2454_v60 = vmul.f32 %v5348_v4, %v7406_v14  ;;  %v2455_v8 = vmul.f32 %v5348_v4, %v7409_v20  ;;  %v2402_v63 = vpop.xlane.xlu1 %2401  ;;  %v2405_v17 = vpop.xlane.xlu2 %2404  ;;  %v1674_v14 = vmax.f32 %v7633_v24, %v7618_v38  ;;  %v1699_v55 = vsub.f32 %v9523_v57, %v9522_v39  ;;  %v9525_v4 = vld [vmem:[#allocation78_spill] sm:$0xff] }
 0x490   : > { %2688 = vrot.lane.b32.xlu1 %v9519_v29, %s5807_s6  ;;  %5353 = vrcp.f32 %v2402_v63  ;;  %v7641_v0 = vpop.eup %5349  ;;  %v1700_v59 = vsub.f32 %v9524_v45, %v9522_v39 }
 0x491   : > { %v2486_v62 = vmul.f32 %v2454_v60, %v7621_v56  ;;  %v2487_v9 = vmul.f32 %v2455_v8, %v7624_v10  ;;  %5355 = vrcp.f32 %v2405_v17  ;;  %v7647_v28 = vpop.eup %5351  ;;  %v9526_v60 = vld [vmem:[#allocation67_spill] sm:$0xff]  ;;  %v1600_v17 = vld [vmem:[%s5976_s13 + $0xe8] sm:$0xff]  ;;  %v1747_v61 = vmul.f32 1.442695, %v1699_v55 }
 0x492   : > { %v1568_v8 = vmul.f32 %v9526_v60, %v9525_v4  ;;  %v1797_v63 = vadd.f32 %v7647_v28, %v7641_v0  ;;  %v9531_v4 = vld [vmem:[#allocation84_spill] sm:$0xff]  ;;  %v9532_v60 = vld [vmem:[#allocation55_spill] sm:$0xff] }
 0x493   : > { %v2514_v20 = vpack.c.bf16 %v2488_v3, %v2486_v62  ;;  %v2515_v5 = vpack.c.bf16 %v2489_v7, %v2487_v9  ;;  %v7664_v7 = vld [vmem:[%s7344_s26 + $0x60] sm:$0xff]  ;;  %5357 = vpow2.f32 %v1747_v61  ;;  %v9536_v61 = vld [vmem:[#allocation44_spill] sm:$0xff] }
 0x494   : > { %1675 = vmax.xlane.f32.xlu0 %v1674_v14  ;;  %v9527_v14 = vld [vmem:[#allocation77_spill] sm:$0xff] }
 0x495   : > { %2592 = vmatmul.bf16.gmra.mxu1 %v2514_v20  ;;  %2641 = vmatmul.bf16.gmra.mxu2 %v2515_v5  ;;  %v9528_v20 = vld [vmem:[#allocation57_spill] sm:$0xff] }
 0x496   : > { %3789 = vmatpush.bf16.xpose.msra.mxu1 %v3739_v12  ;;  %3838 = vmatpush.bf16.xpose.msra.mxu2 %v3763_v2  ;;  %v5354_v34 = vpop.eup %5353  ;;  %v1567_v5 = vmul.f32 %v9528_v20, %v9527_v14  ;;  %v7669_v12 = vld [vmem:[%s7344_s26 + $0x70] sm:$0xff]  ;;  %v7675_v2 = vld [vmem:[%s7344_s26 + $0x78] sm:$0xff] }
 0x497   : > { %3665 = vrot.lane.b32.xlu2 %v5626_v18, %s5806_s24  ;;  %v2695_v35 = vpop.permute.xlu2 %2694  ;;  %v5356_v15 = vpop.eup %5355  ;;  %v2458_v29 = vmul.f32 %v5354_v34, %v7415_v21  ;;  %v2459_v3 = vmul.f32 %v5354_v34, %v7417_v13  ;;  %v1599_v21 = vld [vmem:[%s5976_s13 + $0xe0] sm:$0xff]  ;;  %v1749_v18 = vmul.f32 1.442695, %v1700_v59  ;;  %v9529_v13 = vld [vmem:[#allocation39_spill] sm:$0xff] }
 0x498   : > { %2773 = vmatpush.bf16.msrb.mxu0 %v2695_v35  ;;  %v2460_v62 = vmul.f32 %v5356_v15, %v7419_v48  ;;  %v2461_v9 = vmul.f32 %v5356_v15, %v7421_v41  ;;  %v3736_v48 = vsel %vm1368_vm5, %v9529_v13, 0  ;;  %v9530_v34 = vld [vmem:[#allocation63_spill] sm:$0xff]  ;;  %v7682_v35 = vadd.f32 %v1600_v17, %v1568_v8 }
 0x499   : > { %v3760_v41 = vsel %vm1368_vm5, %v9530_v34, 0  ;;  %v5627_v15 = vld [vmem:[#allocation2 + $0x10] sm:$0xff]  ;;  %v2490_v39 = vmul.f32 %v2458_v29, %v7664_v7  ;;  %v2491_v55 = vmul.f32 %v2459_v3, %v7672_v46  ;;  %v7689_v59 = vadd.f32 %v1599_v21, %v1567_v5  ;;  %v2408_v34 = vpop.xlane.xlu1 %2407 }
 0x49a   : > { %v2492_v57 = vmul.f32 %v2460_v62, %v7669_v12  ;;  %v2493_v45 = vmul.f32 %v2461_v9, %v7675_v2  ;;  %v1701_v8 = vsub.f32 %v9532_v60, %v9531_v4  ;;  %5359 = vpow2.f32 %v1749_v18  ;;  %v7697_v9 = vpop.eup %5357  ;;  %v9535_v5 = vld [vmem:[#allocation83_spill] sm:$0xff]  ;;  %v9538_v18 = vld [vmem:[#allocation45_spill] sm:$0xff] }
 0x49b   : > { %v1677_v14 = vmax.f32 %v7689_v59, %v7682_v35  ;;  %9534 = vst [vmem:[#allocation20_spill] sm:$0xff] %v7697_v9  ;;  %v1697_v21 = vsub.f32 %v9536_v61, %v9535_v5  ;;  %v9544_v61 = vld [vmem:[#allocation60_spill] sm:$0xff] }
 0x49c   : > { %1798 = vadd.xlane.f32.xlu0 %v1797_v63  ;;  %v9533_v63 = vld [vmem:[#allocation56_spill] sm:$0xff]  ;;  %v2516_v29 = vpack.c.bf16 %v2492_v57, %v2490_v39  ;;  %v2517_v20 = vpack.c.bf16 %v2493_v45, %v2491_v55  ;;  %v1751_v62 = vmul.f32 1.442695, %v1701_v8  ;;  %v7715_v8 = vpop.permute.xlu0 %3663 }
 0x49d   : > { %v1702_v17 = vsub.f32 %v9533_v63, %v9531_v4  ;;  %9540 = vst [vmem:[#allocation32_spill] sm:$0xff] %v7715_v8 }
 0x49e   : > { %3790 = vmatpush.bf16.xpose.msra.mxu1 %v3736_v48  ;;  %3839 = vmatpush.bf16.xpose.msra.mxu2 %v3760_v41  ;;  %v1698_v48 = vsub.f32 %v9538_v18, %v9535_v5  ;;  %5361 = vpow2.f32 %v1751_v62  ;;  %v1743_v41 = vmul.f32 1.442695, %v1697_v21  ;;  %v9543_v5 = vld [vmem:[#allocation80_spill] sm:$0xff]  ;;  %v1601_v18 = vld [vmem:[%s5976_s13 + $0xf0] sm:$0xff] }
 0x49f   : > { %3667 = vrot.lane.b32.xlu2 %v5627_v15, %s5806_s24  ;;  %v1753_v3 = vmul.f32 1.442695, %v1702_v17  ;;  %v1569_v21 = vmul.f32 %v9544_v61, %v9543_v5  ;;  %v7740_v5 = vld [vmem:[%s7344_s26 + $0x80] sm:$0xff] }
 0x4a0   : > { %v7701_v13 = vpop.eup %5359  ;;  %v1745_v39 = vmul.f32 1.442695, %v1698_v48 }
 0x4a1   : > { %9537 = vst [vmem:[#allocation19_spill] sm:$0xff] %v7701_v13  ;;  %5363 = vpow2.f32 %v1753_v3  ;;  %v1803_v15 = vadd.f32 %v7701_v13, %v7697_v9  ;;  %v1602_v3 = vld [vmem:[%s5976_s13 + $0xf8] sm:$0xff]  ;;  %v5630_v9 = vld [vmem:[#allocation2 + $0x28] sm:$0xff] }
 0x4a2   : > { %5365 = vpow2.f32 %v1743_v41  ;;  %v7729_v41 = vadd.f32 %v1601_v18, %v1569_v21  ;;  %v7743_v21 = vld [vmem:[%s7344_s26 + $0x90] sm:$0xff]  ;;  %v7746_v18 = vld [vmem:[%s7344_s26 + $0x88] sm:$0xff] }
 0x4a3   : > { %5367 = vpow2.f32 %v1745_v39 }
 0x4a4   : > { %1678 = vmax.xlane.f32.xlu0 %v1677_v14  ;;  %v7707_v57 = vpop.eup %5361  ;;  %5369 = vrcp.f32 %v2408_v34 }
 0x4a5   : > { %2597 = vmatmul.bf16.gmra.mxu1 %v2516_v29  ;;  %2646 = vmatmul.bf16.gmra.mxu2 %v2517_v20  ;;  %v9541_v29 = vld [vmem:[#allocation81_spill] sm:$0xff]  ;;  %v9542_v20 = vld [vmem:[#allocation70_spill] sm:$0xff] }
 0x4a6   : > { %v1570_v62 = vmul.f32 %v9542_v20, %v9541_v29  ;;  %v5629_v20 = vld [vmem:[#allocation2 + $0x20] sm:$0xff] }
 0x4a7   : > { %v7709_v55 = vpop.eup %5363 }
 0x4a8   : > { %9539 = vst [vmem:[#allocation18_spill] sm:$0xff] %v7709_v55  ;;  %v1806_v4 = vadd.f32 %v7709_v55, %v7707_v57  ;;  %v7713_v60 = vpop.eup %5365  ;;  %v7727_v48 = vadd.f32 %v1602_v3, %v1570_v62 }
 0x4a9   : > { %v7717_v63 = vpop.eup %5367 }
 0x4aa   : > { %v1800_v17 = vadd.f32 %v7717_v63, %v7713_v60  ;;  %v1680_v39 = vmax.f32 %v7729_v41, %v7727_v48  ;;  %v5370_v29 = vpop.eup %5369 }
 0x4ab   : > { %v2462_v62 = vmul.f32 %v5370_v29, %v7429_v40  ;;  %v2463_v3 = vmul.f32 %v5370_v29, %v7431_v23 }
 0x4ac   : > { %1804 = vadd.xlane.f32.xlu0 %v1803_v15 }
 0x4ad   : > { %v2495_v23 = vmul.f32 %v2463_v3, %v7746_v18 }
 0x4af   : > { %v2693_v45 = vpop.permute.xlu1 %2692  ;;  %v2417_v14 = vpop.xlane.xlu0 %2416 }
 0x4b0   : > { %2774 = vmatpush.bf16.msrb.mxu0 %v2693_v45  ;;  %v5628_v45 = vld [vmem:[#allocation2 + $0x18] sm:$0xff] }
 0x4b4   : > { %1807 = vadd.xlane.f32.xlu0 %v1806_v4 }
 0x4b9   : > { %v7731_v15 = vpop.xlane.xlu0 %2425 }
 0x4ba   : > { %1801 = vadd.xlane.f32.xlu1 %v1800_v17 }
 0x4c8   : > { %1681 = vmax.xlane.f32.xlu2 %v1680_v39  ;;  %3669 = vrot.lane.b32.xlu0 %v5628_v45, %s5806_s24  ;;  %v7749_v39 = vld [vmem:[%s7344_s26 + $0x98] sm:$0xff] }
 0x4cc   : > { %v2691_v4 = vpop.permute.xlu0 %2690 }
 0x4cd   : > { %2775 = vmatpush.bf16.msrb.mxu0 %v2691_v4 }
 0x4d0   : > { %v2411_v17 = vpop.xlane.xlu2 %2410 }
 0x4d1   : > { %5371 = vrcp.f32 %v2411_v17 }
 0x4d2   : > { %5373 = vrcp.f32 %v2417_v14 }
 0x4d3   : > { %3671 = vrot.lane.b32.xlu1 %v5629_v20, %s5806_s24  ;;  %v2494_v20 = vmul.f32 %v2462_v62, %v7740_v5 }
 0x4d7   : > { %v5372_v61 = vpop.eup %5371 }
 0x4d8   : > { %v2464_v34 = vmul.f32 %v5372_v61, %v7463_v27  ;;  %v2465_v45 = vmul.f32 %v5372_v61, %v7465_v58 }
 0x4da   : > { %v1667_v4 = vpop.xlane.xlu2 %1666  ;;  %v2420_v17 = vpop.xlane.xlu1 %2419  ;;  %v2496_v40 = vmul.f32 %v2464_v34, %v7743_v21  ;;  %v2497_v29 = vmul.f32 %v2465_v45, %v7749_v39 }
 0x4db   : > { %v1703_v8 = vsub.f32 %v7497_v50, %v1667_v4  ;;  %v1704_v13 = vsub.f32 %v7485_v31, %v1667_v4  ;;  %3673 = vrot.lane.b32.xlu1 %v5630_v9, %s5806_s24  ;;  %v9545_v50 = vld [vmem:[#allocation66_spill] sm:$0xff]  ;;  %v5374_v31 = vpop.eup %5373 }
 0x4dc   : > { %v2518_v27 = vpack.c.bf16 %v2496_v40, %v2494_v20  ;;  %v2519_v55 = vpack.c.bf16 %v2497_v29, %v2495_v23  ;;  %v2468_v20 = vmul.f32 %v5374_v31, %v7439_v1  ;;  %v2469_v40 = vmul.f32 %v5374_v31, %v7441_v37  ;;  %v7773_v23 = vld [vmem:[%s7344_s26 + $0xb0] sm:$0xff] }
 0x4dd   : > { %v1755_v58 = vmul.f32 1.442695, %v1703_v8  ;;  %v1757_v61 = vmul.f32 1.442695, %v1704_v13 }
 0x4de   : > { %2602 = vmatmul.bf16.gmra.mxu1 %v2518_v27  ;;  %2651 = vmatmul.bf16.gmra.mxu2 %v2519_v55  ;;  %v7778_v27 = vld [vmem:[%s7344_s26 + $0xa0] sm:$0xff] }
 0x4df   : > { %5375 = vpow2.f32 %v1755_v58  ;;  %v7781_v58 = vld [vmem:[%s7344_s26 + $0xa8] sm:$0xff] }
 0x4e0   : > { %5377 = vpow2.f32 %v1757_v61  ;;  %v7784_v61 = vld [vmem:[%s7344_s26 + $0xb8] sm:$0xff] }
 0x4e2   : > { %v2414_v62 = vpop.xlane.xlu2 %2413  ;;  %v1670_v3 = vpop.xlane.xlu1 %1669 }
 0x4e3   : > { %5379 = vrcp.f32 %v2414_v62  ;;  %4278 = vrot.lane.b32.xlu1 %v9545_v50, %s5805_s21  ;;  %v2583_v34 = vpop.f32.mrf.mxu1  ;;  %v1705_v9 = vsub.f32 %v7525_v51, %v1670_v3  ;;  %v1706_v8 = vsub.f32 %v7523_v43, %v1670_v3  ;;  %v2500_v50 = vmul.f32 %v2468_v20, %v7773_v23 }
 0x4e5   : > { %v7764_v13 = vpop.eup %5375  ;;  %v1759_v14 = vmul.f32 1.442695, %v1705_v9  ;;  %v1761_v45 = vmul.f32 1.442695, %v1706_v8 }
 0x4e6   : > { %v7766_v55 = vpop.eup %5377 }
 0x4e7   : > { %v1809_v4 = vadd.f32 %v7766_v55, %v7764_v13  ;;  %5381 = vpow2.f32 %v1759_v14 }
 0x4e8   : > { %v2632_v51 = vpop.f32.mrf.mxu2  ;;  %5383 = vpow2.f32 %v1761_v45 }
 0x4e9   : > { %v5380_v43 = vpop.eup %5379  ;;  %1810 = vadd.xlane.f32.xlu2 %v1809_v4  ;;  %v7775_v29 = vadd.f32 %v2632_v51, %v2583_v34  ;;  %v2501_v34 = vmul.f32 %v2469_v40, %v7784_v61 }
 0x4ea   : > { %v2466_v62 = vmul.f32 %v5380_v43, %v7515_v22  ;;  %v2467_v1 = vmul.f32 %v5380_v43, %v7521_v53  ;;  %v2423_v37 = vpop.xlane.xlu2 %2422 }
 0x4eb   : > { %5385 = vrcp.f32 %v2423_v37  ;;  %v7794_v8 = vpop.f32.mrf.mxu1  ;;  %v7808_v37 = vld [vmem:[%s7344_s26 + $0xd8] sm:$0xff] }
 0x4ec   : > { %v2498_v3 = vmul.f32 %v2466_v62, %v7778_v27  ;;  %v2499_v31 = vmul.f32 %v2467_v1, %v7781_v58  ;;  %9546 = vst [vmem:[#allocation28_spill] sm:$0xff] %v7794_v8  ;;  %5387 = vrcp.f32 %v2420_v17  ;;  %v7805_v17 = vld [vmem:[%s7344_s26 + $0xd0] sm:$0xff]  ;;  %v5169_v8 = vld [vmem:[#allocation3 + $0xf8] sm:$0xf0] }
 0x4ed   : > { %v7792_v9 = vpop.eup %5381 }
 0x4ee   : > { %v2520_v14 = vpack.c.bf16 %v2500_v50, %v2498_v3  ;;  %v2521_v45 = vpack.c.bf16 %v2501_v34, %v2499_v31  ;;  %v7796_v22 = vpop.eup %5383 }
 0x4ef   : > { %v1812_v4 = vadd.f32 %v7796_v22, %v7792_v9 }
 0x4f0   : > { %2607 = vmatmul.bf16.gmra.mxu1 %v2520_v14  ;;  %2656 = vmatmul.bf16.gmra.mxu2 %v2521_v45  ;;  %v7798_v53 = vpop.f32.mrf.mxu2  ;;  %v7815_v45 = vld [vmem:[%s7344_s26 + $0xc0] sm:$0xff] }
 0x4f1   : > { %9547 = vst [vmem:[#allocation36_spill] sm:$0xff] %v7798_v53  ;;  %v5386_v40 = vpop.eup %5385 }
 0x4f2   : > { %v1796_v20 = vpop.xlane.xlu2 %1795  ;;  %1813 = vadd.xlane.f32.xlu0 %v1812_v4  ;;  %v5388_v51 = vpop.eup %5387  ;;  %v2472_v43 = vmul.f32 %v5386_v40, %v7543_v30  ;;  %v2473_v62 = vmul.f32 %v5386_v40, %v7547_v11  ;;  %v7818_v4 = vld [vmem:[%s7344_s26 + $0xc8] sm:$0xff] }
 0x4f3   : > { %5389 = vrcp.f32 %v1796_v20  ;;  %v2470_v3 = vmul.f32 %v5388_v51, %v7489_v19  ;;  %v2471_v50 = vmul.f32 %v5388_v51, %v7495_v54  ;;  %v2588_v31 = vpop.f32.mrf.mxu1  ;;  %v2429_v11 = vpop.xlane.xlu1 %2428 }
 0x4f4   : > { %v2504_v20 = vmul.f32 %v2472_v43, %v7805_v17  ;;  %v2505_v40 = vmul.f32 %v2473_v62, %v7808_v37 }
 0x4f5   : > { %v2502_v19 = vmul.f32 %v2470_v3, %v7815_v45  ;;  %v2503_v54 = vmul.f32 %v2471_v50, %v7818_v4 }
 0x4f7   : > { %v1793_v1 = vpop.xlane.xlu0 %1792 }
 0x4f8   : > { %5391 = vrcp.f32 %v1793_v1  ;;  %v2637_v34 = vpop.f32.mrf.mxu2 }
 0x4f9   : > { %v7812_v14 = vadd.f32 %v2637_v34, %v2588_v31  ;;  %v7820_v30 = vpop.eup %5389  ;;  %5393 = vrcp.f32 %v2429_v11  ;;  %v2522_v31 = vpack.c.bf16 %v2504_v20, %v2502_v19  ;;  %v2523_v34 = vpack.c.bf16 %v2505_v40, %v2503_v54  ;;  %v5042_v11 = vld [vmem:[#allocation3 + $0xf4] sm:$0xf] }
 0x4fa   : > { %v1853_v51 = vmul.f32 %v7820_v30, %v7567_v47  ;;  %5395 = vrcp.f32 %v7731_v15  ;;  %v7837_v15 = vor.u32 %v5169_v8, %v5042_v11 }
 0x4fc   : > { %v1885_v47 = vmul.f32 %v1853_v51, %v7616_v25  ;;  %9548 = vst [vmem:[#allocation34_spill] sm:$0xff] %v7837_v15  ;;  %v9550_v51 = vld [vmem:[#allocation87_spill] sm:$0xff] }
 0x4fe   : > { %v7828_v1 = vpop.eup %5391 }
 0x4ff   : > { %v1851_v53 = vmul.f32 %v7828_v1, %v7577_v42  ;;  %v1673_v43 = vpop.xlane.xlu0 %1672  ;;  %v5394_v54 = vpop.eup %5393 }
 0x500   : > { %v1707_v62 = vsub.f32 %v7597_v33, %v1673_v43  ;;  %v1708_v3 = vsub.f32 %v7593_v44, %v1673_v43  ;;  %2612 = vmatmul.bf16.gmra.mxu1 %v2522_v31  ;;  %2661 = vmatmul.bf16.gmra.mxu2 %v2523_v34  ;;  %v5168_v33 = vld [vmem:[#allocation3 + $0xe8] sm:$0xf0]  ;;  %v5396_v44 = vpop.eup %5395  ;;  %v2476_v25 = vmul.f32 %v5394_v54, %v7551_v6  ;;  %v5167_v43 = vld [vmem:[#allocation3 + $0xd8] sm:$0xf0] }
 0x501   : > { %v1883_v50 = vmul.f32 %v1851_v53, %v7621_v56  ;;  %v5038_v56 = vld [vmem:[#allocation3 + $0xe4] sm:$0xf]  ;;  %v2477_v8 = vmul.f32 %v5394_v54, %v7557_v36  ;;  %v9549_v53 = vld [vmem:[#allocation88_spill] sm:$0xff]  ;;  %v2475_v11 = vmul.f32 %v5396_v44, %v7453_v32  ;;  %v7864_v54 = vld [vmem:[%s7344_s26 + $0xe8] sm:$0xff] }
 0x502   : > { %v1763_v20 = vmul.f32 1.442695, %v1707_v62  ;;  %v1765_v40 = vmul.f32 1.442695, %v1708_v3  ;;  %v2689_v19 = vpop.permute.xlu1 %2688  ;;  %v9551_v31 = vpack.c.bf16 %v9549_v53, %v9550_v51  ;;  %v7845_v34 = vor.u32 %v5168_v33, %v5038_v56  ;;  %v7848_v3 = vld [vmem:[%s7344_s26 + $0xf0] sm:$0xff] }
 0x503   : > { %2776 = vmatpush.bf16.msrb.mxu0 %v2689_v19  ;;  %v1911_v42 = vpack.c.bf16 %v1885_v47, %v1883_v50  ;;  %v7851_v50 = vld [vmem:[%s7344_s26 + $0xf8] sm:$0xff]  ;;  %v2474_v47 = vmul.f32 %v5396_v44, %v7451_v26  ;;  %v7861_v19 = vld [vmem:[%s7344_s26 + $0xe0] sm:$0xff]  ;;  %v2508_v26 = vmul.f32 %v2476_v25, %v7848_v3  ;;  %v2507_v51 = vmul.f32 %v2475_v11, %v7864_v54 }
 0x504   : > { %5397 = vpow2.f32 %v1763_v20  ;;  %v5034_v20 = vld [vmem:[#allocation3 + $0xd4] sm:$0xf]  ;;  %v2509_v32 = vmul.f32 %v2477_v8, %v7851_v50  ;;  %v5030_v8 = vld [vmem:[#allocation3 + $0xc4] sm:$0xf] }
 0x505   : > { %5399 = vpow2.f32 %v1765_v40  ;;  %2738 = vmatmul.bf16.gmra.mxu3 %v1911_v42  ;;  %v7858_v40 = vor.u32 %v5167_v43, %v5034_v20  ;;  %v2506_v53 = vmul.f32 %v2474_v47, %v7861_v19  ;;  %v5165_v20 = vld [vmem:[#allocation3 + $0xb8] sm:$0xf0]  ;;  %v5026_v47 = vld [vmem:[#allocation3 + $0xb4] sm:$0xf] }
 0x506   : > { %2777 = vmatmul.bf16.vlgmr.msrb.gmra.mxu0 %v9551_v31  ;;  %v5166_v31 = vld [vmem:[#allocation3 + $0xc8] sm:$0xf0]  ;;  %v2525_v43 = vpack.c.bf16 %v2509_v32, %v2507_v51  ;;  %v9558_v51 = vld [vmem:[#allocation89_spill] sm:$0xff] }
 0x507   : > { %3598 = vmatpush.bf16.msra.mxu0 %v7837_v15  ;;  %v1676_v62 = vpop.xlane.xlu0 %1675  ;;  %9552 = vst [vmem:[#allocation35_spill] sm:$0xff] %v7858_v40  ;;  %v2524_v25 = vpack.c.bf16 %v2508_v26, %v2506_v53  ;;  %v9557_v53 = vld [vmem:[#allocation90_spill] sm:$0xff] }
 0x508   : > { %v1709_v6 = vsub.f32 %v7633_v24, %v1676_v62  ;;  %v1710_v36 = vsub.f32 %v7618_v38, %v1676_v62  ;;  %v7872_v38 = vpop.f32.mrf.mxu1 }
 0x509   : > { %9553 = vst [vmem:[#allocation38_spill] sm:$0xff] %v7872_v38  ;;  %v5163_v38 = vld [vmem:[#allocation3 + $0x98] sm:$0xf0] }
 0x50a   : > { %v7866_v42 = vpop.eup %5397  ;;  %v1767_v33 = vmul.f32 1.442695, %v1709_v6  ;;  %v1769_v56 = vmul.f32 1.442695, %v1710_v36  ;;  %v7879_v6 = vor.u32 %v5166_v31, %v5030_v8  ;;  %v7881_v36 = vpop.f32.mrf.mxu2  ;;  %v9559_v31 = vpack.c.bf16 %v9557_v53, %v9558_v51 }
 0x50b   : > { %3599 = vmatpush.bf16.msra.mxu0 %v7845_v34  ;;  %v7870_v24 = vpop.eup %5399  ;;  %9555 = vst [vmem:[#allocation41_spill] sm:$0xff] %v7881_v36  ;;  %v1852_v53 = vmul.f32 %v7828_v1, %v7579_v16 }
 0x50c   : > { %5401 = vpow2.f32 %v1767_v33  ;;  %v1815_v44 = vadd.f32 %v7870_v24, %v7866_v42  ;;  %9554 = vst [vmem:[#allocation29_spill] sm:$0xff] %v7879_v6 }
 0x50d   : > { %5403 = vpow2.f32 %v1769_v56  ;;  %v7888_v56 = vor.u32 %v5165_v20, %v5026_v47  ;;  %v1884_v1 = vmul.f32 %v1852_v53, %v7624_v10 }
 0x50e   : > { %1816 = vadd.xlane.f32.xlu2 %v1815_v44  ;;  %v5164_v44 = vld [vmem:[#allocation3 + $0xa8] sm:$0xf0] }
 0x50f   : > { %3600 = vmatpush.bf16.msra.mxu0 %v7858_v40  ;;  %v1799_v62 = vpop.xlane.xlu0 %1798  ;;  %9556 = vst [vmem:[#allocation46_spill] sm:$0xff] %v7888_v56  ;;  %v5018_v40 = vld [vmem:[#allocation3 + $0x94] sm:$0xf] }
 0x510   : > { %2617 = vmatmul.bf16.gmra.mxu1 %v2524_v25  ;;  %2666 = vmatmul.bf16.gmra.mxu2 %v2525_v43  ;;  %v5022_v25 = vld [vmem:[#allocation3 + $0xa4] sm:$0xf]  ;;  %v7903_v15 = vor.u32 %v5163_v38, %v5018_v40 }
 0x511   : > { %v7896_v8 = vor.u32 %v5164_v44, %v5022_v25  ;;  %v5162_v44 = vld [vmem:[#allocation3 + $0x88] sm:$0xf0] }
 0x512   : > { %v7884_v33 = vpop.eup %5401  ;;  %v2593_v26 = vpop.f32.mrf.mxu1  ;;  %9561 = vst [vmem:[#allocation31_spill] sm:$0xff] %v7903_v15 }
 0x513   : > { %3601 = vmatpush.bf16.msra.mxu0 %v7879_v6  ;;  %v7886_v11 = vpop.eup %5403  ;;  %9560 = vst [vmem:[#allocation53_spill] sm:$0xff] %v7896_v8 }
 0x514   : > { %v1818_v32 = vadd.f32 %v7886_v11, %v7884_v33 }
 0x516   : > { %1819 = vadd.xlane.f32.xlu2 %v1818_v32  ;;  %2782 = vmatmul.bf16.gmra.mxu0 %v9559_v31 }
 0x517   : > { %3602 = vmatpush.bf16.msra.mxu0 %v7888_v56  ;;  %v1679_v43 = vpop.xlane.xlu0 %1678 }
 0x518   : > { %v1711_v36 = vsub.f32 %v7689_v59, %v1679_v43  ;;  %v1712_v20 = vsub.f32 %v7682_v35, %v1679_v43  ;;  %v2642_v47 = vpop.f32.mrf.mxu2  ;;  %v1854_v35 = vmul.f32 %v7820_v30, %v7569_v49  ;;  %v7929_v43 = vpop.permute.xlu2 %3665 }
 0x519   : > { %v7900_v6 = vadd.f32 %v2642_v47, %v2593_v26  ;;  %v5014_v26 = vld [vmem:[#allocation3 + $0x84] sm:$0xf] }
 0x51a   : > { %v1771_v56 = vmul.f32 1.442695, %v1711_v36  ;;  %v1773_v32 = vmul.f32 1.442695, %v1712_v20  ;;  %v7910_v59 = vpop.f32.mrf.mxu1  ;;  %v7912_v51 = vor.u32 %v5162_v44, %v5014_v26  ;;  %v9564_v36 = vld [vmem:[#allocation21_spill] sm:$0xff]  ;;  %v1886_v49 = vmul.f32 %v1854_v35, %v7627_v52  ;;  %v9566_v52 = vld [vmem:[#allocation22_spill] sm:$0xff] }
 0x51b   : > { %3603 = vmatpush.bf16.msra.mxu0 %v7896_v8  ;;  %9562 = vst [vmem:[#allocation27_spill] sm:$0xff] %v7910_v59  ;;  %v8326_v8 = vld [vmem:[%s5986_s18 + $0xc8] sm:$0xff] }
 0x51c   : > { %5405 = vpow2.f32 %v1771_v56  ;;  %9563 = vst [vmem:[#allocation37_spill] sm:$0xff] %v7912_v51  ;;  %v1912_v56 = vpack.c.bf16 %v1886_v49, %v1884_v1 }
 0x51d   : > { %5407 = vpow2.f32 %v1773_v32  ;;  %9613 = vst [vmem:[#allocation55_spill] sm:$0xff] %v8326_v8 }
 0x51e   : > { %5409 = vrcp.f32 %v1799_v62 }
 0x51f   : > { %3604 = vmatpush.bf16.msra.mxu0 %v7903_v15  ;;  %v1805_v10 = vpop.xlane.xlu0 %1804  ;;  %v4975_v15 = vld [vmem:[%s5976_s13 + $0x2d8] sm:$0xff] }
 0x520   : > { %4932 = vmatmul.msk.bf16.vlgmr.msrb.gmra.mxu1 %vm1368_vm5, %v9564_v36  ;;  %4940 = vmatmul.msk.bf16.vlgmr.msrb.gmra.mxu2 %vm1368_vm5, %v9564_v36  ;;  %v7918_v16 = vpop.f32.mrf.mxu2  ;;  %v7937_v53 = vpop.permute.xlu2 %3667 }
 0x521   : > { %9565 = vst [vmem:[#allocation62_spill] sm:$0xff] %v7918_v16 }
 0x522   : > { %v7922_v40 = vpop.eup %5405  ;;  %v2598_v31 = vpop.f32.mrf.mxu1 }
 0x523   : > { %3605 = vmatpush.bf16.msra.mxu0 %v7912_v51  ;;  %v7925_v30 = vpop.eup %5407 }
 0x524   : > { %v1821_v38 = vadd.f32 %v7925_v30, %v7922_v40  ;;  %v5410_v32 = vpop.eup %5409 }
 0x525   : > { %v1855_v44 = vmul.f32 %v5410_v32, %v7641_v0  ;;  %v1856_v35 = vmul.f32 %v5410_v32, %v7647_v28  ;;  %v5631_v0 = vld [vmem:[#allocation2 + $0x30] sm:$0xff] }
 0x526   : > { %1822 = vadd.xlane.f32.xlu0 %v1821_v38  ;;  %2787 = vmatmul.bf16.gmra.mxu0 %v1912_v56 }
 0x527   : > { %v1808_v36 = vpop.xlane.xlu0 %1807  ;;  %v1887_v49 = vmul.f32 %v1855_v44, %v7664_v7  ;;  %v1888_v56 = vmul.f32 %v1856_v35, %v7672_v46 }
 0x528   : > { %v2647_v25 = vpop.f32.mrf.mxu2 }
 0x529   : > { %v7931_v20 = vadd.f32 %v2647_v25, %v2598_v31 }
 0x52d   : > { %v1802_v47 = vpop.xlane.xlu1 %1801 }
 0x52e   : > { %5411 = vrcp.f32 %v1802_v47 }
 0x52f   : > { %5413 = vrcp.f32 %v1808_v36 }
 0x530   : > { %4933 = vmatmul.msk.bf16.gmra.mxu1 %vm1368_vm5, %v9566_v52  ;;  %4941 = vmatmul.msk.bf16.gmra.mxu2 %vm1368_vm5, %v9566_v52  ;;  %5415 = vrcp.f32 %v1805_v10  ;;  %v9568_v52 = vld [vmem:[#allocation18_spill] sm:$0xff] }
 0x534   : > { %v5412_v26 = vpop.eup %5411 }
 0x535   : > { %v1857_v62 = vmul.f32 %v5412_v26, %v7713_v60  ;;  %v1858_v1 = vmul.f32 %v5412_v26, %v7717_v63  ;;  %v5414_v63 = vpop.eup %5413  ;;  %v9571_v26 = vld [vmem:[#allocation19_spill] sm:$0xff] }
 0x536   : > { %v5416_v46 = vpop.eup %5415  ;;  %v1861_v10 = vmul.f32 %v5414_v63, %v7707_v57  ;;  %v1862_v44 = vmul.f32 %v5414_v63, %v9568_v52  ;;  %v9577_v63 = vld [vmem:[#allocation26_spill] sm:$0xff] }
 0x537   : > { %v1889_v38 = vmul.f32 %v1857_v62, %v7669_v12  ;;  %v1890_v31 = vmul.f32 %v1858_v1, %v7675_v2  ;;  %v9567_v2 = vld [vmem:[#allocation23_spill] sm:$0xff]  ;;  %v1860_v36 = vmul.f32 %v5416_v46, %v9571_v26 }
 0x538   : > { %v1893_v62 = vmul.f32 %v1861_v10, %v7743_v21  ;;  %v1894_v1 = vmul.f32 %v1862_v44, %v7749_v39  ;;  %v9573_v21 = vld [vmem:[#allocation24_spill] sm:$0xff]  ;;  %v7980_v39 = vpop.f32.mrf.mxu2 }
 0x539   : > { %v1913_v25 = vpack.c.bf16 %v1889_v38, %v1887_v49  ;;  %v1914_v47 = vpack.c.bf16 %v1890_v31, %v1888_v56  ;;  %v1892_v56 = vmul.f32 %v1860_v36, %v7746_v18  ;;  %v7978_v18 = vpop.f32.mrf.mxu1  ;;  %9576 = vst [vmem:[#allocation43_spill] sm:$0xff] %v7980_v39 }
 0x53a   : > { %3675 = vrot.lane.b32.xlu0 %v5631_v0, %s5806_s24  ;;  %v9572_v0 = vld [vmem:[#allocation72_spill] sm:$0xff]  ;;  %9575 = vst [vmem:[#allocation42_spill] sm:$0xff] %v7978_v18  ;;  %v4957_v18 = vld [vmem:[%s5976_s13 + $0x248] sm:$0xff] }
 0x53b   : > { %v1682_v28 = vpop.xlane.xlu2 %1681  ;;  %2743 = vmatmul.bf16.gmra.mxu3 %v1913_v25  ;;  %2792 = vmatmul.bf16.gmra.mxu0 %v1914_v47  ;;  %v1916_v47 = vpack.c.bf16 %v1894_v1, %v1892_v56 }
 0x53c   : > { %v1713_v60 = vsub.f32 %v7729_v41, %v1682_v28  ;;  %v1714_v7 = vsub.f32 %v7727_v48, %v1682_v28  ;;  %v9569_v41 = vld [vmem:[#allocation65_spill] sm:$0xff]  ;;  %v9570_v48 = vld [vmem:[#allocation20_spill] sm:$0xff] }
 0x53d   : > { %v1859_v35 = vmul.f32 %v5416_v46, %v9570_v48  ;;  %v5632_v46 = vld [vmem:[#allocation2 + $0x38] sm:$0xff] }
 0x53e   : > { %v1775_v12 = vmul.f32 1.442695, %v1713_v60  ;;  %v1777_v32 = vmul.f32 1.442695, %v1714_v7  ;;  %v7982_v60 = vpop.permute.xlu0 %3669  ;;  %v9578_v48 = vld [vmem:[#allocation68_spill] sm:$0xff] }
 0x53f   : > { %v1891_v57 = vmul.f32 %v1859_v35, %v7740_v5  ;;  %v9574_v5 = vld [vmem:[#allocation73_spill] sm:$0xff] }
 0x540   : > { %5417 = vpow2.f32 %v1775_v12  ;;  %4934 = vmatmul.msk.bf16.gmra.mxu1 %vm1368_vm5, %v9567_v2  ;;  %4942 = vmatmul.msk.bf16.gmra.mxu2 %vm1368_vm5, %v9567_v2 }
 0x541   : > { %5419 = vpow2.f32 %v1777_v32  ;;  %v1915_v25 = vpack.c.bf16 %v1893_v62, %v1891_v57  ;;  %v2729_v32 = vpop.f32.mrf.mxu3 }
 0x542   : > { %4280 = vrot.lane.b32.xlu0 %v9569_v41, %s5805_s21 }
 0x546   : > { %v7962_v49 = vpop.eup %5417 }
 0x547   : > { %v7964_v38 = vpop.eup %5419 }
 0x548   : > { %v1824_v31 = vadd.f32 %v7964_v38, %v7962_v49 }
 0x549   : > { %v7997_v1 = vpop.f32.mrf.mxu3 }
 0x54a   : > { %1825 = vadd.xlane.f32.xlu2 %v1824_v31  ;;  %4270 = vrot.lane.b32.xlu0 %v9572_v0, %s5805_s21  ;;  %9580 = vst [vmem:[#allocation54_spill] sm:$0xff] %v7997_v1 }
 0x54b   : > { %2748 = vmatmul.bf16.gmra.mxu3 %v1915_v25  ;;  %2797 = vmatmul.bf16.gmra.mxu0 %v1916_v47 }
 0x550   : > { %4935 = vmatmul.msk.bf16.gmra.mxu1 %vm1368_vm5, %v9573_v21  ;;  %4943 = vmatmul.msk.bf16.gmra.mxu2 %vm1368_vm5, %v9573_v21 }
 0x552   : > { %4268 = vrot.lane.b32.xlu0 %v9574_v5, %s5805_s21  ;;  %v9581_v5 = vld [vmem:[#allocation25_spill] sm:$0xff] }
 0x55b   : > { %v2603_v28 = vpop.f32.mrf.mxu1 }
 0x55c   : > { %v1811_v7 = vpop.xlane.xlu2 %1810 }
 0x55d   : > { %5421 = vrcp.f32 %v1811_v7 }
 0x560   : > { %4936 = vmatmul.msk.bf16.gmra.mxu1 %vm1368_vm5, %v9577_v63  ;;  %4944 = vmatmul.msk.bf16.gmra.mxu2 %vm1368_vm5, %v9577_v63 }
 0x561   : > { %v2652_v12 = vpop.f32.mrf.mxu2 }
 0x562   : > { %3677 = vrot.lane.b32.xlu2 %v5632_v46, %s5806_s24  ;;  %v7989_v2 = vadd.f32 %v2652_v12, %v2603_v28  ;;  %v9586_v46 = vld [vmem:[#allocation33_spill] sm:$0xff] }
 0x563   : > { %v2605_v10 = vpop.f32.mrf.mxu1  ;;  %v5422_v44 = vpop.eup %5421 }
 0x564   : > { %v1863_v26 = vmul.f32 %v5422_v44, %v7764_v13  ;;  %v1864_v36 = vmul.f32 %v5422_v44, %v7766_v55 }
 0x565   : > { %v1814_v52 = vpop.xlane.xlu0 %1813 }
 0x566   : > { %5423 = vrcp.f32 %v1814_v52  ;;  %v1895_v25 = vmul.f32 %v1863_v26, %v7778_v27  ;;  %v1896_v0 = vmul.f32 %v1864_v36, %v7781_v58  ;;  %v2734_v58 = vpop.f32.mrf.mxu3  ;;  %v2730_v52 = vadd.f32 %v2729_v32, %v7775_v29 }
 0x569   : > { %v2654_v41 = vpop.f32.mrf.mxu2 }
 0x56a   : > { %4276 = vrot.lane.b32.xlu2 %v9578_v48, %s5805_s21  ;;  %v7993_v35 = vadd.f32 %v2654_v41, %v2605_v10 }
 0x56c   : > { %9579 = vst [vmem:[#allocation40_spill] sm:$0xff] %v7993_v35  ;;  %v5424_v62 = vpop.eup %5423 }
 0x56d   : > { %v1865_v57 = vmul.f32 %v5424_v62, %v7792_v9  ;;  %v1866_v56 = vmul.f32 %v5424_v62, %v7796_v22  ;;  %v2608_v31 = vpop.f32.mrf.mxu1  ;;  %v9582_v9 = vld [vmem:[#allocation69_spill] sm:$0xff] }
 0x56e   : > { %v8017_v12 = vpop.f32.mrf.mxu3 }
 0x56f   : > { %v1897_v47 = vmul.f32 %v1865_v57, %v7773_v23  ;;  %v1898_v21 = vmul.f32 %v1866_v56, %v7784_v61  ;;  %v9583_v61 = vld [vmem:[#allocation71_spill] sm:$0xff]  ;;  %9585 = vst [vmem:[#allocation49_spill] sm:$0xff] %v8017_v12 }
 0x570   : > { %4937 = vmatmul.msk.bf16.gmra.mxu1 %vm1368_vm5, %v9581_v5  ;;  %4945 = vmatmul.msk.bf16.gmra.mxu2 %vm1368_vm5, %v9581_v5  ;;  %v8234_v12 = vld [vmem:[%s5986_s18 + $0x50] sm:$0xff] }
 0x571   : > { %v1917_v13 = vpack.c.bf16 %v1897_v47, %v1895_v25  ;;  %v1918_v55 = vpack.c.bf16 %v1898_v21, %v1896_v0 }
 0x572   : > { %4274 = vrot.lane.b32.xlu2 %v9582_v9, %s5805_s21  ;;  %v2735_v9 = vadd.f32 %v2734_v58, %v7812_v14 }
 0x573   : > { %v2657_v22 = vpop.f32.mrf.mxu2  ;;  %2753 = vmatmul.bf16.gmra.mxu3 %v1917_v13  ;;  %2802 = vmatmul.bf16.gmra.mxu0 %v1918_v55  ;;  %v9591_v13 = vld [vmem:[#allocation58_spill] sm:$0xff] }
 0x574   : > { %v8011_v27 = vadd.f32 %v2657_v22, %v2608_v31  ;;  %v9588_v31 = vld [vmem:[#allocation74_spill] sm:$0xff] }
 0x575   : > { %v2610_v23 = vpop.f32.mrf.mxu1 }
 0x57a   : > { %4272 = vrot.lane.b32.xlu2 %v9583_v61, %s5805_s21 }
 0x57b   : > { %v2659_v28 = vpop.f32.mrf.mxu2 }
 0x57c   : > { %v8015_v7 = vadd.f32 %v2659_v28, %v2610_v23 }
 0x57d   : > { %v2613_v63 = vpop.f32.mrf.mxu1 }
 0x57e   : > { %9584 = vst [vmem:[#allocation79_spill] sm:$0xff] %v8015_v7  ;;  %v8259_v7 = vld [vmem:[%s5986_s18 + $0x80] sm:$0xff] }
 0x57f   : > { %9607 = vst [vmem:[#allocation67_spill] sm:$0xff] %v8259_v7 }
 0x580   : > { %4938 = vmatmul.msk.bf16.gmra.mxu1 %vm1368_vm5, %v9586_v46  ;;  %4946 = vmatmul.msk.bf16.gmra.mxu2 %vm1368_vm5, %v9586_v46 }
 0x581   : > { %v1817_v10 = vpop.xlane.xlu2 %1816 }
 0x582   : > { %4294 = vrot.lane.b32.xlu2 %v7845_v34, %s5805_s21  ;;  %5425 = vrcp.f32 %v1817_v10  ;;  %v9595_v10 = vld [vmem:[#allocation32_spill] sm:$0xff] }
 0x583   : > { %v2662_v44 = vpop.f32.mrf.mxu2  ;;  %v2778_v41 = vpop.f32.mrf.mxu0 }
 0x584   : > { %v8026_v48 = vadd.f32 %v2662_v44, %v2613_v63  ;;  %v8028_v26 = vadd.f32 %v2778_v41, %v2730_v52  ;;  %v4948_v44 = vld [vmem:[%s5976_s13 + $0x200] sm:$0xff] }
 0x585   : > { %v2615_v36 = vpop.f32.mrf.mxu1 }
 0x586   : > { %9587 = vst [vmem:[#allocation48_spill] sm:$0xff] %v8028_v26  ;;  %v8277_v26 = vld [vmem:[%s5986_s18 + $0x98] sm:$0xff] }
 0x588   : > { %v2739_v62 = vpop.f32.mrf.mxu3  ;;  %v5426_v29 = vpop.eup %5425 }
 0x589   : > { %v2740_v57 = vadd.f32 %v2739_v62, %v7900_v6  ;;  %v1820_v56 = vpop.xlane.xlu2 %1819  ;;  %v1867_v0 = vmul.f32 %v5426_v29, %v7866_v42  ;;  %v1868_v21 = vmul.f32 %v5426_v29, %v7870_v24 }
 0x58a   : > { %4266 = vrot.lane.b32.xlu2 %v9588_v31, %s5805_s21  ;;  %5427 = vrcp.f32 %v1820_v56  ;;  %v8068_v56 = vpop.permute.xlu1 %3671 }
 0x58b   : > { %v2664_v25 = vpop.f32.mrf.mxu2  ;;  %v8033_v34 = vpop.f32.mrf.mxu0  ;;  %v1899_v61 = vmul.f32 %v1867_v0, %v7815_v45  ;;  %v1900_v24 = vmul.f32 %v1868_v21, %v7818_v4 }
 0x58c   : > { %9589 = vst [vmem:[#allocation76_spill] sm:$0xff] %v8033_v34  ;;  %v8035_v32 = vadd.f32 %v2664_v25, %v2615_v36  ;;  %v4949_v36 = vld [vmem:[%s5976_s13 + $0x208] sm:$0xff] }
 0x58d   : > { %v2618_v47 = vpop.f32.mrf.mxu1  ;;  %v8071_v25 = vld [vmem:[%s5986_s18 + $0x8] sm:$0xff] }
 0x58e   : > { %9590 = vst [vmem:[#allocation64_spill] sm:$0xff] %v8035_v32 }
 0x590   : > { %v5428_v5 = vpop.eup %5427  ;;  %4939 = vmatmul.msk.bf16.gmra.mxu1 %vm1368_vm5, %v9591_v13  ;;  %4947 = vmatmul.msk.bf16.gmra.mxu2 %vm1368_vm5, %v9591_v13 }
 0x591   : > { %v1869_v6 = vmul.f32 %v5428_v5, %v7884_v33  ;;  %v1870_v55 = vmul.f32 %v5428_v5, %v7886_v11 }
 0x593   : > { %v2667_v22 = vpop.f32.mrf.mxu2  ;;  %v2783_v23 = vpop.f32.mrf.mxu0  ;;  %v1901_v42 = vmul.f32 %v1869_v6, %v7805_v17  ;;  %v1902_v28 = vmul.f32 %v1870_v55, %v7808_v37  ;;  %v8063_v37 = vld [vmem:[%s5986_s18] sm:$0xff]  ;;  %v8083_v6 = vld [vmem:[%s5986_s18 + $0x10] sm:$0xff] }
 0x594   : > { %v8050_v63 = vadd.f32 %v2667_v22, %v2618_v47  ;;  %v8052_v46 = vadd.f32 %v2783_v23, %v2735_v9  ;;  %v4950_v9 = vld [vmem:[%s5976_s13 + $0x210] sm:$0xff]  ;;  %v4951_v23 = vld [vmem:[%s5976_s13 + $0x218] sm:$0xff] }
 0x595   : > { %v2620_v33 = vpop.f32.mrf.mxu1  ;;  %v1919_v11 = vpack.c.bf16 %v1901_v42, %v1899_v61  ;;  %v1920_v14 = vpack.c.bf16 %v1902_v28, %v1900_v24  ;;  %v8094_v28 = vpop.permute.xlu1 %3673 }
 0x596   : > { %9592 = vst [vmem:[#allocation75_spill] sm:$0xff] %v8052_v46  ;;  %v4971_v46 = vld [vmem:[%s5976_s13 + $0x2b8] sm:$0xff] }
 0x597   : > { %2758 = vmatmul.bf16.gmra.mxu3 %v1919_v11  ;;  %2807 = vmatmul.bf16.gmra.mxu0 %v1920_v14 }
 0x599   : > { %v1823_v31 = vpop.xlane.xlu0 %1822 }
 0x59a   : > { %5429 = vrcp.f32 %v1823_v31 }
 0x59b   : > { %v2669_v45 = vpop.f32.mrf.mxu2  ;;  %v8054_v58 = vpop.f32.mrf.mxu0 }
 0x59c   : > { %9593 = vst [vmem:[#allocation50_spill] sm:$0xff] %v8054_v58  ;;  %v8056_v17 = vadd.f32 %v2669_v45, %v2620_v33  ;;  %v8107_v45 = vld [vmem:[%s5986_s18 + $0x20] sm:$0xff] }
 0x59d   : > { %v2979_v4 = vpop.f32.mrf.mxu1 }
 0x59e   : > { %9594 = vst [vmem:[#allocation85_spill] sm:$0xff] %v8056_v17  ;;  %v3068_v52 = vmul.f32 %v8063_v37, %v2979_v4 }
 0x5a0   : > { %5044 = vmatmul.msk.bf16.vlgmr.msra.gmra.mxu1 %vm1368_vm5, %v9595_v10  ;;  %5052 = vmatmul.msk.bf16.vlgmr.msra.gmra.mxu2 %vm1368_vm5, %v9595_v10  ;;  %v8076_v21 = vadd.f32 %v4948_v44, %v3068_v52  ;;  %v4952_v10 = vld [vmem:[%s5976_s13 + $0x220] sm:$0xff]  ;;  %v4953_v44 = vld [vmem:[%s5976_s13 + $0x228] sm:$0xff] }
 0x5a3   : > { %v3028_v41 = vpop.f32.mrf.mxu2  ;;  %v2788_v62 = vpop.f32.mrf.mxu0 }
 0x5a4   : > { %v3069_v29 = vmul.f32 %v8071_v25, %v3028_v41  ;;  %v8074_v47 = vadd.f32 %v2788_v62, %v2740_v57  ;;  %v8089_v57 = vld [vmem:[%s5986_s18 + $0x18] sm:$0xff] }
 0x5a5   : > { %v2981_v0 = vpop.f32.mrf.mxu1 }
 0x5a6   : > { %9596 = vst [vmem:[#allocation86_spill] sm:$0xff] %v8074_v47  ;;  %v8078_v5 = vadd.f32 %v4949_v36, %v3069_v29  ;;  %v3070_v55 = vmul.f32 %v8083_v6, %v2981_v0  ;;  %v8115_v36 = vld [vmem:[%s5986_s18 + $0x28] sm:$0xff]  ;;  %v8118_v0 = vpop.f32.mrf.mxu3 }
 0x5a7   : > { %9598 = vst [vmem:[#allocation47_spill] sm:$0xff] %v8118_v0  ;;  %v8158_v0 = vld [vmem:[%s5986_s18 + $0x48] sm:$0xff] }
 0x5a8   : > { %v3165_v13 = vmax.f32 %v8076_v21, %v8078_v5  ;;  %v8096_v33 = vadd.f32 %v4950_v9, %v3070_v55  ;;  %v4279_v9 = vpop.permute.xlu1 %4278 }
 0x5aa   : > { %3166 = vmax.xlane.f32.xlu1 %v3165_v13 }
 0x5ab   : > { %v3030_v22 = vpop.f32.mrf.mxu2  ;;  %v8112_v41 = vpop.f32.mrf.mxu0 }
 0x5ac   : > { %v3071_v61 = vmul.f32 %v8089_v57, %v3030_v22  ;;  %v8092_v42 = vpop.permute.xlu0 %3675  ;;  %9597 = vst [vmem:[#allocation30_spill] sm:$0xff] %v8112_v41 }
 0x5ad   : > { %v2984_v24 = vpop.f32.mrf.mxu1 }
 0x5ae   : > { %v8098_v11 = vadd.f32 %v4951_v23, %v3071_v61  ;;  %v3072_v4 = vmul.f32 %v8107_v45, %v2984_v24  ;;  %v8127_v23 = vld [vmem:[%s5986_s18 + $0x30] sm:$0xff] }
 0x5af   : > { %v4954_v24 = vld [vmem:[%s5976_s13 + $0x230] sm:$0xff] }
 0x5b0   : > { %5045 = vmatmul.msk.bf16.gmra.mxu1 %vm1368_vm5, %v7929_v43  ;;  %5053 = vmatmul.msk.bf16.gmra.mxu2 %vm1368_vm5, %v7929_v43  ;;  %v3168_v14 = vmax.f32 %v8096_v33, %v8098_v11  ;;  %v8120_v13 = vadd.f32 %v4952_v10, %v3072_v4  ;;  %v8133_v4 = vld [vmem:[%s5986_s18 + $0x38] sm:$0xff] }
 0x5b2   : > { %3169 = vmax.xlane.f32.xlu1 %v3168_v14 }
 0x5b3   : > { %v3033_v52 = vpop.f32.mrf.mxu2 }
 0x5b4   : > { %v3073_v62 = vmul.f32 %v8115_v36, %v3033_v52  ;;  %v4281_v43 = vpop.permute.xlu0 %4280  ;;  %v4955_v52 = vld [vmem:[%s5976_s13 + $0x238] sm:$0xff] }
 0x5b5   : > { %v2986_v29 = vpop.f32.mrf.mxu1  ;;  %4314 = vmatpush.bf16.msra.mxu3 %v4281_v43 }
 0x5b6   : > { %v8122_v55 = vadd.f32 %v4953_v44, %v3073_v62  ;;  %v3074_v61 = vmul.f32 %v8127_v23, %v2986_v29 }
 0x5b8   : > { %v3171_v22 = vmax.f32 %v8120_v13, %v8122_v55  ;;  %v2793_v43 = vpop.f32.mrf.mxu0  ;;  %v8136_v39 = vadd.f32 %v4954_v24, %v3074_v61  ;;  %v8150_v24 = vld [vmem:[%s5986_s18 + $0x40] sm:$0xff] }
 0x5b9   : > { %4315 = vmatpush.bf16.msra.mxu3 %v4279_v9 }
 0x5ba   : > { %3172 = vmax.xlane.f32.xlu2 %v3171_v22  ;;  %v5430_v22 = vpop.eup %5429 }
 0x5bb   : > { %v3035_v14 = vpop.f32.mrf.mxu2 }
 0x5bc   : > { %v3075_v10 = vmul.f32 %v8133_v4, %v3035_v14 }
 0x5bd   : > { %v1826_v44 = vpop.xlane.xlu2 %1825  ;;  %v2989_v62 = vpop.f32.mrf.mxu1 }
 0x5be   : > { %v8138_v31 = vadd.f32 %v4955_v52, %v3075_v10  ;;  %5431 = vrcp.f32 %v1826_v44  ;;  %v2744_v29 = vpop.f32.mrf.mxu3  ;;  %v3076_v52 = vmul.f32 %v8150_v24, %v2989_v62  ;;  %v1871_v10 = vmul.f32 %v5430_v22, %v7922_v40  ;;  %v4956_v44 = vld [vmem:[%s5976_s13 + $0x240] sm:$0xff] }
 0x5bf   : > { %v2745_v9 = vadd.f32 %v2744_v29, %v7931_v20  ;;  %v1872_v20 = vmul.f32 %v5430_v22, %v7925_v30 }
 0x5c0   : > { %5046 = vmatmul.msk.bf16.gmra.mxu1 %vm1368_vm5, %v7937_v53  ;;  %5054 = vmatmul.msk.bf16.gmra.mxu2 %vm1368_vm5, %v7937_v53  ;;  %v3174_v14 = vmax.f32 %v8136_v39, %v8138_v31  ;;  %v8169_v40 = vpop.f32.mrf.mxu0  ;;  %v1903_v59 = vmul.f32 %v1871_v10, %v7861_v19  ;;  %v9602_v19 = vld [vmem:[#allocation34_spill] sm:$0xff] }
 0x5c1   : > { %v8147_v61 = vadd.f32 %v2793_v43, %v2745_v9  ;;  %9600 = vst [vmem:[#allocation61_spill] sm:$0xff] %v8169_v40  ;;  %v4959_v40 = vld [vmem:[%s5976_s13 + $0x258] sm:$0xff] }
 0x5c2   : > { %3175 = vmax.xlane.f32.xlu2 %v3174_v14  ;;  %v8167_v14 = vadd.f32 %v4956_v44, %v3076_v52 }
 0x5c3   : > { %9599 = vst [vmem:[#allocation17_spill] sm:$0xff] %v8147_v61  ;;  %v3038_v29 = vpop.f32.mrf.mxu2  ;;  %v8271_v61 = vld [vmem:[%s5986_s18 + $0xb0] sm:$0xff] }
 0x5c4   : > { %v5432_v41 = vpop.eup %5431  ;;  %v3077_v53 = vmul.f32 %v8158_v0, %v3038_v29  ;;  %9609 = vst [vmem:[#allocation57_spill] sm:$0xff] %v8271_v61 }
 0x5c5   : > { %v1873_v43 = vmul.f32 %v5432_v41, %v7962_v49  ;;  %v1874_v9 = vmul.f32 %v5432_v41, %v7964_v38  ;;  %v8163_v16 = vpop.permute.xlu2 %3677  ;;  %v8165_v62 = vpop.f32.mrf.mxu1  ;;  %v1904_v49 = vmul.f32 %v1872_v20, %v7864_v54 }
 0x5c6   : > { %v8171_v30 = vadd.f32 %v4957_v18, %v3077_v53  ;;  %v8173_v22 = vpop.f32.mrf.mxu3  ;;  %v4960_v53 = vld [vmem:[%s5976_s13 + $0x260] sm:$0xff] }
 0x5c7   : > { %9601 = vst [vmem:[#allocation59_spill] sm:$0xff] %v8173_v22  ;;  %v1905_v29 = vmul.f32 %v1873_v43, %v7848_v3  ;;  %v1906_v38 = vmul.f32 %v1874_v9, %v7851_v50  ;;  %v4961_v9 = vld [vmem:[%s5976_s13 + $0x268] sm:$0xff] }
 0x5c8   : > { %v3177_v41 = vmax.f32 %v8167_v14, %v8171_v30  ;;  %v2798_v20 = vpop.f32.mrf.mxu0 }
 0x5c9   : > { %v1921_v58 = vpack.c.bf16 %v1905_v29, %v1903_v59  ;;  %v1922_v52 = vpack.c.bf16 %v1906_v38, %v1904_v49 }
 0x5ca   : > { %3178 = vmax.xlane.f32.xlu2 %v3177_v41 }
 0x5cb   : > { %2763 = vmatmul.bf16.gmra.mxu3 %v1921_v58  ;;  %2812 = vmatmul.bf16.gmra.mxu0 %v1922_v52  ;;  %v3040_v18 = vpop.f32.mrf.mxu2  ;;  %v8191_v58 = vld [vmem:[%s5986_s18 + $0x60] sm:$0xff] }
 0x5cc   : > { %4296 = vrot.lane.b32.xlu1 %v9602_v19, %s5805_s21  ;;  %v4271_v19 = vpop.permute.xlu0 %4270 }
 0x5cd   : > { %v4277_v3 = vpop.permute.xlu2 %4276  ;;  %v2994_v54 = vpop.f32.mrf.mxu1 }
 0x5ce   : > { %4316 = vmatpush.bf16.msra.mxu3 %v4277_v3  ;;  %v2749_v50 = vpop.f32.mrf.mxu3  ;;  %v3080_v44 = vmul.f32 %v8191_v58, %v2994_v54  ;;  %v8207_v3 = vld [vmem:[%s5986_s18 + $0x70] sm:$0xff] }
 0x5cf   : > { %v2750_v10 = vadd.f32 %v2749_v50, %v7989_v2  ;;  %v8197_v2 = vld [vmem:[%s5986_s18 + $0x68] sm:$0xff]  ;;  %v4962_v50 = vld [vmem:[%s5976_s13 + $0x270] sm:$0xff] }
 0x5d0   : > { %5047 = vmatmul.msk.bf16.gmra.mxu1 %vm1368_vm5, %v7982_v60  ;;  %5055 = vmatmul.msk.bf16.gmra.mxu2 %vm1368_vm5, %v7982_v60  ;;  %v8200_v60 = vadd.f32 %v4960_v53, %v3080_v44  ;;  %v8243_v1 = vpop.f32.mrf.mxu0 }
 0x5d1   : > { %v8188_v59 = vadd.f32 %v2798_v20, %v2750_v10  ;;  %v4963_v20 = vld [vmem:[%s5976_s13 + $0x278] sm:$0xff]  ;;  %9605 = vst [vmem:[#allocation52_spill] sm:$0xff] %v8243_v1 }
 0x5d3   : > { %9603 = vst [vmem:[#allocation82_spill] sm:$0xff] %v8188_v59  ;;  %v3043_v43 = vpop.f32.mrf.mxu2 }
 0x5d4   : > { %v3081_v29 = vmul.f32 %v8197_v2, %v3043_v43  ;;  %v8213_v43 = vld [vmem:[%s5986_s18 + $0x78] sm:$0xff] }
 0x5d5   : > { %v4275_v49 = vpop.permute.xlu2 %4274  ;;  %v2996_v38 = vpop.f32.mrf.mxu1 }
 0x5d6   : > { %v8202_v41 = vadd.f32 %v4961_v9, %v3081_v29  ;;  %4317 = vmatpush.bf16.msra.mxu3 %v4275_v49  ;;  %v3082_v54 = vmul.f32 %v8207_v3, %v2996_v38 }
 0x5d8   : > { %v3183_v52 = vmax.f32 %v8200_v60, %v8202_v41  ;;  %v8216_v29 = vadd.f32 %v4962_v50, %v3082_v54  ;;  %v4269_v54 = vpop.permute.xlu0 %4268 }
 0x5da   : > { %3184 = vmax.xlane.f32.xlu2 %v3183_v52 }
 0x5db   : > { %v3045_v10 = vpop.f32.mrf.mxu2 }
 0x5dc   : > { %v3083_v44 = vmul.f32 %v8213_v43, %v3045_v10 }
 0x5dd   : > { %v4273_v53 = vpop.permute.xlu2 %4272  ;;  %v2999_v9 = vpop.f32.mrf.mxu1 }
 0x5de   : > { %v8218_v49 = vadd.f32 %v4963_v20, %v3083_v44  ;;  %4318 = vmatpush.bf16.msra.mxu3 %v4273_v53  ;;  %v8229_v44 = vld [vmem:[%s5986_s18 + $0x58] sm:$0xff] }
 0x5df   : > { %v3079_v53 = vmul.f32 %v8229_v44, %v3040_v18 }
 0x5e0   : > { %5048 = vmatmul.msk.bf16.gmra.mxu1 %vm1368_vm5, %v8068_v56  ;;  %5056 = vmatmul.msk.bf16.gmra.mxu2 %vm1368_vm5, %v8068_v56  ;;  %v3186_v38 = vmax.f32 %v8216_v29, %v8218_v49 }
 0x5e1   : > { %v8241_v34 = vadd.f32 %v4959_v40, %v3079_v53  ;;  %v4965_v53 = vld [vmem:[%s5976_s13 + $0x288] sm:$0xff] }
 0x5e2   : > { %4319 = vmatpush.bf16.msra.mxu3 %v4271_v19  ;;  %3187 = vmax.xlane.f32.xlu2 %v3186_v38  ;;  %v3078_v19 = vmul.f32 %v8234_v12, %v8165_v62  ;;  %v8238_v38 = vpop.f32.mrf.mxu3  ;;  %v8252_v62 = vld [vmem:[%s5986_s18 + $0x88] sm:$0xff] }
 0x5e3   : > { %v3048_v52 = vpop.f32.mrf.mxu2  ;;  %9604 = vst [vmem:[#allocation51_spill] sm:$0xff] %v8238_v38 }
 0x5e4   : > { %9606 = vst [vmem:[#allocation78_spill] sm:$0xff] %v8252_v62 }
 0x5e5   : > { %v8226_v50 = vpop.permute.xlu2 %4294  ;;  %v3001_v10 = vpop.f32.mrf.mxu1 }
 0x5e6   : > { %4320 = vmatpush.bf16.msra.mxu3 %v4269_v54  ;;  %v4958_v54 = vld [vmem:[%s5976_s13 + $0x250] sm:$0xff] }
 0x5e7   : > { %v8249_v18 = vadd.f32 %v4958_v54, %v3078_v19  ;;  %v4964_v54 = vld [vmem:[%s5976_s13 + $0x280] sm:$0xff] }
 0x5e9   : > { %v3180_v40 = vmax.f32 %v8249_v18, %v8241_v34 }
 0x5eb   : > { %v3050_v20 = vpop.f32.mrf.mxu2 }
 0x5ed   : > { %v4267_v56 = vpop.permute.xlu2 %4266  ;;  %v3004_v22 = vpop.f32.mrf.mxu1 }
 0x5ee   : > { %4321 = vmatpush.bf16.msra.mxu3 %v4267_v56  ;;  %v3085_v56 = vmul.f32 %v8252_v62, %v3048_v52  ;;  %v8330_v62 = vld [vmem:[%s5986_s18 + $0xd8] sm:$0xff] }
 0x5ef   : > { %9614 = vst [vmem:[#allocation56_spill] sm:$0xff] %v8330_v62 }
 0x5f0   : > { %5049 = vmatmul.msk.bf16.gmra.mxu1 %vm1368_vm5, %v8094_v28  ;;  %5057 = vmatmul.msk.bf16.gmra.mxu2 %vm1368_vm5, %v8094_v28  ;;  %v3084_v28 = vmul.f32 %v8259_v7, %v2999_v9  ;;  %v8264_v52 = vadd.f32 %v4965_v53, %v3085_v56  ;;  %v2803_v38 = vpop.f32.mrf.mxu0  ;;  %v4970_v9 = vld [vmem:[%s5976_s13 + $0x2b0] sm:$0xff]  ;;  %v8281_v56 = vld [vmem:[%s5986_s18 + $0xb8] sm:$0xff] }
 0x5f1   : > { %9610 = vst [vmem:[#allocation39_spill] sm:$0xff] %v8281_v56 }
 0x5f2   : > { %v8268_v59 = vadd.f32 %v4964_v54, %v3084_v28 }
 0x5f3   : > { %v3053_v17 = vpop.f32.mrf.mxu2 }
 0x5f5   : > { %v3006_v32 = vpop.f32.mrf.mxu1 }
 0x5f6   : > { %3181 = vmax.xlane.f32.xlu1 %v3180_v40  ;;  %v2754_v19 = vpop.f32.mrf.mxu3  ;;  %v3090_v47 = vmul.f32 %v8271_v61, %v3006_v32  ;;  %v5657_v61 = vld [vmem:[%s5986_s18 + $0xd0] sm:$0xff] }
 0x5f7   : > { %v2755_v1 = vadd.f32 %v2754_v19, %v8011_v27  ;;  %v3087_v27 = vmul.f32 %v8277_v26, %v3050_v20  ;;  %v8288_v19 = vld [vmem:[%s5986_s18 + $0x90] sm:$0xff] }
 0x5f8   : > { %v3086_v32 = vmul.f32 %v8288_v19, %v3001_v10  ;;  %v8291_v54 = vadd.f32 %v4970_v9, %v3090_v47  ;;  %v4966_v20 = vld [vmem:[%s5976_s13 + $0x290] sm:$0xff]  ;;  %v8307_v9 = vld [vmem:[%s5986_s18 + $0xa8] sm:$0xff] }
 0x5f9   : > { %v8266_v35 = vadd.f32 %v2803_v38, %v2755_v1  ;;  %v3189_v1 = vmax.f32 %v8268_v59, %v8264_v52  ;;  %v4967_v38 = vld [vmem:[%s5976_s13 + $0x298] sm:$0xff]  ;;  %9611 = vst [vmem:[#allocation63_spill] sm:$0xff] %v8307_v9 }
 0x5fa   : > { %v8304_v47 = vadd.f32 %v4966_v20, %v3086_v32  ;;  %v4968_v20 = vld [vmem:[%s5976_s13 + $0x2a0] sm:$0xff] }
 0x5fb   : > { %9608 = vst [vmem:[#allocation77_spill] sm:$0xff] %v8266_v35  ;;  %v3055_v40 = vpop.f32.mrf.mxu2 }
 0x5fc   : > { %v3091_v53 = vmul.f32 %v8281_v56, %v3055_v40  ;;  %v8296_v40 = vadd.f32 %v4967_v38, %v3087_v27  ;;  %v3089_v27 = vmul.f32 %v8307_v9, %v3053_v17  ;;  %v8314_v38 = vld [vmem:[%s5986_s18 + $0xa0] sm:$0xff]  ;;  %v4974_v56 = vld [vmem:[%s5976_s13 + $0x2d0] sm:$0xff] }
 0x5fd   : > { %v3009_v28 = vpop.f32.mrf.mxu1  ;;  %9612 = vst [vmem:[#allocation84_spill] sm:$0xff] %v8314_v38  ;;  %v3088_v32 = vmul.f32 %v8314_v38, %v3004_v22 }
 0x5fe   : > { %v8293_v35 = vadd.f32 %v4971_v46, %v3091_v53  ;;  %3190 = vmax.xlane.f32.xlu1 %v3189_v1  ;;  %v3192_v53 = vmax.f32 %v8304_v47, %v8296_v40 }
 0x5ff   : > { %v8320_v51 = vadd.f32 %v4968_v20, %v3088_v32  ;;  %v8337_v32 = vld [vmem:[%s5986_s18 + $0xc0] sm:$0xff] }
 0x600   : > { %5050 = vmatmul.msk.bf16.gmra.mxu1 %vm1368_vm5, %v8092_v42  ;;  %5058 = vmatmul.msk.bf16.gmra.mxu2 %vm1368_vm5, %v8092_v42  ;;  %v3198_v10 = vmax.f32 %v8291_v54, %v8293_v35  ;;  %v4969_v42 = vld [vmem:[%s5976_s13 + $0x2a8] sm:$0xff]  ;;  %9615 = vst [vmem:[#allocation83_spill] sm:$0xff] %v8337_v32 }
 0x602   : > { %3199 = vmax.xlane.f32.xlu0 %v3198_v10  ;;  %v8318_v10 = vadd.f32 %v4969_v42, %v3089_v27 }
 0x603   : > { %v3058_v46 = vpop.f32.mrf.mxu2 }
 0x604   : > { %v3093_v7 = vmul.f32 %v8326_v8, %v3058_v46  ;;  %v3195_v27 = vmax.f32 %v8320_v51, %v8318_v10  ;;  %v4972_v46 = vld [vmem:[%s5976_s13 + $0x2c0] sm:$0xff] }
 0x605   : > { %v3011_v1 = vpop.f32.mrf.mxu1 }
 0x606   : > { %3193 = vmax.xlane.f32.xlu1 %v3192_v53  ;;  %v3094_v17 = vmul.f32 %v5657_v61, %v3011_v1  ;;  %v4973_v53 = vld [vmem:[%s5976_s13 + $0x2c8] sm:$0xff]  ;;  %v3092_v61 = vmul.f32 %v8337_v32, %v3009_v28 }
 0x607   : > { %v8345_v8 = vadd.f32 %v4973_v53, %v3093_v7  ;;  %v8357_v7 = vpop.f32.mrf.mxu0 }
 0x608   : > { %v8340_v1 = vadd.f32 %v4974_v56, %v3094_v17  ;;  %v8353_v56 = vadd.f32 %v4972_v46, %v3092_v61  ;;  %9621 = vst [vmem:[#allocation60_spill] sm:$0xff] %v8357_v7  ;;  %v5661_v17 = vld [vmem:[%s5986_s18 + $0xe8] sm:$0xff]  ;;  %v4976_v46 = vld [vmem:[%s5976_s13 + $0x2e0] sm:$0xff] }
 0x609   : > { %9618 = vst [vmem:[#allocation81_spill] sm:$0xff] %v8345_v8 }
 0x60a   : > { %9616 = vst [vmem:[#allocation44_spill] sm:$0xff] %v8340_v1 }
 0x60b   : > { %v3060_v9 = vpop.f32.mrf.mxu2  ;;  %9619 = vst [vmem:[#allocation70_spill] sm:$0xff] %v8353_v56 }
 0x60c   : > { %v3095_v22 = vmul.f32 %v8330_v62, %v3060_v9  ;;  %v5662_v62 = vld [vmem:[%s5986_s18 + $0xe0] sm:$0xff] }
 0x60d   : > { %v3014_v42 = vpop.f32.mrf.mxu1 }
 0x60e   : > { %v8342_v20 = vadd.f32 %v4975_v15, %v3095_v22  ;;  %3196 = vmax.xlane.f32.xlu1 %v3195_v27  ;;  %v8355_v15 = vpop.f32.mrf.mxu3  ;;  %v3201_v27 = vmax.f32 %v8353_v56, %v8345_v8  ;;  %v3096_v61 = vmul.f32 %v5662_v62, %v3014_v42  ;;  %v8377_v56 = vld [vmem:[%s5986_s18 + $0xf8] sm:$0xff] }
 0x60f   : > { %9620 = vst [vmem:[#allocation80_spill] sm:$0xff] %v8355_v15  ;;  %v8370_v15 = vld [vmem:[%s5986_s18 + $0xf0] sm:$0xff] }
 0x610   : > { %9617 = vst [vmem:[#allocation45_spill] sm:$0xff] %v8342_v20  ;;  %5051 = vmatmul.msk.bf16.gmra.mxu1 %vm1368_vm5, %v8163_v16  ;;  %5059 = vmatmul.msk.bf16.gmra.mxu2 %vm1368_vm5, %v8163_v16  ;;  %v3204_v28 = vmax.f32 %v8340_v1, %v8342_v20  ;;  %v4977_v16 = vld [vmem:[%s5976_s13 + $0x2e8] sm:$0xff]  ;;  %v4979_v1 = vld [vmem:[%s5976_s13 + $0x2f8] sm:$0xff] }
 0x611   : > { %9622 = vst [vmem:[#allocation66_spill] sm:$0xff] %v8370_v15 }
 0x612   : > { %3205 = vmax.xlane.f32.xlu0 %v3204_v28  ;;  %v8367_v28 = vadd.f32 %v4976_v46, %v3096_v61 }
 0x613   : > { %v3063_v9 = vpop.f32.mrf.mxu2 }
 0x614   : > { %v3097_v22 = vmul.f32 %v5661_v17, %v3063_v9  ;;  %v4978_v17 = vld [vmem:[%s5976_s13 + $0x2f0] sm:$0xff]  ;;  %v2808_v8 = vpop.f32.mrf.mxu0 }
 0x615   : > { %v3016_v53 = vpop.f32.mrf.mxu1 }
 0x616   : > { %3202 = vmax.xlane.f32.xlu1 %v3201_v27  ;;  %v8365_v32 = vadd.f32 %v4977_v16, %v3097_v22  ;;  %v3098_v7 = vmul.f32 %v8370_v15, %v3016_v53 }
 0x618   : > { %v3207_v42 = vmax.f32 %v8367_v28, %v8365_v32  ;;  %v8384_v53 = vadd.f32 %v4978_v17, %v3098_v7  ;;  %v5061_v17 = vld [vmem:[%s5976_s13 + $0x308] sm:$0xff] }
 0x61a   : > { %v2759_v9 = vpop.f32.mrf.mxu3 }
 0x61b   : > { %v2760_v38 = vadd.f32 %v2759_v9, %v8026_v48  ;;  %v3065_v20 = vpop.f32.mrf.mxu2 }
 0x61c   : > { %v3099_v62 = vmul.f32 %v8377_v56, %v3065_v20 }
 0x61d   : > { %v8382_v22 = vadd.f32 %v2808_v8, %v2760_v38  ;;  %v3167_v27 = vpop.xlane.xlu1 %3166  ;;  %v3792_v16 = vpop.f32.mrf.mxu1  ;;  %v5060_v38 = vld [vmem:[%s5976_s13 + $0x300] sm:$0xff] }
 0x61e   : > { %v8386_v61 = vadd.f32 %v4979_v1, %v3099_v62  ;;  %v3213_v48 = vsub.f32 %v8076_v21, %v3167_v27  ;;  %v3214_v46 = vsub.f32 %v8078_v5, %v3167_v27  ;;  %3208 = vmax.xlane.f32.xlu1 %v3207_v42  ;;  %v3881_v8 = vmul.f32 %v8063_v37, %v3792_v16 }
 0x61f   : > { %9623 = vst [vmem:[#allocation88_spill] sm:$0xff] %v8382_v22 }
 0x620   : > { %v3245_v9 = vmul.f32 1.442695, %v3213_v48  ;;  %v3247_v20 = vmul.f32 1.442695, %v3214_v46  ;;  %v3210_v15 = vmax.f32 %v8384_v53, %v8386_v61  ;;  %v8396_v5 = vadd.f32 %v5060_v38, %v3881_v8 }
 0x622   : > { %5433 = vpow2.f32 %v3245_v9  ;;  %3211 = vmax.xlane.f32.xlu2 %v3210_v15 }
 0x623   : > { %5435 = vpow2.f32 %v3247_v20  ;;  %v3841_v7 = vpop.f32.mrf.mxu2 }
 0x624   : > { %v3882_v1 = vmul.f32 %v8071_v25, %v3841_v7 }
 0x625   : > { %v3170_v62 = vpop.xlane.xlu1 %3169  ;;  %v3794_v21 = vpop.f32.mrf.mxu1 }
 0x626   : > { %v8398_v42 = vadd.f32 %v5061_v17, %v3882_v1  ;;  %v3215_v27 = vsub.f32 %v8096_v33, %v3170_v62  ;;  %v3216_v48 = vsub.f32 %v8098_v11, %v3170_v62  ;;  %v3883_v9 = vmul.f32 %v8083_v6, %v3794_v21  ;;  %v5062_v33 = vld [vmem:[%s5976_s13 + $0x310] sm:$0xff]  ;;  %v5063_v11 = vld [vmem:[%s5976_s13 + $0x318] sm:$0xff] }
 0x628   : > { %v8402_v37 = vpop.eup %5433  ;;  %v3249_v15 = vmul.f32 1.442695, %v3215_v27  ;;  %v3251_v16 = vmul.f32 1.442695, %v3216_v48  ;;  %v3978_v46 = vmax.f32 %v8396_v5, %v8398_v42  ;;  %v8414_v1 = vadd.f32 %v5062_v33, %v3883_v9  ;;  %v5065_v33 = vld [vmem:[%s5976_s13 + $0x328] sm:$0xff] }
 0x629   : > { %v8406_v25 = vpop.eup %5435 }
 0x62a   : > { %5437 = vpow2.f32 %v3249_v15  ;;  %3979 = vmax.xlane.f32.xlu2 %v3978_v46  ;;  %v3309_v20 = vadd.f32 %v8406_v25, %v8402_v37 }
 0x62b   : > { %5439 = vpow2.f32 %v3251_v16  ;;  %v3843_v8 = vpop.f32.mrf.mxu2 }
 0x62c   : > { %v3884_v38 = vmul.f32 %v8089_v57, %v3843_v8  ;;  %3310 = vadd.xlane.f32.xlu0 %v3309_v20  ;;  %v5064_v20 = vld [vmem:[%s5976_s13 + $0x320] sm:$0xff] }
 0x62d   : > { %v3797_v7 = vpop.f32.mrf.mxu1  ;;  %v3173_v17 = vpop.xlane.xlu2 %3172 }
 0x62e   : > { %v8416_v62 = vadd.f32 %v5063_v11, %v3884_v38  ;;  %v3217_v6 = vsub.f32 %v8120_v13, %v3173_v17  ;;  %v3218_v21 = vsub.f32 %v8122_v55, %v3173_v17  ;;  %v3885_v46 = vmul.f32 %v8107_v45, %v3797_v7 }
 0x630   : > { %v8420_v27 = vpop.eup %5437  ;;  %v3253_v48 = vmul.f32 1.442695, %v3217_v6  ;;  %v3255_v15 = vmul.f32 1.442695, %v3218_v21  ;;  %v3981_v57 = vmax.f32 %v8414_v1, %v8416_v62  ;;  %v8432_v38 = vadd.f32 %v5064_v20, %v3885_v46  ;;  %v5067_v20 = vld [vmem:[%s5976_s13 + $0x338] sm:$0xff] }
 0x631   : > { %v8424_v16 = vpop.eup %5439 }
 0x632   : > { %5441 = vpow2.f32 %v3253_v48  ;;  %v3312_v9 = vadd.f32 %v8424_v16, %v8420_v27 }
 0x633   : > { %5443 = vpow2.f32 %v3255_v15  ;;  %v3846_v13 = vpop.f32.mrf.mxu2 }
 0x634   : > { %3982 = vmax.xlane.f32.xlu0 %v3981_v57  ;;  %v3886_v55 = vmul.f32 %v8115_v36, %v3846_v13  ;;  %3313 = vadd.xlane.f32.xlu2 %v3312_v9  ;;  %v5066_v9 = vld [vmem:[%s5976_s13 + $0x330] sm:$0xff] }
 0x635   : > { %v3799_v8 = vpop.f32.mrf.mxu1  ;;  %v3176_v11 = vpop.xlane.xlu2 %3175 }
 0x636   : > { %v8434_v17 = vadd.f32 %v5065_v33, %v3886_v55  ;;  %v3219_v45 = vsub.f32 %v8136_v39, %v3176_v11  ;;  %v3220_v7 = vsub.f32 %v8138_v31, %v3176_v11  ;;  %v3887_v57 = vmul.f32 %v8127_v23, %v3799_v8 }
 0x638   : > { %v8438_v6 = vpop.eup %5441  ;;  %v3257_v21 = vmul.f32 1.442695, %v3219_v45  ;;  %v3259_v48 = vmul.f32 1.442695, %v3220_v7  ;;  %v3984_v36 = vmax.f32 %v8432_v38, %v8434_v17  ;;  %v8450_v55 = vadd.f32 %v5066_v9, %v3887_v57  ;;  %v5068_v57 = vld [vmem:[%s5976_s13 + $0x340] sm:$0xff]  ;;  %v5069_v9 = vld [vmem:[%s5976_s13 + $0x348] sm:$0xff] }
 0x639   : > { %v8442_v15 = vpop.eup %5443 }
 0x63a   : > { %5445 = vpow2.f32 %v3257_v21  ;;  %v3315_v46 = vadd.f32 %v8442_v15, %v8438_v6 }
 0x63b   : > { %5447 = vpow2.f32 %v3259_v48  ;;  %v3848_v39 = vpop.f32.mrf.mxu2 }
 0x63c   : > { %v3888_v31 = vmul.f32 %v8133_v4, %v3848_v39  ;;  %3985 = vmax.xlane.f32.xlu0 %v3984_v36  ;;  %3316 = vadd.xlane.f32.xlu1 %v3315_v46 }
 0x63d   : > { %v3802_v13 = vpop.f32.mrf.mxu1  ;;  %v3179_v33 = vpop.xlane.xlu2 %3178 }
 0x63e   : > { %v8452_v11 = vadd.f32 %v5067_v20, %v3888_v31  ;;  %v4297_v23 = vpop.permute.xlu1 %4296  ;;  %v3221_v45 = vsub.f32 %v8167_v14, %v3179_v33  ;;  %v3222_v21 = vsub.f32 %v8171_v30, %v3179_v33  ;;  %v3889_v48 = vmul.f32 %v8150_v24, %v3802_v13  ;;  %v8472_v30 = vpop.f32.mrf.mxu3 }
 0x63f   : > { %4363 = vmatpush.bf16.msrb.mxu0 %v4297_v23  ;;  %5174 = vmatpush.bf16.msrb.mxu2 %v4297_v23  ;;  %9624 = vst [vmem:[#allocation87_spill] sm:$0xff] %v8472_v30  ;;  %v8478_v33 = vpop.f32.mrf.mxu0 }
 0x640   : > { %v8454_v8 = vpop.eup %5445  ;;  %v3987_v4 = vmax.f32 %v8450_v55, %v8452_v11  ;;  %v3261_v14 = vmul.f32 1.442695, %v3221_v45  ;;  %v3263_v20 = vmul.f32 1.442695, %v3222_v21  ;;  %v8474_v24 = vadd.f32 %v5068_v57, %v3889_v48  ;;  %9625 = vst [vmem:[#allocation90_spill] sm:$0xff] %v8478_v33 }
 0x641   : > { %v8459_v7 = vpop.eup %5447 }
 0x642   : > { %v3318_v36 = vadd.f32 %v8459_v7, %v8454_v8  ;;  %5449 = vpow2.f32 %v3261_v14 }
 0x643   : > { %4364 = vmatpush.bf16.msrb.mxu0 %v8226_v50  ;;  %5175 = vmatpush.bf16.msrb.mxu2 %v8226_v50  ;;  %v3851_v46 = vpop.f32.mrf.mxu2  ;;  %5451 = vpow2.f32 %v3263_v20 }
 0x644   : > { %v3890_v39 = vmul.f32 %v8158_v0, %v3851_v46  ;;  %3988 = vmax.xlane.f32.xlu1 %v3987_v4  ;;  %3319 = vadd.xlane.f32.xlu2 %v3318_v36 }
 0x645   : > { %v8470_v31 = vpop.f32.mrf.mxu1 }
 0x646   : > { %v8476_v13 = vadd.f32 %v5069_v9, %v3890_v39 }
 0x648   : > { %v3990_v50 = vmax.f32 %v8474_v24, %v8476_v13  ;;  %v8484_v4 = vpop.eup %5449  ;;  %v2813_v9 = vpop.f32.mrf.mxu0 }
 0x649   : > { %v8488_v57 = vpop.eup %5451 }
 0x64b   : > { %v8482_v23 = vpop.f32.mrf.mxu2 }
 0x64c   : > { %3991 = vmax.xlane.f32.xlu1 %v3990_v50  ;;  %v3321_v50 = vadd.f32 %v8488_v57, %v8484_v4 }
 0x64d   : > { %v3807_v0 = vpop.f32.mrf.mxu1  ;;  %v3185_v45 = vpop.xlane.xlu2 %3184 }
 0x64e   : > { %v2764_v21 = vpop.f32.mrf.mxu3  ;;  %v3225_v48 = vsub.f32 %v8200_v60, %v3185_v45  ;;  %v3226_v36 = vsub.f32 %v8202_v41, %v3185_v45 }
 0x64f   : > { %v2765_v46 = vadd.f32 %v2764_v21, %v8050_v63 }
 0x650   : > { %v3269_v14 = vmul.f32 1.442695, %v3225_v48  ;;  %v3271_v39 = vmul.f32 1.442695, %v3226_v36  ;;  %v5074_v48 = vld [vmem:[%s5976_s13 + $0x370] sm:$0xff] }
 0x651   : > { %v8491_v20 = vadd.f32 %v2813_v9, %v2765_v46  ;;  %v5075_v46 = vld [vmem:[%s5976_s13 + $0x378] sm:$0xff] }
 0x652   : > { %5453 = vpow2.f32 %v3269_v14  ;;  %v9628_v14 = vld [vmem:[#allocation35_spill] sm:$0xff] }
 0x653   : > { %9626 = vst [vmem:[#allocation89_spill] sm:$0xff] %v8491_v20  ;;  %5455 = vpow2.f32 %v3271_v39  ;;  %v3856_v33 = vpop.f32.mrf.mxu2 }
 0x654   : > { %3322 = vadd.xlane.f32.xlu1 %v3321_v50 }
 0x655   : > { %v3809_v60 = vpop.f32.mrf.mxu1 }
 0x656   : > { %v3895_v63 = vmul.f32 %v8207_v3, %v3809_v60 }
 0x658   : > { %v8495_v41 = vpop.eup %5453  ;;  %v8509_v50 = vadd.f32 %v5074_v48, %v3895_v63  ;;  %v5079_v63 = vld [vmem:[%s5976_s13 + $0x398] sm:$0xff] }
 0x659   : > { %v8497_v45 = vpop.eup %5455 }
 0x65a   : > { %9627 = vst [vmem:[#allocation21_spill] sm:$0xff] %v8497_v45  ;;  %v3327_v21 = vadd.f32 %v8497_v45, %v8495_v41 }
 0x65b   : > { %v3858_v36 = vpop.f32.mrf.mxu2  ;;  %9629 = vst [vmem:[#allocation22_spill] sm:$0xff] %v8509_v50 }
 0x65c   : > { %v3896_v9 = vmul.f32 %v8213_v43, %v3858_v36  ;;  %4292 = vrot.lane.b32.xlu2 %v9628_v14, %s5805_s21  ;;  %3328 = vadd.xlane.f32.xlu1 %v3327_v21  ;;  %v5078_v14 = vld [vmem:[%s5976_s13 + $0x390] sm:$0xff] }
 0x65d   : > { %v8507_v39 = vpop.f32.mrf.mxu1 }
 0x65e   : > { %v8511_v20 = vadd.f32 %v5075_v46, %v3896_v9 }
 0x660   : > { %9630 = vst [vmem:[#allocation23_spill] sm:$0xff] %v8511_v20  ;;  %v3999_v3 = vmax.f32 %v8509_v50, %v8511_v20 }
 0x663   : > { %v8515_v60 = vpop.f32.mrf.mxu2 }
 0x664   : > { %4000 = vmax.xlane.f32.xlu1 %v3999_v3 }
 0x665   : > { %v3814_v30 = vpop.f32.mrf.mxu1 }
 0x666   : > { %v3899_v43 = vmul.f32 %v8288_v19, %v3814_v30 }
 0x668   : > { %v8523_v20 = vadd.f32 %v5078_v14, %v3899_v43  ;;  %v5073_v14 = vld [vmem:[%s5976_s13 + $0x368] sm:$0xff] }
 0x669   : > { %v3182_v22 = vpop.xlane.xlu1 %3181 }
 0x66a   : > { %v3223_v36 = vsub.f32 %v8249_v18, %v3182_v22  ;;  %v3224_v21 = vsub.f32 %v8241_v34, %v3182_v22  ;;  %v3188_v18 = vpop.xlane.xlu2 %3187 }
 0x66b   : > { %v3863_v45 = vpop.f32.mrf.mxu2  ;;  %v3227_v22 = vsub.f32 %v8216_v29, %v3188_v18 }
 0x66c   : > { %v3265_v48 = vmul.f32 1.442695, %v3223_v36  ;;  %v3267_v46 = vmul.f32 1.442695, %v3224_v21  ;;  %v3900_v9 = vmul.f32 %v8277_v26, %v3863_v45  ;;  %v3228_v45 = vsub.f32 %v8218_v49, %v3188_v18 }
 0x66d   : > { %v3894_v36 = vmul.f32 %v8197_v2, %v3856_v33  ;;  %v3892_v33 = vmul.f32 %v8229_v44, %v8482_v23 }
 0x66e   : > { %5457 = vpow2.f32 %v3265_v48  ;;  %v8525_v3 = vadd.f32 %v5079_v63, %v3900_v9  ;;  %v3273_v63 = vmul.f32 1.442695, %v3227_v22  ;;  %v3893_v48 = vmul.f32 %v8191_v58, %v3807_v0  ;;  %v5071_v22 = vld [vmem:[%s5976_s13 + $0x358] sm:$0xff] }
 0x66f   : > { %5459 = vpow2.f32 %v3267_v46  ;;  %v3275_v46 = vmul.f32 1.442695, %v3228_v45  ;;  %v8549_v50 = vadd.f32 %v5073_v14, %v3894_v36 }
 0x670   : > { %v4005_v19 = vmax.f32 %v8523_v20, %v8525_v3  ;;  %5461 = vpow2.f32 %v3273_v63 }
 0x671   : > { %v8529_v30 = vpop.xlane.xlu1 %3190  ;;  %5463 = vpow2.f32 %v3275_v46 }
 0x672   : > { %4006 = vmax.xlane.f32.xlu1 %v4005_v19  ;;  %v5072_v19 = vld [vmem:[%s5976_s13 + $0x360] sm:$0xff]  ;;  %v3229_v46 = vsub.f32 %v8268_v59, %v8529_v30 }
 0x673   : > { %v8554_v45 = vadd.f32 %v5072_v19, %v3893_v48 }
 0x674   : > { %v8531_v34 = vpop.eup %5457 }
 0x675   : > { %v8534_v26 = vpop.eup %5459  ;;  %v3200_v43 = vpop.xlane.xlu0 %3199  ;;  %v3996_v44 = vmax.f32 %v8554_v45, %v8549_v50 }
 0x676   : > { %v3324_v21 = vadd.f32 %v8534_v26, %v8531_v34  ;;  %v3235_v9 = vsub.f32 %v8291_v54, %v3200_v43  ;;  %v3236_v49 = vsub.f32 %v8293_v35, %v3200_v43  ;;  %v3891_v54 = vmul.f32 %v8234_v12, %v8470_v31  ;;  %v5070_v43 = vld [vmem:[%s5976_s13 + $0x350] sm:$0xff] }
 0x678   : > { %3325 = vadd.xlane.f32.xlu0 %v3324_v21  ;;  %v3289_v35 = vmul.f32 1.442695, %v3235_v9  ;;  %v8561_v23 = vadd.f32 %v5070_v43, %v3891_v54  ;;  %v8563_v21 = vpop.eup %5461  ;;  %v9633_v43 = vld [vmem:[#allocation70_spill] sm:$0xff] }
 0x679   : > { %v3194_v29 = vpop.xlane.xlu1 %3193  ;;  %v8567_v14 = vpop.eup %5463 }
 0x67a   : > { %v3231_v18 = vsub.f32 %v8304_v47, %v3194_v29  ;;  %v3232_v2 = vsub.f32 %v8296_v40, %v3194_v29  ;;  %v3291_v47 = vmul.f32 1.442695, %v3236_v49  ;;  %v8557_v40 = vadd.f32 %v5071_v22, %v3892_v33  ;;  %v9631_v49 = vld [vmem:[#allocation78_spill] sm:$0xff] }
 0x67b   : > { %v3330_v59 = vadd.f32 %v8567_v14, %v8563_v21  ;;  %v5077_v22 = vld [vmem:[%s5976_s13 + $0x388] sm:$0xff] }
 0x67c   : > { %v3281_v58 = vmul.f32 1.442695, %v3231_v18  ;;  %v3283_v0 = vmul.f32 1.442695, %v3232_v2  ;;  %v3993_v63 = vmax.f32 %v8561_v23, %v8557_v40  ;;  %v3898_v18 = vmul.f32 %v9631_v49, %v8515_v60  ;;  %v5076_v60 = vld [vmem:[%s5976_s13 + $0x380] sm:$0xff] }
 0x67e   : > { %5465 = vpow2.f32 %v3281_v58  ;;  %v3277_v58 = vmul.f32 1.442695, %v3229_v46  ;;  %v9635_v46 = vld [vmem:[#allocation44_spill] sm:$0xff] }
 0x67f   : > { %5467 = vpow2.f32 %v3283_v0 }
 0x680   : > { %5469 = vpow2.f32 %v3289_v35  ;;  %3997 = vmax.xlane.f32.xlu0 %v3996_v44  ;;  %v9634_v44 = vld [vmem:[#allocation81_spill] sm:$0xff] }
 0x681   : > { %v3197_v36 = vpop.xlane.xlu1 %3196  ;;  %5471 = vpow2.f32 %v3291_v47 }
 0x682   : > { %v3233_v12 = vsub.f32 %v8320_v51, %v3197_v36  ;;  %v3234_v31 = vsub.f32 %v8318_v10, %v3197_v36  ;;  %v3230_v51 = vsub.f32 %v8264_v52, %v8529_v30  ;;  %v9632_v52 = vld [vmem:[#allocation67_spill] sm:$0xff] }
 0x683   : > { %v3897_v30 = vmul.f32 %v9632_v52, %v8507_v39 }
 0x684   : > { %v8571_v48 = vpop.eup %5465  ;;  %v3285_v9 = vmul.f32 1.442695, %v3233_v12  ;;  %v3287_v29 = vmul.f32 1.442695, %v3234_v31  ;;  %v3279_v0 = vmul.f32 1.442695, %v3230_v51  ;;  %v8595_v12 = vadd.f32 %v5077_v22, %v3898_v18 }
 0x685   : > { %v8575_v19 = vpop.eup %5467  ;;  %3994 = vmax.xlane.f32.xlu2 %v3993_v63  ;;  %v3206_v54 = vpop.xlane.xlu0 %3205  ;;  %v8604_v49 = vadd.f32 %v5076_v60, %v3897_v30 }
 0x686   : > { %5473 = vpow2.f32 %v3285_v9  ;;  %v8579_v10 = vpop.eup %5469  ;;  %v3336_v2 = vadd.f32 %v8575_v19, %v8571_v48  ;;  %v3239_v39 = vsub.f32 %v9635_v46, %v3206_v54 }
 0x687   : > { %5475 = vpow2.f32 %v3287_v29  ;;  %v8587_v33 = vpop.eup %5471  ;;  %v4002_v22 = vmax.f32 %v8604_v49, %v8595_v12 }
 0x688   : > { %3337 = vadd.xlane.f32.xlu1 %v3336_v2  ;;  %3331 = vadd.xlane.f32.xlu0 %v3330_v59  ;;  %v3342_v31 = vadd.f32 %v8587_v33, %v8579_v10  ;;  %5477 = vpow2.f32 %v3277_v58  ;;  %v9636_v2 = vld [vmem:[#allocation45_spill] sm:$0xff]  ;;  %v3297_v58 = vmul.f32 1.442695, %v3239_v39 }
 0x689   : > { %v3203_v35 = vpop.xlane.xlu1 %3202  ;;  %5479 = vpow2.f32 %v3279_v0  ;;  %v3240_v59 = vsub.f32 %v9636_v2, %v3206_v54 }
 0x68a   : > { %v3237_v47 = vsub.f32 %v9633_v43, %v3203_v35  ;;  %v3238_v36 = vsub.f32 %v9634_v44, %v3203_v35 }
 0x68b   : > { %v3299_v52 = vmul.f32 1.442695, %v3240_v59 }
 0x68c   : > { %v8599_v63 = vpop.eup %5473  ;;  %v3293_v9 = vmul.f32 1.442695, %v3237_v47  ;;  %v3295_v29 = vmul.f32 1.442695, %v3238_v36 }
 0x68d   : > { %v8602_v51 = vpop.eup %5475  ;;  %3343 = vadd.xlane.f32.xlu2 %v3342_v31 }
 0x68e   : > { %5481 = vpow2.f32 %v3293_v9  ;;  %v3339_v18 = vadd.f32 %v8602_v51, %v8599_v63  ;;  %v8611_v43 = vpop.eup %5477 }
 0x68f   : > { %5483 = vpow2.f32 %v3295_v29  ;;  %v8615_v54 = vpop.eup %5479 }
 0x690   : > { %3340 = vadd.xlane.f32.xlu1 %v3339_v18  ;;  %4003 = vmax.xlane.f32.xlu0 %v4002_v22  ;;  %5485 = vpow2.f32 %v3297_v58 }
 0x691   : > { %v3209_v35 = vpop.xlane.xlu1 %3208  ;;  %5487 = vpow2.f32 %v3299_v52 }
 0x692   : > { %v3241_v30 = vsub.f32 %v8367_v28, %v3209_v35  ;;  %v3242_v0 = vsub.f32 %v8365_v32, %v3209_v35  ;;  %v3333_v28 = vadd.f32 %v8615_v54, %v8611_v43 }
 0x694   : > { %v8617_v60 = vpop.eup %5481  ;;  %v3301_v47 = vmul.f32 1.442695, %v3241_v30  ;;  %v3303_v44 = vmul.f32 1.442695, %v3242_v0 }
 0x695   : > { %v8619_v36 = vpop.eup %5483  ;;  %v3212_v31 = vpop.xlane.xlu2 %3211 }
 0x696   : > { %5489 = vpow2.f32 %v3301_v47  ;;  %v3243_v46 = vsub.f32 %v8384_v53, %v3212_v31  ;;  %v3244_v39 = vsub.f32 %v8386_v61, %v3212_v31  ;;  %v3345_v32 = vadd.f32 %v8619_v36, %v8617_v60  ;;  %v8627_v2 = vpop.eup %5485 }
 0x697   : > { %5491 = vpow2.f32 %v3303_v44  ;;  %v8629_v59 = vpop.eup %5487 }
 0x698   : > { %v3305_v9 = vmul.f32 1.442695, %v3243_v46  ;;  %v3307_v29 = vmul.f32 1.442695, %v3244_v39  ;;  %3346 = vadd.xlane.f32.xlu2 %v3345_v32  ;;  %3334 = vadd.xlane.f32.xlu0 %v3333_v28  ;;  %v3348_v30 = vadd.f32 %v8629_v59, %v8627_v2 }
 0x69a   : > { %5493 = vpow2.f32 %v3305_v9 }
 0x69b   : > { %5495 = vpow2.f32 %v3307_v29 }
 0x69c   : > { %v8631_v53 = vpop.eup %5489 }
 0x69d   : > { %v8633_v18 = vpop.eup %5491  ;;  %v3980_v61 = vpop.xlane.xlu2 %3979 }
 0x69e   : > { %v4026_v22 = vsub.f32 %v8396_v5, %v3980_v61  ;;  %v4027_v58 = vsub.f32 %v8398_v42, %v3980_v61  ;;  %v3351_v52 = vadd.f32 %v8633_v18, %v8631_v53 }
 0x69f   : > { %v3311_v35 = vpop.xlane.xlu0 %3310 }
 0x6a0   : > { %v8641_v0 = vpop.eup %5493  ;;  %v4058_v47 = vmul.f32 1.442695, %v4026_v22  ;;  %v4060_v44 = vmul.f32 1.442695, %v4027_v58  ;;  %3352 = vadd.xlane.f32.xlu1 %v3351_v52  ;;  %3349 = vadd.xlane.f32.xlu0 %v3348_v30 }
 0x6a1   : > { %v8643_v31 = vpop.eup %5495 }
 0x6a2   : > { %5497 = vpow2.f32 %v4058_v47  ;;  %v3354_v5 = vadd.f32 %v8643_v31, %v8641_v0 }
 0x6a3   : > { %5499 = vpow2.f32 %v4060_v44 }
 0x6a4   : > { %5501 = vrcp.f32 %v3311_v35  ;;  %3355 = vadd.xlane.f32.xlu2 %v3354_v5  ;;  %v8662_v5 = vld [vmem:[%s7344_s26] sm:$0xff] }
 0x6a5   : > { %9639 = vst [vmem:[#allocation20_spill] sm:$0xff] %v8662_v5 }
 0x6a7   : > { %v8647_v42 = vpop.xlane.xlu0 %3982  ;;  %v3314_v46 = vpop.xlane.xlu2 %3313 }
 0x6a8   : > { %v8649_v39 = vpop.eup %5497  ;;  %5503 = vrcp.f32 %v3314_v46 }
 0x6a9   : > { %9637 = vst [vmem:[#allocation18_spill] sm:$0xff] %v8649_v39  ;;  %v8651_v32 = vpop.eup %5499 }
 0x6aa   : > { %9638 = vst [vmem:[#allocation65_spill] sm:$0xff] %v8651_v32  ;;  %v5502_v28 = vpop.eup %5501  ;;  %v4122_v9 = vadd.f32 %v8651_v32, %v8649_v39 }
 0x6ab   : > { %v3373_v29 = vmul.f32 %v5502_v28, %v8402_v37  ;;  %v3374_v61 = vmul.f32 %v5502_v28, %v8406_v25  ;;  %v8670_v25 = vld [vmem:[%s7344_s26 + $0x10] sm:$0xff]  ;;  %v8674_v28 = vld [vmem:[%s7344_s26 + $0x18] sm:$0xff] }
 0x6ac   : > { %4123 = vadd.xlane.f32.xlu2 %v4122_v9  ;;  %v8666_v9 = vld [vmem:[%s7344_s26 + $0x8] sm:$0xff]  ;;  %9641 = vst [vmem:[#allocation72_spill] sm:$0xff] %v8670_v25 }
 0x6ad   : > { %v3405_v46 = vmul.f32 %v8662_v5, %v3373_v29  ;;  %9640 = vst [vmem:[#allocation19_spill] sm:$0xff] %v8666_v9  ;;  %v3406_v37 = vmul.f32 %v8666_v9, %v3374_v61  ;;  %v9643_v29 = vld [vmem:[#allocation46_spill] sm:$0xff]  ;;  %v9644_v9 = vld [vmem:[#allocation29_spill] sm:$0xff]  ;;  %v9657_v5 = vld [vmem:[#allocation55_spill] sm:$0xff] }
 0x6ae   : > { %v5504_v22 = vpop.eup %5503  ;;  %9642 = vst [vmem:[#allocation24_spill] sm:$0xff] %v8674_v28 }
 0x6af   : > { %v3375_v58 = vmul.f32 %v5504_v22, %v8420_v27  ;;  %v3376_v52 = vmul.f32 %v5504_v22, %v8424_v16  ;;  %v3986_v35 = vpop.xlane.xlu0 %3985  ;;  %v3317_v44 = vpop.xlane.xlu1 %3316 }
 0x6b0   : > { %v4030_v30 = vsub.f32 %v8432_v38, %v3986_v35  ;;  %v4031_v47 = vsub.f32 %v8434_v17, %v3986_v35  ;;  %5505 = vrcp.f32 %v3317_v44 }
 0x6b1   : > { %v3407_v27 = vmul.f32 %v8670_v25, %v3375_v58  ;;  %v3408_v16 = vmul.f32 %v8674_v28, %v3376_v52  ;;  %v5083_v28 = vld [vmem:[%s5976_s13 + $0x3b8] sm:$0xff] }
 0x6b2   : > { %v4066_v38 = vmul.f32 1.442695, %v4030_v30  ;;  %v4068_v22 = vmul.f32 1.442695, %v4031_v47 }
 0x6b3   : > { %v3437_v17 = vpack.c.bf16 %v3407_v27, %v3405_v46  ;;  %v3438_v35 = vpack.c.bf16 %v3408_v16, %v3406_v37  ;;  %v9647_v37 = vld [vmem:[#allocation53_spill] sm:$0xff] }
 0x6b4   : > { %5507 = vpow2.f32 %v4066_v38  ;;  %4288 = vrot.lane.b32.xlu0 %v9643_v29, %s5805_s21 }
 0x6b5   : > { %5509 = vpow2.f32 %v4068_v22  ;;  %3557 = vmatmul.bf16.vlgmr.msrb.gmra.mxu3 %v3437_v17  ;;  %3606 = vmatmul.bf16.vlgmr.msra.gmra.mxu0 %v3438_v35  ;;  %v8694_v22 = vld [vmem:[%s7344_s26 + $0x20] sm:$0xff]  ;;  %v8702_v35 = vld [vmem:[%s7344_s26 + $0x28] sm:$0xff] }
 0x6b6   : > { %v5506_v58 = vpop.eup %5505  ;;  %9648 = vst [vmem:[#allocation68_spill] sm:$0xff] %v8694_v22 }
 0x6b7   : > { %v3320_v61 = vpop.xlane.xlu2 %3319  ;;  %v3377_v44 = vmul.f32 %v5506_v58, %v8438_v6  ;;  %v3378_v46 = vmul.f32 %v5506_v58, %v8442_v15  ;;  %v8698_v6 = vld [vmem:[%s7344_s26 + $0x30] sm:$0xff]  ;;  %9650 = vst [vmem:[#allocation69_spill] sm:$0xff] %v8702_v35 }
 0x6b8   : > { %5511 = vrcp.f32 %v3320_v61  ;;  %9649 = vst [vmem:[#allocation25_spill] sm:$0xff] %v8698_v6  ;;  %v8706_v61 = vld [vmem:[%s7344_s26 + $0x38] sm:$0xff] }
 0x6b9   : > { %4290 = vrot.lane.b32.xlu1 %v9644_v9, %s5805_s21  ;;  %v3409_v17 = vmul.f32 %v8694_v22, %v3377_v44  ;;  %v3410_v29 = vmul.f32 %v8702_v35, %v3378_v46  ;;  %9651 = vst [vmem:[#allocation71_spill] sm:$0xff] %v8706_v61  ;;  %v3989_v44 = vpop.xlane.xlu1 %3988  ;;  %v9653_v46 = vld [vmem:[#allocation63_spill] sm:$0xff]  ;;  %v5081_v22 = vld [vmem:[%s5976_s13 + $0x3a8] sm:$0xff] }
 0x6ba   : > { %v8681_v52 = vpop.eup %5507 }
 0x6bb   : > { %9645 = vst [vmem:[#allocation73_spill] sm:$0xff] %v8681_v52  ;;  %v8683_v30 = vpop.eup %5509 }
 0x6bc   : > { %9646 = vst [vmem:[#allocation26_spill] sm:$0xff] %v8683_v30  ;;  %v4128_v47 = vadd.f32 %v8683_v30, %v8681_v52  ;;  %4286 = vrot.lane.b32.xlu0 %v9647_v37, %s5805_s21  ;;  %v3817_v37 = vpop.f32.mrf.mxu1  ;;  %v9652_v30 = vld [vmem:[#allocation31_spill] sm:$0xff] }
 0x6be   : > { %v5512_v27 = vpop.eup %5511  ;;  %4129 = vadd.xlane.f32.xlu2 %v4128_v47  ;;  %v3866_v47 = vpop.f32.mrf.mxu2 }
 0x6bf   : > { %v3379_v9 = vmul.f32 %v5512_v27, %v8454_v8  ;;  %v3380_v16 = vmul.f32 %v5512_v27, %v8459_v7  ;;  %v4293_v38 = vpop.permute.xlu2 %4292  ;;  %v3902_v35 = vmul.f32 %v9653_v46, %v3866_v47 }
 0x6c0   : > { %4365 = vmatpush.bf16.msrb.mxu0 %v4293_v38  ;;  %5176 = vmatpush.bf16.msrb.mxu2 %v4293_v38 }
 0x6c1   : > { %v3411_v15 = vmul.f32 %v8698_v6, %v3379_v9  ;;  %v3412_v8 = vmul.f32 %v8706_v61, %v3380_v16  ;;  %v3992_v9 = vpop.xlane.xlu1 %3991  ;;  %v9654_v16 = vld [vmem:[#allocation84_spill] sm:$0xff]  ;;  %v9655_v6 = vld [vmem:[#allocation39_spill] sm:$0xff] }
 0x6c2   : > { %v3901_v61 = vmul.f32 %v9654_v16, %v3817_v37  ;;  %v9656_v37 = vld [vmem:[#allocation57_spill] sm:$0xff] }
 0x6c3   : > { %v3439_v7 = vpack.c.bf16 %v3411_v15, %v3409_v17  ;;  %v3440_v58 = vpack.c.bf16 %v3412_v8, %v3410_v29  ;;  %v4028_v17 = vsub.f32 %v8414_v1, %v8647_v42  ;;  %v5080_v15 = vld [vmem:[%s5976_s13 + $0x3a0] sm:$0xff]  ;;  %v4029_v8 = vsub.f32 %v8416_v62, %v8647_v42  ;;  %v5082_v1 = vld [vmem:[%s5976_s13 + $0x3b0] sm:$0xff]  ;;  %v5085_v42 = vld [vmem:[%s5976_s13 + $0x3c8] sm:$0xff] }
 0x6c4   : > { %v3819_v38 = vpop.f32.mrf.mxu1  ;;  %v8723_v46 = vadd.f32 %v5080_v15, %v3901_v61  ;;  %v4032_v61 = vsub.f32 %v8450_v55, %v3989_v44 }
 0x6c5   : > { %3562 = vmatmul.bf16.gmra.mxu3 %v3439_v7  ;;  %3611 = vmatmul.bf16.gmra.mxu0 %v3440_v58  ;;  %v8719_v58 = vadd.f32 %v5081_v22, %v3902_v35  ;;  %v3903_v16 = vmul.f32 %v9656_v37, %v3819_v38  ;;  %v4062_v52 = vmul.f32 1.442695, %v4028_v17  ;;  %v4064_v32 = vmul.f32 1.442695, %v4029_v8 }
 0x6c6   : > { %v3868_v27 = vpop.f32.mrf.mxu2  ;;  %v4033_v38 = vsub.f32 %v8452_v11, %v3989_v44  ;;  %v4070_v8 = vmul.f32 1.442695, %v4032_v61  ;;  %v4035_v44 = vsub.f32 %v8476_v13, %v3992_v9 }
 0x6c7   : > { %v4008_v62 = vmax.f32 %v8723_v46, %v8719_v58  ;;  %v8733_v22 = vadd.f32 %v5082_v1, %v3903_v16  ;;  %5513 = vpow2.f32 %v4062_v52 }
 0x6c8   : > { %5515 = vpow2.f32 %v4064_v32  ;;  %v4072_v55 = vmul.f32 1.442695, %v4033_v38  ;;  %v4034_v32 = vsub.f32 %v8474_v24, %v3992_v9 }
 0x6c9   : > { %v3323_v7 = vpop.xlane.xlu1 %3322 }
 0x6ca   : > { %5517 = vrcp.f32 %v3323_v7  ;;  %v4074_v1 = vmul.f32 1.442695, %v4034_v32  ;;  %v8782_v32 = vld [vmem:[%s7344_s26 + $0x50] sm:$0xff] }
 0x6cb   : > { %5519 = vpow2.f32 %v4070_v8 }
 0x6cc   : > { %v3822_v47 = vpop.f32.mrf.mxu1  ;;  %5521 = vpow2.f32 %v4072_v55  ;;  %v8778_v55 = vld [vmem:[%s7344_s26 + $0x40] sm:$0xff] }
 0x6cd   : > { %9659 = vst [vmem:[#allocation33_spill] sm:$0xff] %v8778_v55 }
 0x6ce   : > { %v3871_v29 = vpop.f32.mrf.mxu2 }
 0x6cf   : > { %v3906_v39 = vmul.f32 %v9657_v5, %v3871_v29 }
 0x6d1   : > { %v3329_v15 = vpop.xlane.xlu1 %3328 }
 0x6d4   : > { %v8747_v52 = vpop.f32.mrf.mxu1 }
 0x6d6   : > { %4284 = vrot.lane.b32.xlu2 %v9652_v30, %s5805_s21  ;;  %v3904_v30 = vmul.f32 %v9655_v6, %v3868_v27  ;;  %v9658_v6 = vld [vmem:[#allocation83_spill] sm:$0xff]  ;;  %v5084_v27 = vld [vmem:[%s5976_s13 + $0x3c0] sm:$0xff]  ;;  %v8743_v17 = vpop.f32.mrf.mxu2 }
 0x6d7   : > { %v3905_v35 = vmul.f32 %v9658_v6, %v3822_v47 }
 0x6d8   : > { %v8727_v25 = vadd.f32 %v5083_v28, %v3904_v30  ;;  %v8739_v28 = vadd.f32 %v5085_v42, %v3906_v39  ;;  %v8749_v30 = vpop.eup %5513 }
 0x6d9   : > { %v8745_v29 = vadd.f32 %v5084_v27, %v3905_v35  ;;  %v8753_v39 = vpop.eup %5515  ;;  %v8761_v42 = vpop.xlane.xlu1 %4000 }
 0x6da   : > { %v4011_v5 = vmax.f32 %v8733_v22, %v8727_v25  ;;  %v4125_v37 = vadd.f32 %v8753_v39, %v8749_v30  ;;  %v5518_v16 = vpop.eup %5517 }
 0x6db   : > { %v4014_v11 = vmax.f32 %v8745_v29, %v8739_v28  ;;  %v8763_v24 = vpop.eup %5519  ;;  %v3381_v9 = vmul.f32 %v5518_v16, %v8484_v4  ;;  %v3382_v35 = vmul.f32 %v5518_v16, %v8488_v57  ;;  %v8786_v57 = vld [vmem:[%s7344_s26 + $0x48] sm:$0xff] }
 0x6dc   : > { %v8765_v6 = vpop.eup %5521  ;;  %v8767_v13 = vpop.f32.mrf.mxu1  ;;  %9660 = vst [vmem:[#allocation74_spill] sm:$0xff] %v8786_v57 }
 0x6dd   : > { %v4131_v8 = vadd.f32 %v8765_v6, %v8763_v24 }
 0x6de   : > { %v8759_v7 = vpop.f32.mrf.mxu2 }
 0x6e3   : > { %4009 = vmax.xlane.f32.xlu1 %v4008_v62  ;;  %v4076_v62 = vmul.f32 1.442695, %v4035_v44  ;;  %v3414_v44 = vmul.f32 %v8786_v57, %v3382_v35 }
 0x6e6   : > { %4012 = vmax.xlane.f32.xlu0 %v4011_v5 }
 0x6eb   : > { %4015 = vmax.xlane.f32.xlu1 %v4014_v11  ;;  %v3326_v47 = vpop.xlane.xlu0 %3325  ;;  %v3413_v11 = vmul.f32 %v8778_v55, %v3381_v9  ;;  %v3878_v55 = vpop.f32.mrf.mxu2 }
 0x6ec   : > { %5523 = vrcp.f32 %v3326_v47  ;;  %v4007_v47 = vpop.xlane.xlu1 %4006 }
 0x6ed   : > { %5525 = vpow2.f32 %v4074_v1  ;;  %v4044_v35 = vsub.f32 %v8523_v20, %v4007_v47  ;;  %v5090_v20 = vld [vmem:[%s5976_s13 + $0x3f0] sm:$0xff] }
 0x6ee   : > { %4126 = vadd.xlane.f32.xlu0 %v4125_v37  ;;  %5527 = vpow2.f32 %v4076_v62 }
 0x6ef   : > { %5529 = vrcp.f32 %v3329_v15 }
 0x6f2   : > { %v5524_v61 = vpop.eup %5523 }
 0x6f3   : > { %v3383_v27 = vmul.f32 %v5524_v61, %v8531_v34  ;;  %v3384_v38 = vmul.f32 %v5524_v61, %v8534_v26  ;;  %v8773_v5 = vpop.xlane.xlu0 %3997  ;;  %v8790_v34 = vld [vmem:[%s7344_s26 + $0x58] sm:$0xff]  ;;  %v8793_v62 = vpop.eup %5525 }
 0x6f5   : > { %v3415_v4 = vmul.f32 %v8782_v32, %v3383_v27  ;;  %v3416_v26 = vmul.f32 %v8790_v34, %v3384_v38  ;;  %v8797_v27 = vpop.eup %5527 }
 0x6f6   : > { %4132 = vadd.xlane.f32.xlu0 %v4131_v8 }
 0x6f7   : > { %v3441_v37 = vpack.c.bf16 %v3415_v4, %v3413_v11  ;;  %v3442_v16 = vpack.c.bf16 %v3416_v26, %v3414_v44  ;;  %v3829_v11 = vpop.f32.mrf.mxu1  ;;  %v4045_v4 = vsub.f32 %v8525_v3, %v4007_v47  ;;  %v5091_v26 = vld [vmem:[%s5976_s13 + $0x3f8] sm:$0xff]  ;;  %v5530_v3 = vpop.eup %5529 }
 0x6f8   : > { %v3995_v1 = vpop.xlane.xlu2 %3994 }
 0x6f9   : > { %v4036_v9 = vsub.f32 %v8561_v23, %v3995_v1  ;;  %v4037_v61 = vsub.f32 %v8557_v40, %v3995_v1  ;;  %3567 = vmatmul.bf16.gmra.mxu3 %v3441_v37  ;;  %3616 = vmatmul.bf16.gmra.mxu0 %v3442_v16  ;;  %v3912_v23 = vmul.f32 %v8377_v56, %v3878_v55  ;;  %v9661_v37 = vld [vmem:[#allocation66_spill] sm:$0xff]  ;;  %v4094_v1 = vmul.f32 1.442695, %v4044_v35  ;;  %v9662_v35 = vld [vmem:[#allocation56_spill] sm:$0xff] }
 0x6fa   : > { %v4134_v40 = vadd.f32 %v8797_v27, %v8793_v62  ;;  %v3911_v16 = vmul.f32 %v9661_v37, %v3829_v11  ;;  %v4038_v55 = vsub.f32 %v8554_v45, %v8773_v5  ;;  %v5677_v37 = vld [vmem:[%s5986_s18 + $0xd0] sm:$0xff] }
 0x6fb   : > { %v4078_v38 = vmul.f32 1.442695, %v4036_v9  ;;  %v4080_v8 = vmul.f32 1.442695, %v4037_v61  ;;  %v3332_v44 = vpop.xlane.xlu0 %3331  ;;  %v4096_v9 = vmul.f32 1.442695, %v4045_v4  ;;  %v8807_v15 = vadd.f32 %v5091_v26, %v3912_v23 }
 0x6fc   : > { %v8811_v56 = vadd.f32 %v5090_v20, %v3911_v16  ;;  %v5087_v4 = vld [vmem:[%s5976_s13 + $0x3d8] sm:$0xff]  ;;  %v9663_v23 = vld [vmem:[#allocation21_spill] sm:$0xff]  ;;  %v3338_v16 = vpop.xlane.xlu1 %3337  ;;  %v5086_v20 = vld [vmem:[%s5976_s13 + $0x3d0] sm:$0xff] }
 0x6fd   : > { %5531 = vpow2.f32 %v4078_v38  ;;  %v3908_v38 = vmul.f32 %v9662_v35, %v8743_v17 }
 0x6fe   : > { %5533 = vpow2.f32 %v4080_v8  ;;  %v4039_v8 = vsub.f32 %v8549_v50, %v8773_v5  ;;  %v4023_v45 = vmax.f32 %v8811_v56, %v8807_v15  ;;  %v3907_v50 = vmul.f32 %v5677_v37, %v8747_v52  ;;  %v8844_v52 = vld [vmem:[%s7344_s26 + $0x70] sm:$0xff]  ;;  %v8848_v37 = vld [vmem:[%s7344_s26 + $0x68] sm:$0xff] }
 0x6ff   : > { %4135 = vadd.xlane.f32.xlu2 %v4134_v40  ;;  %5535 = vrcp.f32 %v3332_v44  ;;  %v3385_v44 = vmul.f32 %v5530_v3, %v8495_v41  ;;  %v3386_v40 = vmul.f32 %v5530_v3, %v9663_v23  ;;  %v4082_v5 = vmul.f32 1.442695, %v4038_v55  ;;  %v8840_v23 = vld [vmem:[%s7344_s26 + $0x60] sm:$0xff] }
 0x700   : > { %5537 = vpow2.f32 %v4094_v1  ;;  %v4084_v3 = vmul.f32 1.442695, %v4039_v8  ;;  %v8857_v8 = vadd.f32 %v5086_v20, %v3907_v50  ;;  %v3344_v50 = vpop.xlane.xlu2 %3343 }
 0x701   : > { %5539 = vpow2.f32 %v4096_v9  ;;  %v8835_v9 = vadd.f32 %v5087_v4, %v3908_v38  ;;  %v3417_v57 = vmul.f32 %v8840_v23, %v3385_v44 }
 0x702   : > { %5541 = vrcp.f32 %v3338_v16 }
 0x703   : > { %v8809_v47 = vpop.eup %5531  ;;  %v8821_v11 = vpop.xlane.xlu0 %4003  ;;  %5543 = vpow2.f32 %v4082_v5  ;;  %v4017_v16 = vmax.f32 %v8857_v8, %v8835_v9 }
 0x704   : > { %v8815_v61 = vpop.eup %5533  ;;  %5545 = vpow2.f32 %v4084_v3 }
 0x705   : > { %v4137_v26 = vadd.f32 %v8815_v61, %v8809_v47  ;;  %v5536_v17 = vpop.eup %5535 }
 0x706   : > { %v3387_v41 = vmul.f32 %v5536_v17, %v8563_v21  ;;  %v3388_v1 = vmul.f32 %v5536_v17, %v8567_v14  ;;  %v8837_v35 = vpop.eup %5537  ;;  %v3418_v21 = vmul.f32 %v8848_v37, %v3386_v40  ;;  %v8852_v14 = vld [vmem:[%s7344_s26 + $0x78] sm:$0xff] }
 0x707   : > { %4024 = vmax.xlane.f32.xlu2 %v4023_v45  ;;  %4138 = vadd.xlane.f32.xlu1 %v4137_v26  ;;  %9664 = vst [vmem:[#allocation58_spill] sm:$0xff] %v8837_v35  ;;  %v8855_v4 = vpop.eup %5539  ;;  %v9666_v26 = vld [vmem:[#allocation37_spill] sm:$0xff] }
 0x708   : > { %v3419_v55 = vmul.f32 %v8844_v52, %v3387_v41  ;;  %v3420_v38 = vmul.f32 %v8852_v14, %v3388_v1  ;;  %9665 = vst [vmem:[#allocation32_spill] sm:$0xff] %v8855_v4  ;;  %v4149_v40 = vadd.f32 %v8855_v4, %v8837_v35 }
 0x70a   : > { %v3443_v45 = vpack.c.bf16 %v3419_v55, %v3417_v57  ;;  %v3444_v44 = vpack.c.bf16 %v3420_v38, %v3418_v21  ;;  %4282 = vrot.lane.b32.xlu0 %v9666_v26, %s5805_s21  ;;  %v5542_v57 = vpop.eup %5541  ;;  %v4042_v55 = vsub.f32 %v8604_v49, %v8821_v11  ;;  %v4043_v21 = vsub.f32 %v8595_v12, %v8821_v11  ;;  %v3341_v11 = vpop.xlane.xlu1 %3340 }
 0x70b   : > { %v3335_v17 = vpop.xlane.xlu0 %3334  ;;  %v8865_v5 = vpop.eup %5543  ;;  %v3391_v20 = vmul.f32 %v5542_v57, %v8571_v48  ;;  %v3392_v3 = vmul.f32 %v5542_v57, %v8575_v19  ;;  %v5089_v19 = vld [vmem:[%s5976_s13 + $0x3e8] sm:$0xff] }
 0x70c   : > { %3572 = vmatmul.bf16.gmra.mxu3 %v3443_v45  ;;  %3621 = vmatmul.bf16.gmra.mxu0 %v3444_v44  ;;  %5547 = vrcp.f32 %v3335_v17  ;;  %v8867_v41 = vpop.eup %5545  ;;  %v5682_v44 = vld [vmem:[%s5986_s18 + $0xe8] sm:$0xff]  ;;  %v8883_v17 = vld [vmem:[%s7344_s26 + $0x80] sm:$0xff]  ;;  %v3347_v57 = vpop.xlane.xlu2 %3346 }
 0x70d   : > { %v3910_v26 = vmul.f32 %v5682_v44, %v8759_v7  ;;  %v4140_v48 = vadd.f32 %v8867_v41, %v8865_v5  ;;  %9667 = vst [vmem:[#allocation34_spill] sm:$0xff] %v8883_v17  ;;  %v8893_v7 = vld [vmem:[%s7344_s26 + $0x90] sm:$0xff]  ;;  %v8897_v44 = vld [vmem:[%s7344_s26 + $0x98] sm:$0xff]  ;;  %5549 = vrcp.f32 %v3344_v50  ;;  %v9669_v50 = vld [vmem:[#allocation22_spill] sm:$0xff] }
 0x70e   : > { %v3424_v4 = vmul.f32 %v8897_v44, %v3392_v3  ;;  %5551 = vrcp.f32 %v3341_v11 }
 0x70f   : > { %4150 = vadd.xlane.f32.xlu2 %v4149_v40  ;;  %4018 = vmax.xlane.f32.xlu1 %v4017_v16  ;;  %v8887_v40 = vld [vmem:[%s7344_s26 + $0x88] sm:$0xff]  ;;  %v4090_v16 = vmul.f32 1.442695, %v4042_v55  ;;  %v8901_v35 = vadd.f32 %v5089_v19, %v3910_v26  ;;  %v9670_v26 = vld [vmem:[#allocation23_spill] sm:$0xff] }
 0x710   : > { %9668 = vst [vmem:[#allocation35_spill] sm:$0xff] %v8887_v40  ;;  %v4041_v19 = vsub.f32 %v9670_v26, %v8761_v42 }
 0x711   : > { %5553 = vpow2.f32 %v4090_v16 }
 0x712   : > { %v5548_v1 = vpop.eup %5547  ;;  %v4088_v11 = vmul.f32 1.442695, %v4041_v19 }
 0x713   : > { %v3389_v38 = vmul.f32 %v5548_v1, %v8611_v43  ;;  %v3390_v45 = vmul.f32 %v5548_v1, %v8615_v54  ;;  %v5685_v43 = vld [vmem:[%s5986_s18 + $0xe0] sm:$0xff]  ;;  %v3423_v1 = vmul.f32 %v8893_v7, %v3391_v20  ;;  %v5550_v55 = vpop.eup %5549 }
 0x714   : > { %v3909_v54 = vmul.f32 %v5685_v43, %v8767_v13  ;;  %v5552_v3 = vpop.eup %5551  ;;  %v8919_v43 = vpop.xlane.xlu1 %3352  ;;  %v3395_v16 = vmul.f32 %v5550_v55, %v8579_v10  ;;  %v8936_v10 = vld [vmem:[%s7344_s26 + $0xb0] sm:$0xff] }
 0x715   : > { %v3421_v49 = vmul.f32 %v8883_v17, %v3389_v38  ;;  %v3422_v12 = vmul.f32 %v8887_v40, %v3390_v45  ;;  %v5088_v38 = vld [vmem:[%s5976_s13 + $0x3e0] sm:$0xff]  ;;  %v4092_v17 = vmul.f32 1.442695, %v4043_v21  ;;  %v4040_v21 = vsub.f32 %v9669_v50, %v8761_v42 }
 0x716   : > { %v8903_v13 = vadd.f32 %v5088_v38, %v3909_v54  ;;  %v8926_v38 = vld [vmem:[%s7344_s26 + $0xa0] sm:$0xff] }
 0x717   : > { %4141 = vadd.xlane.f32.xlu1 %v4140_v48  ;;  %v3445_v45 = vpack.c.bf16 %v3423_v1, %v3421_v49  ;;  %v3446_v40 = vpack.c.bf16 %v3424_v4, %v3422_v12  ;;  %5555 = vpow2.f32 %v4092_v17  ;;  %v8907_v48 = vpop.xlane.xlu2 %3355  ;;  %v8911_v4 = vpop.eup %5553  ;;  %v3394_v12 = vmul.f32 %v5552_v3, %v8602_v51 }
 0x718   : > { %v4020_v20 = vmax.f32 %v8903_v13, %v8901_v35  ;;  %v3350_v17 = vpop.xlane.xlu0 %3349  ;;  %v4086_v54 = vmul.f32 1.442695, %v4040_v21  ;;  %v3396_v1 = vmul.f32 %v5550_v55, %v8587_v33  ;;  %v3427_v33 = vmul.f32 %v8936_v10, %v3395_v16  ;;  %v8940_v55 = vld [vmem:[%s7344_s26 + $0xb8] sm:$0xff]  ;;  %v8949_v16 = vpop.f32.mrf.mxu3 }
 0x719   : > { %9672 = vst [vmem:[#allocation67_spill] sm:$0xff] %v8940_v55 }
 0x71a   : > { %5557 = vpow2.f32 %v4086_v54  ;;  %v3428_v50 = vmul.f32 %v8940_v55, %v3396_v1  ;;  %v8968_v55 = vld [vmem:[%s7344_s26 + $0xc0] sm:$0xff] }
 0x71b   : > { %5559 = vpow2.f32 %v4088_v11 }
 0x71c   : > { %3577 = vmatmul.bf16.gmra.mxu3 %v3445_v45  ;;  %3626 = vmatmul.bf16.gmra.mxu0 %v3446_v40  ;;  %v3393_v40 = vmul.f32 %v5552_v3, %v8599_v63  ;;  %v8930_v45 = vld [vmem:[%s7344_s26 + $0xa8] sm:$0xff]  ;;  %5561 = vrcp.f32 %v3350_v17 }
 0x71d   : > { %v8915_v49 = vpop.eup %5555  ;;  %9671 = vst [vmem:[#allocation78_spill] sm:$0xff] %v8930_v45  ;;  %v3426_v51 = vmul.f32 %v8930_v45, %v3394_v12  ;;  %5563 = vrcp.f32 %v3347_v57 }
 0x71e   : > { %v4146_v42 = vadd.f32 %v8915_v49, %v8911_v4  ;;  %v3425_v63 = vmul.f32 %v8926_v38, %v3393_v40  ;;  %v8943_v40 = vpop.f32.mrf.mxu0  ;;  %5565 = vrcp.f32 %v8907_v48 }
 0x71f   : > { %4021 = vmax.xlane.f32.xlu1 %v4020_v20  ;;  %v8933_v20 = vpop.xlane.xlu2 %4123  ;;  %v3448_v26 = vpack.c.bf16 %v3428_v50, %v3426_v51  ;;  %5567 = vrcp.f32 %v8919_v43 }
 0x720   : > { %v3447_v21 = vpack.c.bf16 %v3427_v33, %v3425_v63  ;;  %v8945_v12 = vpop.eup %5557 }
 0x721   : > { %v8947_v54 = vpop.eup %5559 }
 0x722   : > { %v5562_v11 = vpop.eup %5561  ;;  %v4143_v51 = vadd.f32 %v8947_v54, %v8945_v12 }
 0x723   : > { %v5564_v1 = vpop.eup %5563  ;;  %v3399_v57 = vmul.f32 %v5562_v11, %v8627_v2 }
 0x724   : > { %v3397_v50 = vmul.f32 %v5564_v1, %v8617_v60 }
 0x726   : > { %v4289_v3 = vpop.permute.xlu0 %4288  ;;  %v3429_v45 = vmul.f32 %v8968_v55, %v3397_v50  ;;  %v5566_v50 = vpop.eup %5565 }
 0x727   : > { %4147 = vadd.xlane.f32.xlu1 %v4146_v42  ;;  %v3400_v42 = vmul.f32 %v5562_v11, %v8629_v59  ;;  %v5568_v48 = vpop.eup %5567 }
 0x72b   : > { %v4291_v19 = vpop.permute.xlu1 %4290 }
 0x72c   : > { %4366 = vmatpush.bf16.msrb.mxu0 %v4291_v19  ;;  %5177 = vmatpush.bf16.msrb.mxu2 %v4291_v19 }
 0x72d   : > { %3582 = vmatmul.bf16.gmra.mxu3 %v3447_v21  ;;  %3631 = vmatmul.bf16.gmra.mxu0 %v3448_v26  ;;  %v8960_v21 = vld [vmem:[%s7344_s26 + $0xd0] sm:$0xff]  ;;  %v8964_v26 = vld [vmem:[%s7344_s26 + $0xd8] sm:$0xff] }
 0x72e   : > { %v4287_v63 = vpop.permute.xlu0 %4286  ;;  %9673 = vst [vmem:[#allocation70_spill] sm:$0xff] %v8960_v21  ;;  %v3431_v2 = vmul.f32 %v8960_v21, %v3399_v57  ;;  %v3432_v59 = vmul.f32 %v8964_v26, %v3400_v42  ;;  %v9694_v21 = vld [vmem:[#allocation86_spill] sm:$0xff] }
 0x72f   : > { %9674 = vst [vmem:[#allocation81_spill] sm:$0xff] %v8964_v26  ;;  %v8997_v26 = vld [vmem:[%s7344_s26 + $0xe0] sm:$0xff] }
 0x730   : > { %4367 = vmatpush.bf16.msrb.mxu0 %v4289_v3  ;;  %5178 = vmatpush.bf16.msrb.mxu2 %v4289_v3  ;;  %v3398_v3 = vmul.f32 %v5564_v1, %v8619_v36  ;;  %v9676_v1 = vld [vmem:[#allocation48_spill] sm:$0xff]  ;;  %v3449_v42 = vpack.c.bf16 %v3431_v2, %v3429_v45  ;;  %v3402_v45 = vmul.f32 %v5568_v48, %v8633_v18  ;;  %v8989_v2 = vld [vmem:[%s7344_s26 + $0xf0] sm:$0xff] }
 0x731   : > { %v8951_v17 = vpop.xlane.xlu2 %4129  ;;  %9677 = vst [vmem:[#allocation45_spill] sm:$0xff] %v8989_v2  ;;  %v9681_v18 = vld [vmem:[#allocation75_spill] sm:$0xff] }
 0x732   : > { %v3607_v33 = vpop.f32.mrf.mxu0  ;;  %9679 = vst [vmem:[#allocation29_spill] sm:$0xff] %v8997_v26 }
 0x734   : > { %4368 = vmatpush.bf16.msrb.mxu0 %v4287_v63  ;;  %5179 = vmatpush.bf16.msrb.mxu2 %v4287_v63  ;;  %v8972_v63 = vld [vmem:[%s7344_s26 + $0xc8] sm:$0xff] }
 0x735   : > { %4144 = vadd.xlane.f32.xlu0 %v4143_v51  ;;  %9675 = vst [vmem:[#allocation44_spill] sm:$0xff] %v8972_v63  ;;  %v3430_v60 = vmul.f32 %v8972_v63, %v3398_v3 }
 0x737   : > { %v3450_v51 = vpack.c.bf16 %v3432_v59, %v3430_v60  ;;  %v8993_v59 = vld [vmem:[%s7344_s26 + $0xf8] sm:$0xff] }
 0x738   : > { %v3558_v19 = vpop.f32.mrf.mxu3  ;;  %9678 = vst [vmem:[#allocation46_spill] sm:$0xff] %v8993_v59 }
 0x739   : > { %v3608_v11 = vadd.f32 %v3607_v33, %v3558_v19  ;;  %v4285_v36 = vpop.permute.xlu2 %4284  ;;  %v3403_v19 = vmul.f32 %v5566_v50, %v8641_v0 }
 0x73a   : > { %4369 = vmatpush.bf16.msrb.mxu0 %v4285_v36  ;;  %5180 = vmatpush.bf16.msrb.mxu2 %v4285_v36  ;;  %v8980_v33 = vpop.f32.mrf.mxu0  ;;  %v3401_v36 = vmul.f32 %v5568_v48, %v8631_v53 }
 0x73b   : > { %v8977_v57 = vadd.f32 %v3608_v11, %v9676_v1  ;;  %v3404_v11 = vmul.f32 %v5566_v50, %v8643_v31  ;;  %v3435_v43 = vmul.f32 %v8989_v2, %v3403_v19  ;;  %v9001_v31 = vld [vmem:[%s7344_s26 + $0xe8] sm:$0xff] }
 0x73c   : > { %v3433_v0 = vmul.f32 %v8997_v26, %v3401_v36  ;;  %9680 = vst [vmem:[#allocation53_spill] sm:$0xff] %v9001_v31  ;;  %v3434_v53 = vmul.f32 %v9001_v31, %v3402_v45 }
 0x73d   : > { %3587 = vmatmul.bf16.gmra.mxu3 %v3449_v42  ;;  %3636 = vmatmul.bf16.gmra.mxu0 %v3450_v51  ;;  %v3436_v60 = vmul.f32 %v8993_v59, %v3404_v11 }
 0x73e   : > { %v3451_v48 = vpack.c.bf16 %v3435_v43, %v3433_v0 }
 0x73f   : > { %v3452_v19 = vpack.c.bf16 %v3436_v60, %v3434_v53 }
 0x740   : > { %v8982_v3 = vpop.f32.mrf.mxu3 }
 0x742   : > { %v3612_v1 = vpop.f32.mrf.mxu0 }
 0x748   : > { %v3563_v42 = vpop.f32.mrf.mxu3 }
 0x749   : > { %v3613_v51 = vadd.f32 %v3612_v1, %v3563_v42 }
 0x74b   : > { %v9005_v50 = vadd.f32 %v3613_v51, %v9681_v18 }
 0x74d   : > { %9682 = vst [vmem:[#allocation31_spill] sm:$0xff] %v9005_v50  ;;  %3592 = vmatmul.bf16.gmra.mxu3 %v3451_v48  ;;  %3641 = vmatmul.bf16.gmra.mxu0 %v3452_v19  ;;  %v9683_v19 = vld [vmem:[#allocation18_spill] sm:$0xff] }
 0x756   : > { %v4010_v2 = vpop.xlane.xlu1 %4009 }
 0x757   : > { %v4046_v11 = vsub.f32 %v8723_v46, %v4010_v2  ;;  %v4047_v1 = vsub.f32 %v8719_v58, %v4010_v2 }
 0x759   : > { %v4098_v42 = vmul.f32 1.442695, %v4046_v11  ;;  %v4100_v59 = vmul.f32 1.442695, %v4047_v1  ;;  %v4013_v63 = vpop.xlane.xlu0 %4012 }
 0x75a   : > { %v4048_v36 = vsub.f32 %v8733_v22, %v4013_v63  ;;  %v4049_v45 = vsub.f32 %v8727_v25, %v4013_v63 }
 0x75b   : > { %5569 = vpow2.f32 %v4098_v42 }
 0x75c   : > { %5571 = vpow2.f32 %v4100_v59  ;;  %v4102_v51 = vmul.f32 1.442695, %v4048_v36  ;;  %v4104_v18 = vmul.f32 1.442695, %v4049_v45 }
 0x75e   : > { %v4016_v43 = vpop.xlane.xlu1 %4015  ;;  %5573 = vpow2.f32 %v4102_v51  ;;  %v9684_v51 = vld [vmem:[#allocation20_spill] sm:$0xff] }
 0x75f   : > { %v4050_v60 = vsub.f32 %v8745_v29, %v4016_v43  ;;  %v4051_v0 = vsub.f32 %v8739_v28, %v4016_v43  ;;  %5575 = vpow2.f32 %v4104_v18  ;;  %v9685_v43 = vld [vmem:[#allocation72_spill] sm:$0xff] }
 0x760   : > { %5577 = vrcp.f32 %v8933_v20 }
 0x761   : > { %v9013_v46 = vpop.eup %5569  ;;  %v4106_v58 = vmul.f32 1.442695, %v4050_v60  ;;  %v4108_v2 = vmul.f32 1.442695, %v4051_v0  ;;  %v4127_v22 = vpop.xlane.xlu0 %4126 }
 0x762   : > { %v9016_v53 = vpop.eup %5571  ;;  %v9036_v0 = vpop.f32.mrf.mxu0 }
 0x763   : > { %5579 = vpow2.f32 %v4106_v58  ;;  %v4152_v25 = vadd.f32 %v9016_v53, %v9013_v46  ;;  %9686 = vst [vmem:[#allocation63_spill] sm:$0xff] %v9036_v0 }
 0x764   : > { %5581 = vpow2.f32 %v4108_v2  ;;  %v9020_v63 = vpop.eup %5573 }
 0x765   : > { %5583 = vrcp.f32 %v4127_v22  ;;  %4153 = vadd.xlane.f32.xlu1 %v4152_v25  ;;  %v9022_v28 = vpop.eup %5575  ;;  %v9039_v22 = vpop.f32.mrf.mxu3 }
 0x766   : > { %v5578_v29 = vpop.eup %5577  ;;  %v4155_v20 = vadd.f32 %v9022_v28, %v9020_v63  ;;  %9687 = vst [vmem:[#allocation84_spill] sm:$0xff] %v9039_v22 }
 0x767   : > { %v4186_v11 = vmul.f32 %v5578_v29, %v9683_v19 }
 0x768   : > { %4156 = vadd.xlane.f32.xlu2 %v4155_v20 }
 0x769   : > { %v9026_v59 = vpop.eup %5579  ;;  %v4133_v45 = vpop.xlane.xlu0 %4132  ;;  %v4218_v18 = vmul.f32 %v9684_v51, %v4186_v11  ;;  %v9688_v11 = vld [vmem:[#allocation65_spill] sm:$0xff] }
 0x76a   : > { %v9028_v48 = vpop.eup %5581  ;;  %5585 = vrcp.f32 %v4133_v45  ;;  %v4187_v51 = vmul.f32 %v5578_v29, %v9688_v11  ;;  %v9690_v45 = vld [vmem:[#allocation24_spill] sm:$0xff] }
 0x76b   : > { %v5584_v1 = vpop.eup %5583  ;;  %v4158_v42 = vadd.f32 %v9028_v48, %v9026_v59  ;;  %5587 = vrcp.f32 %v8951_v17 }
 0x76c   : > { %v4188_v36 = vmul.f32 %v5584_v1, %v8749_v30  ;;  %v4189_v20 = vmul.f32 %v5584_v1, %v8753_v39  ;;  %v9693_v39 = vld [vmem:[#allocation68_spill] sm:$0xff] }
 0x76d   : > { %4159 = vadd.xlane.f32.xlu1 %v4158_v42 }
 0x76e   : > { %v4220_v60 = vmul.f32 %v9685_v43, %v4188_v36  ;;  %v9689_v36 = vld [vmem:[#allocation73_spill] sm:$0xff] }
 0x770   : > { %v4250_v58 = vpack.c.bf16 %v4220_v60, %v4218_v18  ;;  %v5586_v2 = vpop.eup %5585  ;;  %v4221_v18 = vmul.f32 %v9690_v45, %v4189_v20  ;;  %v9691_v60 = vld [vmem:[#allocation25_spill] sm:$0xff] }
 0x771   : > { %v5588_v25 = vpop.eup %5587  ;;  %v4192_v19 = vmul.f32 %v5586_v2, %v8763_v24 }
 0x772   : > { %4322 = vmatmul.bf16.vlgmr.msra.gmra.mxu3 %v4250_v58  ;;  %v4136_v42 = vpop.xlane.xlu2 %4135  ;;  %v4190_v43 = vmul.f32 %v5588_v25, %v9689_v36  ;;  %v9692_v58 = vld [vmem:[#allocation19_spill] sm:$0xff] }
 0x773   : > { %v4224_v17 = vmul.f32 %v9691_v60, %v4192_v19  ;;  %v4219_v31 = vmul.f32 %v9692_v58, %v4187_v51 }
 0x774   : > { %v4222_v1 = vmul.f32 %v9693_v39, %v4190_v43  ;;  %v9696_v39 = vld [vmem:[#allocation71_spill] sm:$0xff] }
 0x775   : > { %v4251_v24 = vpack.c.bf16 %v4221_v18, %v4219_v31  ;;  %v9695_v18 = vld [vmem:[#allocation26_spill] sm:$0xff] }
 0x776   : > { %v3617_v30 = vpop.f32.mrf.mxu0  ;;  %v4252_v36 = vpack.c.bf16 %v4224_v17, %v4222_v1 }
 0x77a   : > { %v4139_v26 = vpop.xlane.xlu1 %4138  ;;  %v4025_v20 = vpop.xlane.xlu2 %4024 }
 0x77b   : > { %5589 = vrcp.f32 %v4139_v26 }
 0x77c   : > { %v4283_v0 = vpop.permute.xlu0 %4282  ;;  %v3568_v22 = vpop.f32.mrf.mxu3  ;;  %5591 = vrcp.f32 %v4136_v42  ;;  %v4193_v42 = vmul.f32 %v5586_v2, %v8765_v6  ;;  %v9697_v6 = vld [vmem:[#allocation69_spill] sm:$0xff] }
 0x77d   : > { %v3618_v50 = vadd.f32 %v3617_v30, %v3568_v22  ;;  %4370 = vmatpush.bf16.msrb.mxu0 %v4283_v0  ;;  %5181 = vmatpush.bf16.msrb.mxu2 %v4283_v0  ;;  %v4056_v30 = vsub.f32 %v8811_v56, %v4025_v20 }
 0x77e   : > { %v9052_v11 = vpop.f32.mrf.mxu0  ;;  %v4225_v1 = vmul.f32 %v9696_v39, %v4193_v42 }
 0x77f   : > { %v9050_v29 = vadd.f32 %v3618_v50, %v9694_v21  ;;  %v4057_v21 = vsub.f32 %v8807_v15, %v4025_v20  ;;  %v4118_v60 = vmul.f32 1.442695, %v4056_v30 }
 0x780   : > { %4371 = vmatmul.bf16.vlgmr.msrb.gmra.mxu0 %v4251_v24 }
 0x781   : > { %v5590_v0 = vpop.eup %5589  ;;  %v4120_v17 = vmul.f32 1.442695, %v4057_v21 }
 0x782   : > { %4327 = vmatmul.bf16.gmra.mxu3 %v4252_v36  ;;  %v4019_v19 = vpop.xlane.xlu1 %4018  ;;  %v5592_v43 = vpop.eup %5591  ;;  %v4196_v45 = vmul.f32 %v5590_v0, %v8809_v47  ;;  %v9698_v47 = vld [vmem:[#allocation33_spill] sm:$0xff] }
 0x783   : > { %v4052_v51 = vsub.f32 %v8857_v8, %v4019_v19  ;;  %v4053_v22 = vsub.f32 %v8835_v9, %v4019_v19  ;;  %v4191_v8 = vmul.f32 %v5588_v25, %v9695_v18  ;;  %v4194_v9 = vmul.f32 %v5592_v43, %v8793_v62 }
 0x784   : > { %v9058_v50 = vpop.f32.mrf.mxu3  ;;  %v4228_v15 = vmul.f32 %v8782_v32, %v4196_v45  ;;  %v4195_v39 = vmul.f32 %v5592_v43, %v8797_v27  ;;  %v9701_v27 = vld [vmem:[#allocation82_spill] sm:$0xff] }
 0x785   : > { %v4110_v31 = vmul.f32 1.442695, %v4052_v51  ;;  %v4112_v26 = vmul.f32 1.442695, %v4053_v22  ;;  %v4223_v2 = vmul.f32 %v9697_v6, %v4191_v8  ;;  %v4226_v25 = vmul.f32 %v9698_v47, %v4194_v9 }
 0x786   : > { %v4197_v9 = vmul.f32 %v5590_v0, %v8815_v61 }
 0x787   : > { %5593 = vpow2.f32 %v4110_v31  ;;  %v4253_v20 = vpack.c.bf16 %v4225_v1, %v4223_v2  ;;  %v4254_v51 = vpack.c.bf16 %v4228_v15, %v4226_v25  ;;  %v9700_v15 = vld [vmem:[#allocation74_spill] sm:$0xff] }
 0x788   : > { %5595 = vpow2.f32 %v4112_v26  ;;  %v9699_v26 = vld [vmem:[#allocation17_spill] sm:$0xff]  ;;  %v4227_v6 = vmul.f32 %v9700_v15, %v4195_v39 }
 0x789   : > { %v3622_v56 = vpop.f32.mrf.mxu0  ;;  %5597 = vpow2.f32 %v4118_v60 }
 0x78a   : > { %v4142_v58 = vpop.xlane.xlu1 %4141  ;;  %5599 = vpow2.f32 %v4120_v17 }
 0x78d   : > { %v9066_v24 = vpop.eup %5593 }
 0x78e   : > { %v9069_v36 = vpop.eup %5595 }
 0x78f   : > { %v4161_v62 = vadd.f32 %v9069_v36, %v9066_v24  ;;  %v3573_v19 = vpop.f32.mrf.mxu3  ;;  %v9076_v31 = vpop.eup %5597 }
 0x790   : > { %v3623_v22 = vadd.f32 %v3622_v56, %v3573_v19  ;;  %4376 = vmatmul.bf16.gmra.mxu0 %v4253_v20  ;;  %v9083_v18 = vpop.eup %5599  ;;  %v9702_v20 = vld [vmem:[#allocation40_spill] sm:$0xff] }
 0x791   : > { %4162 = vadd.xlane.f32.xlu2 %v4161_v62  ;;  %v9074_v32 = vpop.f32.mrf.mxu0  ;;  %v4167_v17 = vadd.f32 %v9083_v18, %v9076_v31 }
 0x792   : > { %4332 = vmatmul.bf16.gmra.mxu3 %v4254_v51  ;;  %v4022_v30 = vpop.xlane.xlu1 %4021  ;;  %v9079_v21 = vadd.f32 %v3623_v22, %v9699_v26 }
 0x793   : > { %v4054_v42 = vsub.f32 %v8903_v13, %v4022_v30  ;;  %v4055_v45 = vsub.f32 %v8901_v35, %v4022_v30  ;;  %v4229_v13 = vmul.f32 %v8790_v34, %v4197_v9  ;;  %v9703_v34 = vld [vmem:[#allocation51_spill] sm:$0xff]  ;;  %v9704_v30 = vld [vmem:[#allocation52_spill] sm:$0xff] }
 0x794   : > { %v2752_v19 = vadd.f32 %v9703_v34, %v9702_v20  ;;  %v9706_v34 = vld [vmem:[#allocation79_spill] sm:$0xff] }
 0x795   : > { %v4114_v8 = vmul.f32 1.442695, %v4054_v42  ;;  %v4116_v60 = vmul.f32 1.442695, %v4055_v45  ;;  %v4255_v0 = vpack.c.bf16 %v4229_v13, %v4227_v6 }
 0x796   : > { %v2801_v26 = vadd.f32 %v9704_v30, %v2752_v19 }
 0x797   : > { %5601 = vpow2.f32 %v4114_v8  ;;  %v9088_v56 = vpop.f32.mrf.mxu3 }
 0x798   : > { %5603 = vpow2.f32 %v4116_v60 }
 0x799   : > { %4168 = vadd.xlane.f32.xlu2 %v4167_v17  ;;  %v3627_v1 = vpop.f32.mrf.mxu0  ;;  %5605 = vrcp.f32 %v4142_v58 }
 0x79d   : > { %v9092_v35 = vpop.eup %5601 }
 0x79e   : > { %v9095_v2 = vpop.eup %5603 }
 0x79f   : > { %v4164_v61 = vadd.f32 %v9095_v2, %v9092_v35  ;;  %v3578_v47 = vpop.f32.mrf.mxu3  ;;  %v5606_v8 = vpop.eup %5605 }
 0x7a0   : > { %v3628_v25 = vadd.f32 %v3627_v1, %v3578_v47  ;;  %4381 = vmatmul.bf16.gmra.mxu0 %v4255_v0  ;;  %v4198_v9 = vmul.f32 %v5606_v8, %v8865_v5  ;;  %v4199_v17 = vmul.f32 %v5606_v8, %v8867_v41  ;;  %v4148_v1 = vpop.xlane.xlu1 %4147  ;;  %v9705_v41 = vld [vmem:[#allocation77_spill] sm:$0xff]  ;;  %v9709_v8 = vld [vmem:[#allocation58_spill] sm:$0xff] }
 0x7a1   : > { %4165 = vadd.xlane.f32.xlu1 %v4164_v61  ;;  %v3629_v62 = vpop.f32.mrf.mxu0  ;;  %v4151_v61 = vpop.xlane.xlu2 %4150 }
 0x7a2   : > { %v9100_v43 = vadd.f32 %v3628_v25, %v9701_v27  ;;  %v4230_v47 = vmul.f32 %v8840_v23, %v4198_v9 }
 0x7a7   : > { %v3580_v51 = vpop.f32.mrf.mxu3 }
 0x7a8   : > { %v4145_v22 = vpop.xlane.xlu0 %4144  ;;  %v3630_v42 = vadd.f32 %v3629_v62, %v3580_v51  ;;  %v4231_v62 = vmul.f32 %v8848_v37, %v4199_v17  ;;  %v9710_v17 = vld [vmem:[#allocation32_spill] sm:$0xff] }
 0x7a9   : > { %5607 = vrcp.f32 %v4145_v22  ;;  %v9708_v22 = vld [vmem:[#allocation60_spill] sm:$0xff] }
 0x7aa   : > { %v3632_v45 = vpop.f32.mrf.mxu0  ;;  %v9105_v60 = vadd.f32 %v3630_v42, %v2801_v26  ;;  %5609 = vrcp.f32 %v4148_v1 }
 0x7ab   : > { %5611 = vrcp.f32 %v4151_v61 }
 0x7af   : > { %v5608_v39 = vpop.eup %5607 }
 0x7b0   : > { %v4200_v13 = vmul.f32 %v5608_v39, %v8945_v12  ;;  %v4201_v58 = vmul.f32 %v5608_v39, %v8947_v54  ;;  %v3583_v15 = vpop.f32.mrf.mxu3  ;;  %v9707_v54 = vld [vmem:[#allocation80_spill] sm:$0xff]  ;;  %v5610_v23 = vpop.eup %5609 }
 0x7b1   : > { %v3633_v6 = vadd.f32 %v3632_v45, %v3583_v15  ;;  %v2757_v19 = vadd.f32 %v9707_v54, %v9706_v34  ;;  %v5612_v26 = vpop.eup %5611  ;;  %v4202_v42 = vmul.f32 %v5610_v23, %v8911_v4  ;;  %v4203_v45 = vmul.f32 %v5610_v23, %v8915_v49  ;;  %v9712_v15 = vld [vmem:[#allocation35_spill] sm:$0xff]  ;;  %v9716_v54 = vld [vmem:[#allocation90_spill] sm:$0xff] }
 0x7b2   : > { %v3634_v0 = vpop.f32.mrf.mxu0  ;;  %v4232_v25 = vmul.f32 %v8844_v52, %v4200_v13  ;;  %v4233_v5 = vmul.f32 %v8852_v14, %v4201_v58  ;;  %v4204_v9 = vmul.f32 %v5612_v26, %v9709_v8  ;;  %v4205_v39 = vmul.f32 %v5612_v26, %v9710_v17  ;;  %v9711_v13 = vld [vmem:[#allocation34_spill] sm:$0xff] }
 0x7b3   : > { %v9116_v27 = vadd.f32 %v3633_v6, %v9705_v41  ;;  %v2806_v52 = vadd.f32 %v9708_v22, %v2757_v19  ;;  %v4234_v58 = vmul.f32 %v9711_v13, %v4202_v42  ;;  %v4235_v6 = vmul.f32 %v9712_v15, %v4203_v45  ;;  %v9714_v41 = vld [vmem:[#allocation64_spill] sm:$0xff] }
 0x7b4   : > { %v4256_v20 = vpack.c.bf16 %v4232_v25, %v4230_v47  ;;  %v4257_v12 = vpack.c.bf16 %v4233_v5, %v4231_v62  ;;  %v4237_v47 = vmul.f32 %v8897_v44, %v4205_v39  ;;  %v9713_v25 = vld [vmem:[#allocation88_spill] sm:$0xff] }
 0x7b6   : > { %4337 = vmatmul.bf16.gmra.mxu3 %v4256_v20  ;;  %4386 = vmatmul.bf16.gmra.mxu0 %v4257_v12  ;;  %v4259_v49 = vpack.c.bf16 %v4237_v47, %v4235_v6  ;;  %v9715_v20 = vld [vmem:[#allocation87_spill] sm:$0xff]  ;;  %v9719_v47 = vld [vmem:[#allocation78_spill] sm:$0xff] }
 0x7b7   : > { %v2762_v12 = vadd.f32 %v9715_v20, %v9714_v41 }
 0x7b8   : > { %v3585_v51 = vpop.f32.mrf.mxu3 }
 0x7b9   : > { %v3635_v30 = vadd.f32 %v3634_v0, %v3585_v51  ;;  %v4236_v0 = vmul.f32 %v8893_v7, %v4204_v9  ;;  %v2811_v19 = vadd.f32 %v9716_v54, %v2762_v12 }
 0x7ba   : > { %v3637_v37 = vpop.f32.mrf.mxu0 }
 0x7bb   : > { %v9121_v14 = vadd.f32 %v3635_v30, %v2806_v52  ;;  %v4258_v5 = vpack.c.bf16 %v4236_v0, %v4234_v58  ;;  %v9717_v52 = vld [vmem:[#allocation89_spill] sm:$0xff] }
 0x7c0   : > { %v3588_v1 = vpop.f32.mrf.mxu3 }
 0x7c1   : > { %v3638_v61 = vadd.f32 %v3637_v37, %v3588_v1  ;;  %v9718_v37 = vld [vmem:[#allocation85_spill] sm:$0xff] }
 0x7c2   : > { %v3639_v4 = vpop.f32.mrf.mxu0  ;;  %v2767_v26 = vadd.f32 %v8949_v16, %v9718_v37 }
 0x7c3   : > { %v9132_v62 = vadd.f32 %v3638_v61, %v9713_v25 }
 0x7c4   : > { %v2816_v9 = vadd.f32 %v8943_v40, %v2767_v26 }
 0x7c6   : > { %4342 = vmatmul.bf16.gmra.mxu3 %v4258_v5  ;;  %4391 = vmatmul.bf16.gmra.mxu0 %v4259_v49 }
 0x7c8   : > { %v3590_v34 = vpop.f32.mrf.mxu3 }
 0x7c9   : > { %v3640_v51 = vadd.f32 %v3639_v4, %v3590_v34  ;;  %v9720_v4 = vld [vmem:[#allocation67_spill] sm:$0xff]  ;;  %v9722_v34 = vld [vmem:[#allocation36_spill] sm:$0xff] }
 0x7ca   : > { %v3642_v7 = vpop.f32.mrf.mxu0 }
 0x7cb   : > { %v9137_v23 = vadd.f32 %v3640_v51, %v2811_v19  ;;  %v9724_v19 = vld [vmem:[#allocation54_spill] sm:$0xff] }
 0x7d0   : > { %v3593_v22 = vpop.f32.mrf.mxu3 }
 0x7d1   : > { %v3643_v44 = vadd.f32 %v3642_v7, %v3593_v22  ;;  %v3610_v7 = vadd.f32 %v8980_v33, %v8982_v3 }
 0x7d2   : > { %v3644_v42 = vpop.f32.mrf.mxu0 }
 0x7d3   : > { %v9140_v30 = vadd.f32 %v3643_v44, %v9717_v52  ;;  %v9725_v52 = vld [vmem:[#allocation76_spill] sm:$0xff] }
 0x7d8   : > { %v3595_v45 = vpop.f32.mrf.mxu3  ;;  %v4154_v8 = vpop.xlane.xlu1 %4153 }
 0x7d9   : > { %v3645_v17 = vadd.f32 %v3644_v42, %v3595_v45  ;;  %5613 = vrcp.f32 %v4154_v8 }
 0x7db   : > { %v9145_v39 = vadd.f32 %v3645_v17, %v2816_v9  ;;  %v4157_v1 = vpop.xlane.xlu2 %4156 }
 0x7dc   : > { %5615 = vrcp.f32 %v4157_v1 }
 0x7df   : > { %v5614_v13 = vpop.eup %5613 }
 0x7e0   : > { %v4206_v58 = vmul.f32 %v5614_v13, %v9013_v46  ;;  %v4207_v15 = vmul.f32 %v5614_v13, %v9016_v53  ;;  %v4160_v53 = vpop.xlane.xlu1 %4159 }
 0x7e1   : > { %5617 = vrcp.f32 %v4160_v53 }
 0x7e2   : > { %v5616_v6 = vpop.eup %5615  ;;  %v4238_v0 = vmul.f32 %v8926_v38, %v4206_v58  ;;  %v4239_v25 = vmul.f32 %v9719_v47, %v4207_v15  ;;  %v9161_v38 = vld [vmem:[%s9288_s9] ss:$0 sm:$0xff] }
 0x7e3   : > { %v4208_v16 = vmul.f32 %v5616_v6, %v9020_v63  ;;  %v4209_v61 = vmul.f32 %v5616_v6, %v9022_v28  ;;  %v9721_v63 = vld [vmem:[#allocation28_spill] sm:$0xff] }
 0x7e4   : > { %v2635_v28 = vadd.f32 %v9722_v34, %v9721_v63  ;;  %v9734_v63 = vld [vmem:[#allocation63_spill] sm:$0xff] }
 0x7e5   : > { %v4240_v40 = vmul.f32 %v8936_v10, %v4208_v16  ;;  %v4241_v5 = vmul.f32 %v9720_v4, %v4209_v61  ;;  %v9726_v61 = vld [vmem:[#allocation70_spill] sm:$0xff]  ;;  %v9730_v4 = vld [vmem:[#allocation41_spill] sm:$0xff] }
 0x7e6   : > { %v2732_v51 = vadd.f32 %v9724_v19, %v2635_v28 }
 0x7e7   : > { %v4260_v49 = vpack.c.bf16 %v4240_v40, %v4238_v0  ;;  %v4261_v41 = vpack.c.bf16 %v4241_v5, %v4239_v25  ;;  %v5618_v26 = vpop.eup %5617  ;;  %v9727_v40 = vld [vmem:[#allocation44_spill] sm:$0xff]  ;;  %v9729_v25 = vld [vmem:[#allocation38_spill] sm:$0xff] }
 0x7e8   : > { %v2781_v37 = vadd.f32 %v9725_v52, %v2732_v51  ;;  %v4210_v17 = vmul.f32 %v5618_v26, %v9026_v59  ;;  %v4211_v1 = vmul.f32 %v5618_v26, %v9028_v48  ;;  %v9728_v59 = vld [vmem:[#allocation81_spill] sm:$0xff]  ;;  %v2640_v5 = vadd.f32 %v9730_v4, %v9729_v25  ;;  %v9743_v4 = vld [vmem:[#allocation30_spill] sm:$0xff] }
 0x7e9   : > { %4347 = vmatmul.bf16.gmra.mxu3 %v4260_v49  ;;  %4396 = vmatmul.bf16.gmra.mxu0 %v4261_v41 }
 0x7ea   : > { %v3648_v42 = vadd.f32 %v3610_v7, %v2781_v37  ;;  %v4242_v16 = vmul.f32 %v8968_v55, %v4210_v17  ;;  %v4243_v47 = vmul.f32 %v9727_v40, %v4211_v1  ;;  %v9732_v55 = vld [vmem:[#allocation49_spill] sm:$0xff]  ;;  %v9736_v17 = vld [vmem:[#allocation46_spill] sm:$0xff] }
 0x7eb   : > { %v9741_v40 = vld [vmem:[#allocation62_spill] sm:$0xff] }
 0x7f5   : > { %v4323_v46 = vpop.f32.mrf.mxu3 }
 0x7fd   : > { %v4325_v20 = vpop.f32.mrf.mxu3  ;;  %v4372_v12 = vpop.f32.mrf.mxu0 }
 0x7fe   : > { %v4373_v54 = vadd.f32 %v4372_v12, %v4323_v46  ;;  %v9733_v12 = vld [vmem:[#allocation84_spill] sm:$0xff] }
 0x7ff   : > { %v3615_v34 = vadd.f32 %v9734_v63, %v9733_v12  ;;  %v9746_v63 = vld [vmem:[#allocation59_spill] sm:$0xff] }
 0x800   : > { %v4412_v10 = vadd.f32 %v4373_v54, %v8977_v57 }
 0x802   : > { %v4432_v22 = vadd.f32 %v9161_v38, %v4412_v10  ;;  %v9735_v10 = vld [vmem:[#allocation50_spill] sm:$0xff] }
 0x804   : > { %v4163_v44 = vpop.xlane.xlu2 %4162  ;;  %4448 = vst.msk [vmem:[%s9167_s15] sm:$0xff] %vm594_vm0, %v4432_v22 }
 0x805   : > { %5619 = vrcp.f32 %v4163_v44  ;;  %v4374_v57 = vpop.f32.mrf.mxu0  ;;  %v4328_v8 = vpop.f32.mrf.mxu3 }
 0x806   : > { %v4375_v45 = vadd.f32 %v4374_v57, %v4325_v20  ;;  %v2737_v20 = vadd.f32 %v9732_v55, %v2640_v5 }
 0x808   : > { %v4413_v9 = vadd.f32 %v4375_v45, %v3648_v42  ;;  %v2786_v19 = vadd.f32 %v9735_v10, %v2737_v20  ;;  %v9744_v20 = vld [vmem:[#allocation42_spill] sm:$0xff]  ;;  %v3625_v10 = vadd.f32 %v9074_v32, %v9088_v56 }
 0x80a   : > { %v4433_v3 = vadd.f32 %v9161_v38, %v4413_v9  ;;  %v3650_v22 = vadd.f32 %v3615_v34, %v2786_v19 }
 0x80b   : > { %v5620_v33 = vpop.eup %5619 }
 0x80c   : > { %v4212_v13 = vmul.f32 %v5620_v33, %v9066_v24  ;;  %v4213_v58 = vmul.f32 %v5620_v33, %v9069_v36  ;;  %4449 = vst.msk [vmem:[%s9167_s15 + $0x8] sm:$0xff] %vm594_vm0, %v4433_v3  ;;  %v4169_v15 = vpop.xlane.xlu2 %4168  ;;  %v9731_v36 = vld [vmem:[#allocation31_spill] sm:$0xff]  ;;  %v9737_v33 = vld [vmem:[#allocation53_spill] sm:$0xff] }
 0x80d   : > { %v4377_v6 = vpop.f32.mrf.mxu0  ;;  %5621 = vrcp.f32 %v4169_v15  ;;  %v4330_v53 = vpop.f32.mrf.mxu3  ;;  %v9739_v15 = vld [vmem:[#allocation45_spill] sm:$0xff] }
 0x80e   : > { %v4244_v0 = vmul.f32 %v9726_v61, %v4212_v13  ;;  %v4245_v48 = vmul.f32 %v9728_v59, %v4213_v58  ;;  %v4378_v49 = vadd.f32 %v4377_v6, %v4328_v8  ;;  %v9738_v58 = vld [vmem:[#allocation29_spill] sm:$0xff] }
 0x810   : > { %v4262_v24 = vpack.c.bf16 %v4244_v0, %v4242_v16  ;;  %v4263_v41 = vpack.c.bf16 %v4245_v48, %v4243_v47  ;;  %v4414_v46 = vadd.f32 %v4378_v49, %v9731_v36  ;;  %v9740_v0 = vld [vmem:[#allocation27_spill] sm:$0xff]  ;;  %v3620_v48 = vadd.f32 %v9052_v11, %v9058_v50 }
 0x811   : > { %v9742_v47 = vld [vmem:[#allocation47_spill] sm:$0xff] }
 0x812   : > { %4352 = vmatmul.bf16.gmra.mxu3 %v4262_v24  ;;  %4401 = vmatmul.bf16.gmra.mxu0 %v4263_v41  ;;  %v4434_v28 = vadd.f32 %v9161_v38, %v4414_v46  ;;  %v9745_v11 = vld [vmem:[#allocation43_spill] sm:$0xff] }
 0x813   : > { %v5622_v7 = vpop.eup %5621  ;;  %v2650_v50 = vadd.f32 %v9745_v11, %v9744_v20 }
 0x814   : > { %v4166_v54 = vpop.xlane.xlu1 %4165  ;;  %4450 = vst.msk [vmem:[%s9167_s15 + $0x10] sm:$0xff] %vm594_vm0, %v4434_v28  ;;  %v4216_v37 = vmul.f32 %v5622_v7, %v9076_v31  ;;  %v4217_v57 = vmul.f32 %v5622_v7, %v9083_v18 }
 0x815   : > { %5623 = vrcp.f32 %v4166_v54  ;;  %v4379_v51 = vpop.f32.mrf.mxu0  ;;  %v4333_v45 = vpop.f32.mrf.mxu3  ;;  %v2747_v34 = vadd.f32 %v9746_v63, %v2650_v50 }
 0x816   : > { %v4380_v44 = vadd.f32 %v4379_v51, %v4330_v53  ;;  %v4249_v1 = vmul.f32 %v9736_v17, %v4217_v57  ;;  %v4248_v18 = vmul.f32 %v9739_v15, %v4216_v37  ;;  %v9747_v51 = vld [vmem:[#allocation61_spill] sm:$0xff] }
 0x817   : > { %v2796_v7 = vadd.f32 %v9747_v51, %v2747_v34 }
 0x818   : > { %v4415_v52 = vadd.f32 %v4380_v44, %v3650_v22 }
 0x819   : > { %v3654_v44 = vadd.f32 %v3625_v10, %v2796_v7 }
 0x81a   : > { %v4435_v42 = vadd.f32 %v9161_v38, %v4415_v52 }
 0x81b   : > { %v5624_v26 = vpop.eup %5623 }
 0x81c   : > { %v4214_v8 = vmul.f32 %v5624_v26, %v9092_v35  ;;  %v4215_v9 = vmul.f32 %v5624_v26, %v9095_v2  ;;  %4451 = vst.msk [vmem:[%s9167_s15 + $0x18] sm:$0xff] %vm594_vm0, %v4435_v42  ;;  %v2645_v35 = vadd.f32 %v9741_v40, %v9740_v0 }
 0x81d   : > { %v4382_v13 = vpop.f32.mrf.mxu0  ;;  %v4335_v49 = vpop.f32.mrf.mxu3 }
 0x81e   : > { %v4247_v3 = vmul.f32 %v9737_v33, %v4215_v9  ;;  %v4246_v31 = vmul.f32 %v9738_v58, %v4214_v8  ;;  %v4383_v6 = vadd.f32 %v4382_v13, %v4333_v45  ;;  %v2742_v59 = vadd.f32 %v9742_v47, %v2645_v35 }
 0x820   : > { %v4265_v16 = vpack.c.bf16 %v4249_v1, %v4247_v3  ;;  %v4264_v61 = vpack.c.bf16 %v4248_v18, %v4246_v31  ;;  %v4416_v2 = vadd.f32 %v4383_v6, %v9050_v29  ;;  %v2791_v5 = vadd.f32 %v9743_v4, %v2742_v59 }
 0x822   : > { %4357 = vmatmul.bf16.gmra.mxu3 %v4264_v61  ;;  %4406 = vmatmul.bf16.vlgmr.msrb.gmra.mxu2 %v4265_v16  ;;  %v4436_v25 = vadd.f32 %v9161_v38, %v4416_v2  ;;  %v3652_v41 = vadd.f32 %v3620_v48, %v2791_v5 }
 0x824   : > { %4452 = vst.msk [vmem:[%s9167_s15 + $0x20] sm:$0xff] %vm594_vm0, %v4436_v25 }
 0x825   : > { %v4384_v24 = vpop.f32.mrf.mxu0 }
 0x826   : > { %v4385_v36 = vadd.f32 %v4384_v24, %v4335_v49 }
 0x828   : > { %v4417_v46 = vadd.f32 %v4385_v36, %v3652_v41 }
 0x82a   : > { %v4437_v29 = vadd.f32 %v9161_v38, %v4417_v46 }
 0x82c   : > { %4453 = vst.msk [vmem:[%s9167_s15 + $0x28] sm:$0xff] %vm594_vm0, %v4437_v29 }
 0x833   : > { %v4387_v53 = vpop.f32.mrf.mxu0 }
 0x839   : > { %v4338_v55 = vpop.f32.mrf.mxu3 }
 0x83a   : > { %v4388_v12 = vadd.f32 %v4387_v53, %v4338_v55 }
 0x83b   : > { %v4389_v54 = vpop.f32.mrf.mxu0 }
 0x83c   : > { %v4418_v28 = vadd.f32 %v4388_v12, %v9079_v21 }
 0x83e   : > { %v4438_v19 = vadd.f32 %v9161_v38, %v4418_v28 }
 0x840   : > { %4454 = vst.msk [vmem:[%s9167_s15 + $0x30] sm:$0xff] %vm594_vm0, %v4438_v19 }
 0x841   : > { %v4340_v22 = vpop.f32.mrf.mxu3 }
 0x842   : > { %v4390_v52 = vadd.f32 %v4389_v54, %v4340_v22 }
 0x843   : > { %v4392_v26 = vpop.f32.mrf.mxu0 }
 0x844   : > { %v4419_v37 = vadd.f32 %v4390_v52, %v3654_v44 }
 0x846   : > { %v4439_v57 = vadd.f32 %v9161_v38, %v4419_v37 }
 0x848   : > { %4455 = vst.msk [vmem:[%s9167_s15 + $0x38] sm:$0xff] %vm594_vm0, %v4439_v57 }
 0x849   : > { %v4343_v21 = vpop.f32.mrf.mxu3 }
 0x84a   : > { %v4393_v42 = vadd.f32 %v4392_v26, %v4343_v21 }
 0x84b   : > { %v4394_v45 = vpop.f32.mrf.mxu0 }
 0x84c   : > { %v4420_v32 = vadd.f32 %v4393_v42, %v9100_v43 }
 0x84e   : > { %v4440_v56 = vadd.f32 %v9161_v38, %v4420_v32 }
 0x850   : > { %4456 = vst.msk [vmem:[%s9167_s15 + $0x40] sm:$0xff] %vm594_vm0, %v4440_v56 }
 0x851   : > { %v4345_v8 = vpop.f32.mrf.mxu3 }
 0x852   : > { %v4395_v9 = vadd.f32 %v4394_v45, %v4345_v8 }
 0x854   : > { %v4421_v17 = vadd.f32 %v4395_v9, %v9105_v60 }
 0x856   : > { %v4441_v1 = vadd.f32 %v9161_v38, %v4421_v17 }
 0x858   : > { %4457 = vst.msk [vmem:[%s9167_s15 + $0x48] sm:$0xff] %vm594_vm0, %v4441_v1 }
 0x866   : > { %v4397_v33 = vpop.f32.mrf.mxu0 }
 0x86c   : > { %v4348_v3 = vpop.f32.mrf.mxu3 }
 0x86d   : > { %v4398_v13 = vadd.f32 %v4397_v33, %v4348_v3 }
 0x86e   : > { %v4399_v31 = vpop.f32.mrf.mxu0 }
 0x86f   : > { %v4422_v43 = vadd.f32 %v4398_v13, %v9116_v27 }
 0x871   : > { %v4442_v58 = vadd.f32 %v9161_v38, %v4422_v43 }
 0x873   : > { %4458 = vst.msk [vmem:[%s9167_s15 + $0x50] sm:$0xff] %vm594_vm0, %v4442_v58 }
 0x874   : > { %v4350_v15 = vpop.f32.mrf.mxu3 }
 0x875   : > { %v4400_v18 = vadd.f32 %v4399_v31, %v4350_v15 }
 0x877   : > { %v4423_v60 = vadd.f32 %v4400_v18, %v9121_v14 }
 0x879   : > { %v4443_v6 = vadd.f32 %v9161_v38, %v4423_v60 }
 0x87b   : > { %4459 = vst.msk [vmem:[%s9167_s15 + $0x58] sm:$0xff] %vm594_vm0, %v4443_v6 }
 0x88f   : > { %v4402_v16 = vpop.f32.mrf.mxu0 }
 0x895   : > { %v4353_v61 = vpop.f32.mrf.mxu3 }
 0x896   : > { %v4403_v0 = vadd.f32 %v4402_v16, %v4353_v61 }
 0x897   : > { %v4404_v35 = vpop.f32.mrf.mxu0 }
 0x898   : > { %v4424_v27 = vadd.f32 %v4403_v0, %v9132_v62 }
 0x89a   : > { %v4444_v40 = vadd.f32 %v9161_v38, %v4424_v27 }
 0x89c   : > { %4460 = vst.msk [vmem:[%s9167_s15 + $0x60] sm:$0xff] %vm594_vm0, %v4444_v40 }
 0x89d   : > { %v4355_v2 = vpop.f32.mrf.mxu3 }
 0x89e   : > { %v4405_v47 = vadd.f32 %v4404_v35, %v4355_v2 }
 0x8a0   : > { %v4425_v14 = vadd.f32 %v4405_v47, %v9137_v23 }
 0x8a2   : > { %v4445_v59 = vadd.f32 %v9161_v38, %v4425_v14 }
 0x8a4   : > { %4461 = vst.msk [vmem:[%s9167_s15 + $0x68] sm:$0xff] %vm594_vm0, %v4445_v59 }
 0x8a5   : > { %v4358_v48 = vpop.f32.mrf.mxu3  ;;  %v4407_v25 = vpop.f32.mrf.mxu2 }
 0x8a6   : > { %v4408_v4 = vadd.f32 %v4407_v25, %v4358_v48 }
 0x8a8   : > { %v4426_v5 = vadd.f32 %v4408_v4, %v9140_v30 }
 0x8aa   : > { %v4446_v62 = vadd.f32 %v9161_v38, %v4426_v5 }
 0x8ac   : > { %4462 = vst.msk [vmem:[%s9167_s15 + $0x70] sm:$0xff] %vm594_vm0, %v4446_v62 }
 0x8ad   : > { %v4360_v49 = vpop.f32.mrf.mxu3  ;;  %v4409_v24 = vpop.f32.mrf.mxu2 }
 0x8ae   : > { %v4410_v41 = vadd.f32 %v4409_v24, %v4360_v49 }
 0x8b0   : > { %v4427_v36 = vadd.f32 %v4410_v41, %v9145_v39 }
 0x8b2   : > { %v4447_v23 = vadd.f32 %v9161_v38, %v4427_v36 }
 0x8b4   : > { %4463 = vst.msk [vmem:[%s9167_s15 + $0x78] sm:$0xff] %vm594_vm0, %v4447_v23 }
 0x8b5 PF: > { %s9748_s16 = sld [smem:[#allocation15_spill]]  ;;  %s9751_s13 = smov %s5786_s14 }
 0x8b6   : > { %s9749_s30 = sld [smem:[#allocation14_spill]] }
 0x8b7   : > { %s9750_s15 = sld [smem:[#allocation16_spill]] }
 0x8bb   : > { %p23_p6 = scmp.ge.s32.totalorder %s9748_s16, 4  }
 0x8bc   : > { %s9752_s14 = smov %s9749_s30 }
 0x8bd   :  { %25 = sbr.rel (!%p23_p6) target bundleno = 8 (0x8), region = 135 }
 0x8c2   :  { %4486 = vsyncpa [#allocation5], 1 }
 0x8c3   :  { %4488 = vsyncpa [#allocation5 + $0x1], 1 }
 0x8c4   :  { %4489 = vsyncpa [#allocation7], 1 }
 0x8c5   :  { %4491 = vsyncpa [#allocation7 + $0x1], 1 }

</bundles_post_ra>
